<compile_context>
chip_gen: v7x
topology: tpu7x:2x2x1
jax: 0.10.0
libtpu: 0.0.40
codegen_flags: <defaults>
</compile_context>

<pallas_src>
import functools

import jax
import jax.numpy as jnp
from jax import lax
from jax.experimental import pallas as pl
from jax.experimental.pallas import tpu as pltpu


def _vmem():
    return pl.BlockSpec(memory_space=pltpu.MemorySpace.VMEM)


def _any():
    return pl.BlockSpec(memory_space=pl.ANY)


# ----------------------------- fused kernel ---------------------------------

def _fused_forward_kernel(patches_ref, cw_ref, cb_ref, wih_ref, bin_ref,
                          eb_ref, whh_hbm, ew_hbm, out_ref,
                          whh_vmem, ew_vmem, rnn_scr, sem, *, T, B, H):
    """Whole forward pass in one kernel.

    patches_ref : (T*B, Kpad)  bf16 im2col rows ordered (w, b), K zero-padded
    cw_ref      : (Kpad, C*Hf) bf16 block-structured conv weight -> GEMM output
                  is already the flattened (T, B, C*Hf) sequence layout
    cb_ref      : (1, C*Hf)   f32 conv bias (repeated over Hf)
    wih_ref     : (D, 8H)     bf16 [W_ih_f.T | W_ih_r.T]
    bin_ref     : (1, 8H)     f32  [b_ih_f+b_hh_f | b_ih_r+b_hh_r]
    eb_ref      : (1, Lpad)   f32  embedding bias, zero-padded to 128 lanes
    whh_hbm     : (2H, 4H)    bf16 [W_hh_f.T ; W_hh_r.T] in HBM (manual DMA)
    ew_hbm      : (2H, Lpad)  bf16 embedding weight.T in HBM (manual DMA)
    out_ref     : (T*B, Lpad) f32 lane-dense logits (cols >= label count zero)
    """
    f32 = jnp.float32
    bf16 = jnp.bfloat16

    # Kick off DMA for the recurrent + embedding weights right away; they are
    # only consumed after the conv GEMM / input projection, so their fetch is
    # hidden behind that compute (and, for emb, behind the recurrence).
    cp_whh = pltpu.make_async_copy(whh_hbm, whh_vmem, sem.at[0])
    cp_ew = pltpu.make_async_copy(ew_hbm, ew_vmem, sem.at[1])
    cp_whh.start()
    cp_ew.start()

    # 1) conv stem as a single bf16 GEMM (+bias, ReLU in f32).  Rows are
    #    (t=w, b); features are c*Hf + h, i.e. torch's permute(3,0,1,2).view().
    seq = jnp.dot(patches_ref[...], cw_ref[...], preferred_element_type=f32)
    seq = jnp.maximum(seq + cb_ref[...], 0.0)                     # (T*B, D) f32

    # 2) time-independent input projection for BOTH directions, hoisted out of
    #    the recurrence as one lane-dense (T*B, 8H) GEMM.
    gates_in = (jnp.dot(seq.astype(bf16), wih_ref[...],
                        preferred_element_type=f32) + bin_ref[...])  # (T*B,8H)

    # Block-diagonal selection mask (built once, outside the serial loop).
    rr = lax.broadcasted_iota(jnp.int32, (2 * B, 2 * H), 0) >= B
    cc = lax.broadcasted_iota(jnp.int32, (2 * B, 2 * H), 1) >= H
    blkmask = (rr == cc).astype(f32)      # 1 on the two diagonal blocks

    # W_hh is needed from the first recurrence step.
    cp_whh.wait()

    # 3) bidirectional recurrence, fully unrolled (T small & static).  Hidden
    #    state carried in block-diagonal (2B, 2H) layout: rows [:B] forward in
    #    cols [:H], rows [B:] reverse in cols [H:], so both directions'
    #    recurrent matmuls run as a single (2B,2H)@(2H,4H) MXU pass per step.
    h_bd = jnp.zeros((2 * B, 2 * H), f32)
    c = jnp.zeros((2 * B, H), f32)
    for s in range(T):
        g_f = gates_in[s * B:(s + 1) * B, 0:4 * H]                  # x[s]
        g_r = gates_in[(T - 1 - s) * B:(T - s) * B, 4 * H:8 * H]    # x[T-1-s]
        g_in = jnp.concatenate([g_f, g_r], axis=0)                  # (2B, 4H)
        gates = g_in + jnp.dot(h_bd.astype(bf16), whh_vmem[...],
                               preferred_element_type=f32)          # (2B, 4H)
        # PyTorch gate order: i, f, g, o  (all elementwise math stays f32)
        i_g = jax.nn.sigmoid(gates[:, 0 * H:1 * H])
        f_g = jax.nn.sigmoid(gates[:, 1 * H:2 * H])
        g_g = jnp.tanh(gates[:, 2 * H:3 * H])
        o_g = jax.nn.sigmoid(gates[:, 3 * H:4 * H])
        c = f_g * c + i_g * g_g
        h = o_g * jnp.tanh(c)                                       # (2B, H)
        # Store per-step outputs straight into the VMEM rnn buffer (no concat
        # tree, bounded live ranges): fwd -> time s, rev -> time T-1-s.
        rnn_scr[s * B:(s + 1) * B, 0:H] = h[:B]
        rnn_scr[(T - 1 - s) * B:(T - s) * B, H:2 * H] = h[B:]
        # Re-pack the carry into block-diagonal layout for the next step
        # (lane duplication + 1 VPU mul; off the MXU/EUP critical path).
        h_bd = jnp.concatenate([h, h], axis=1) * blkmask

    # 4) embedding GEMM, lane-dense (128-padded) output -> unmasked store.
    cp_ew.wait()
    out_ref[...] = (jnp.dot(rnn_scr[...].astype(bf16), ew_vmem[...],
                            preferred_element_type=f32) + eb_ref[...])


# --------------------------- parameter packing -------------------------------

def prepare_params(params, *, image_shape=(16, 16)):
    """One-time packing of PyTorch-layout weights into kernel-friendly layouts.

    All large matrices are stored bf16 (halves weight DMA); biases stay f32.
    """
    bf16 = jnp.bfloat16
    conv_w = params["conv_w"]                       # (Cout, Cin, 3, 3)
    Cout = conv_w.shape[0]
    Ho = image_shape[0] // 2
    K = conv_w.shape[1] * conv_w.shape[2] * conv_w.shape[3]
    w_flat = conv_w.reshape(Cout, K).astype(jnp.float32)
    eye_h = jnp.eye(Ho, dtype=jnp.float32)
    # Block-structured conv weight: the conv GEMM output columns are ordered
    # c*Hf + h (the sequence feature layout) -> no in-kernel transpose.
    conv_w_blk = jnp.einsum("hg,ck->hkcg", eye_h, w_flat).reshape(Ho * K, Cout * Ho)
    Kpad = ((Ho * K + 127) // 128) * 128            # pad K (216 -> 256)
    conv_w_blk = jnp.pad(conv_w_blk, ((0, Kpad - Ho * K), (0, 0))).astype(bf16)
    conv_b_blk = jnp.repeat(params["conv_b"], Ho).reshape(1, Cout * Ho)
    conv_b_blk = conv_b_blk.astype(jnp.float32)

    H = params["w_hh_f"].shape[1]
    wih = jnp.concatenate([params["w_ih_f"].T, params["w_ih_r"].T],
                          axis=1).astype(bf16)                      # (D, 8H)
    b_in = jnp.concatenate([params["b_ih_f"] + params["b_hh_f"],
                            params["b_ih_r"] + params["b_hh_r"]])
    b_in = b_in.reshape(1, 8 * H).astype(jnp.float32)
    whh = jnp.concatenate([params["w_hh_f"].T, params["w_hh_r"].T],
                          axis=0).astype(bf16)                      # (2H, 4H)

    L = params["emb_w"].shape[0]
    Lpad = max(128, ((L + 127) // 128) * 128)
    emb_w = jnp.zeros((2 * H, Lpad), bf16).at[:, :L].set(
        params["emb_w"].T.astype(bf16))
    emb_b = jnp.zeros((1, Lpad), jnp.float32).at[0, :L].set(params["emb_b"])

    return {"conv_w_blk": conv_w_blk, "conv_b_blk": conv_b_blk,
            "wih": wih, "b_in": b_in, "whh": whh,
            "emb_w": emb_w, "emb_b": emb_b}


# ------------------------------- forward --------------------------------------

def blstm_ctc_forward(x, packed, *, label_map_length):
    B = x.shape[0]
    # TODO(synk): the exact resnet18().extract_features(x, run_to=3)[2] backbone
    # is not specified; a representative stride-2 3x3 conv stem (+bias +ReLU)
    # stands in for it.  Its im2col patch extraction is one small XLA fusion
    # feeding the custom call; everything downstream is the fused Pallas kernel.
    patches = lax.conv_general_dilated_patches(
        x, filter_shape=(3, 3), window_strides=(2, 2),
        padding=((1, 1), (1, 1)),
        dimension_numbers=("NCHW", "OIHW", "NCHW"))      # (B, Cin*9, Ho, Wo)
    _, K, Ho, Wo = patches.shape
    # rows ordered (w, b); per-row features ordered (h, cin*kh*kw)
    patches_mat = patches.transpose(3, 0, 2, 1).reshape(Wo * B, Ho * K)
    Kpad = packed["conv_w_blk"].shape[0]
    patches_mat = jnp.pad(patches_mat,
                          ((0, 0), (0, Kpad - Ho * K))).astype(jnp.bfloat16)

    T = Wo
    H = packed["whh"].shape[1] // 4
    Lpad = packed["emb_w"].shape[1]

    out_pad = pl.pallas_call(
        functools.partial(_fused_forward_kernel, T=T, B=B, H=H),
        out_shape=jax.ShapeDtypeStruct((T * B, Lpad), jnp.float32),
        in_specs=[_vmem()] * 6 + [_any(), _any()],
        out_specs=_vmem(),
        scratch_shapes=[
            pltpu.VMEM((2 * H, 4 * H), jnp.bfloat16),   # whh landing buffer
            pltpu.VMEM((2 * H, Lpad), jnp.bfloat16),    # emb_w landing buffer
            pltpu.VMEM((T * B, 2 * H), jnp.float32),    # rnn outputs
            pltpu.SemaphoreType.DMA((2,)),
        ],
    )(patches_mat, packed["conv_w_blk"], packed["conv_b_blk"],
      packed["wih"], packed["b_in"], packed["emb_b"],
      packed["whh"], packed["emb_w"])

    return out_pad[:, :label_map_length].reshape(T, B, label_map_length)


# ------------------------------- init ------------------------------------------

def init_params(key, image_shape=(16, 16), feat_channels=16, label_map_length=10):
    Hf = image_shape[0] // 2
    D = feat_channels * Hf   # bone_output_shape = C * H of the feature map
    H = D                    # nn.LSTM(bone_output_shape, bone_output_shape)
    keys = jax.random.split(key, 12)

    def u(k, shape, scale):
        return jax.random.uniform(k, shape, jnp.float32, -scale, scale)

    sc = 1.0 / (3 * 3 * 3) ** 0.5
    sk = 1.0 / H ** 0.5
    se = 1.0 / (2 * H) ** 0.5
    return {
        "conv_w": u(keys[0], (feat_channels, 3, 3, 3), sc),
        "conv_b": u(keys[1], (feat_channels,), sc),
        "w_ih_f": u(keys[2], (4 * H, D), sk),
        "w_hh_f": u(keys[3], (4 * H, H), sk),
        "b_ih_f": u(keys[4], (4 * H,), sk),
        "b_hh_f": u(keys[5], (4 * H,), sk),
        "w_ih_r": u(keys[6], (4 * H, D), sk),
        "w_hh_r": u(keys[7], (4 * H, H), sk),
        "b_ih_r": u(keys[8], (4 * H,), sk),
        "b_hh_r": u(keys[9], (4 * H,), sk),
        "emb_w": u(keys[10], (label_map_length, 2 * H), se),
        "emb_b": u(keys[11], (label_map_length,), se),
    }


if __name__ == "__main__":
    key = jax.random.PRNGKey(0)
    kp, kx = jax.random.split(key)
    raw = init_params(kp, image_shape=(16, 16), feat_channels=16,
                      label_map_length=10)
    packed = prepare_params(raw, image_shape=(16, 16))      # one-time packing
    x = jax.random.normal(kx, (2, 3, 16, 16), jnp.float32)  # NCHW like PyTorch

    fwd = jax.jit(blstm_ctc_forward, static_argnames="label_map_length")
    out = fwd(x, packed, label_map_length=10)
    jax.block_until_ready(out)
    assert out.shape == (8, 2, 10), out.shape                # (time, batch, labels)
    assert bool(jnp.all(jnp.isfinite(out)))
    print("KERNEL_OK")
</pallas_src>

<mosaic_0001>
module attributes {stable_mosaic.version = 11 : i64} {
  func.func @_fused_forward_kernel(%arg0: memref<16x256xbf16, #tpu.memory_space<vmem>>, %arg1: memref<256x128xbf16, #tpu.memory_space<vmem>>, %arg2: memref<1x128xf32, #tpu.memory_space<vmem>>, %arg3: memref<128x1024xbf16, #tpu.memory_space<vmem>>, %arg4: memref<1x1024xf32, #tpu.memory_space<vmem>>, %arg5: memref<1x128xf32, #tpu.memory_space<vmem>>, %arg6: memref<256x512xbf16, #tpu.memory_space<any>>, %arg7: memref<256x128xbf16, #tpu.memory_space<any>>, %arg8: memref<16x128xf32, #tpu.memory_space<vmem>>, %arg9: memref<256x512xbf16, #tpu.memory_space<vmem>>, %arg10: memref<256x128xbf16, #tpu.memory_space<vmem>>, %arg11: memref<16x256xf32, #tpu.memory_space<vmem>>, %arg12: memref<2x!tpu.dma_semaphore, #tpu.memory_space<semaphore_mem>>) attributes {dimension_semantics = [], scalar_prefetch = 0 : i64, scratch_operands = 4 : i64, tpu.core_type = #tpu.core_type<tc>} {
    %c0_i32 = arith.constant 0 : i32
    %0 = tpu.memref_slice %arg12[%c0_i32] : memref<2x!tpu.dma_semaphore, #tpu.memory_space<semaphore_mem>> -> memref<1x!tpu.dma_semaphore, #tpu.memory_space<semaphore_mem>>
    %1 = tpu.memref_squeeze %0 : memref<1x!tpu.dma_semaphore, #tpu.memory_space<semaphore_mem>> -> memref<!tpu.dma_semaphore, #tpu.memory_space<semaphore_mem>>
    tpu.enqueue_dma source(%arg6 : memref<256x512xbf16, #tpu.memory_space<any>>) target(%arg9 : memref<256x512xbf16, #tpu.memory_space<vmem>>) target_semaphore(%1 : memref<!tpu.dma_semaphore, #tpu.memory_space<semaphore_mem>>)
    %c1_i32 = arith.constant 1 : i32
    %2 = tpu.memref_slice %arg12[%c1_i32] : memref<2x!tpu.dma_semaphore, #tpu.memory_space<semaphore_mem>> -> memref<1x!tpu.dma_semaphore, #tpu.memory_space<semaphore_mem>>
    %3 = tpu.memref_squeeze %2 : memref<1x!tpu.dma_semaphore, #tpu.memory_space<semaphore_mem>> -> memref<!tpu.dma_semaphore, #tpu.memory_space<semaphore_mem>>
    tpu.enqueue_dma source(%arg7 : memref<256x128xbf16, #tpu.memory_space<any>>) target(%arg10 : memref<256x128xbf16, #tpu.memory_space<vmem>>) target_semaphore(%3 : memref<!tpu.dma_semaphore, #tpu.memory_space<semaphore_mem>>)
    %c0 = arith.constant 0 : index
    %c0_0 = arith.constant 0 : index
    %4 = vector.load %arg0[%c0, %c0_0] : memref<16x256xbf16, #tpu.memory_space<vmem>>, vector<16x256xbf16>
    %c0_1 = arith.constant 0 : index
    %c0_2 = arith.constant 0 : index
    %5 = vector.load %arg1[%c0_1, %c0_2] : memref<256x128xbf16, #tpu.memory_space<vmem>>, vector<256x128xbf16>
    %cst = arith.constant dense<0.000000e+00> : vector<16x128xf32>
    %6 = tpu.matmul %4, %5, %cst {dimension_numbers = #tpu.dot_dimension_numbers<[1], [0], [0], [1], [0, 0, 1, 1], [], []>} : vector<16x256xbf16>, vector<256x128xbf16>, vector<16x128xf32> -> vector<16x128xf32>
    %c0_3 = arith.constant 0 : index
    %c0_4 = arith.constant 0 : index
    %7 = vector.load %arg2[%c0_3, %c0_4] : memref<1x128xf32, #tpu.memory_space<vmem>>, vector<1x128xf32>
    %8 = vector.broadcast %7 : vector<1x128xf32> to vector<16x128xf32>
    %9 = arith.addf %6, %8 : vector<16x128xf32>
    %cst_5 = arith.constant 0.000000e+00 : f32
    %10 = vector.broadcast %cst_5 : f32 to vector<16x128xf32>
    %11 = arith.maximumf %9, %10 : vector<16x128xf32>
    %12 = arith.truncf %11 : vector<16x128xf32> to vector<16x128xbf16>
    %c0_6 = arith.constant 0 : index
    %c0_7 = arith.constant 0 : index
    %13 = vector.load %arg3[%c0_6, %c0_7] : memref<128x1024xbf16, #tpu.memory_space<vmem>>, vector<128x1024xbf16>
    %cst_8 = arith.constant dense<0.000000e+00> : vector<16x1024xf32>
    %14 = tpu.matmul %12, %13, %cst_8 {dimension_numbers = #tpu.dot_dimension_numbers<[1], [0], [0], [1], [0, 0, 1, 1], [], []>} : vector<16x128xbf16>, vector<128x1024xbf16>, vector<16x1024xf32> -> vector<16x1024xf32>
    %c0_9 = arith.constant 0 : index
    %c0_10 = arith.constant 0 : index
    %15 = vector.load %arg4[%c0_9, %c0_10] : memref<1x1024xf32, #tpu.memory_space<vmem>>, vector<1x1024xf32>
    %16 = vector.broadcast %15 : vector<1x1024xf32> to vector<16x1024xf32>
    %17 = arith.addf %14, %16 : vector<16x1024xf32>
    %18 = tpu.iota {dimensions = array<i32: 0>} : vector<4x256xi32>
    %c2_i32 = arith.constant 2 : i32
    %19 = vector.broadcast %c2_i32 : i32 to vector<4x256xi32>
    %20 = arith.cmpi sge, %18, %19 : vector<4x256xi32>
    %21 = tpu.iota {dimensions = array<i32: 1>} : vector<4x256xi32>
    %c128_i32 = arith.constant 128 : i32
    %22 = vector.broadcast %c128_i32 : i32 to vector<4x256xi32>
    %23 = arith.cmpi sge, %21, %22 : vector<4x256xi32>
    %24 = arith.xori %20, %23 : vector<4x256xi1>
    %cst_11 = arith.constant dense<true> : vector<4x256xi1>
    %25 = arith.xori %24, %cst_11 : vector<4x256xi1>
    %26 = arith.extui %25 : vector<4x256xi1> to vector<4x256xi32>
    %27 = arith.sitofp %26 : vector<4x256xi32> to vector<4x256xf32>
    %c0_i32_12 = arith.constant 0 : i32
    %28 = tpu.memref_slice %arg12[%c0_i32_12] : memref<2x!tpu.dma_semaphore, #tpu.memory_space<semaphore_mem>> -> memref<1x!tpu.dma_semaphore, #tpu.memory_space<semaphore_mem>>
    %29 = tpu.memref_squeeze %28 : memref<1x!tpu.dma_semaphore, #tpu.memory_space<semaphore_mem>> -> memref<!tpu.dma_semaphore, #tpu.memory_space<semaphore_mem>>
    tpu.wait_dma2 semaphore(%29 : memref<!tpu.dma_semaphore, #tpu.memory_space<semaphore_mem>>) src(%arg6 : memref<256x512xbf16, #tpu.memory_space<any>>) dst(%arg9 : memref<256x512xbf16, #tpu.memory_space<vmem>>)
    %cst_13 = arith.constant 0.000000e+00 : f32
    %30 = vector.broadcast %cst_13 : f32 to vector<4x256xf32>
    %cst_14 = arith.constant 0.000000e+00 : f32
    %31 = vector.broadcast %cst_14 : f32 to vector<4x128xf32>
    %32 = vector.extract_strided_slice %17 {offsets = [0, 0], sizes = [2, 512], strides = [1, 1]} : vector<16x1024xf32> to vector<2x512xf32>
    %33 = vector.extract_strided_slice %17 {offsets = [14, 512], sizes = [2, 512], strides = [1, 1]} : vector<16x1024xf32> to vector<2x512xf32>
    %34 = tpu.concatenate %32, %33 in 0 : vector<2x512xf32>, vector<2x512xf32> -> vector<4x512xf32>
    %35 = arith.truncf %30 : vector<4x256xf32> to vector<4x256xbf16>
    %c0_15 = arith.constant 0 : index
    %c0_16 = arith.constant 0 : index
    %36 = vector.load %arg9[%c0_15, %c0_16] : memref<256x512xbf16, #tpu.memory_space<vmem>>, vector<256x512xbf16>
    %cst_17 = arith.constant dense<0.000000e+00> : vector<4x512xf32>
    %37 = tpu.matmul %35, %36, %cst_17 {dimension_numbers = #tpu.dot_dimension_numbers<[1], [0], [0], [1], [0, 0, 1, 1], [], []>} : vector<4x256xbf16>, vector<256x512xbf16>, vector<4x512xf32> -> vector<4x512xf32>
    %38 = arith.addf %34, %37 : vector<4x512xf32>
    %39 = vector.extract_strided_slice %38 {offsets = [0, 0], sizes = [4, 128], strides = [1, 1]} : vector<4x512xf32> to vector<4x128xf32>
    %40 = arith.negf %39 : vector<4x128xf32>
    %41 = math.exp %40 : vector<4x128xf32>
    %cst_18 = arith.constant 1.000000e+00 : f32
    %42 = vector.broadcast %cst_18 : f32 to vector<4x128xf32>
    %43 = arith.addf %42, %41 : vector<4x128xf32>
    %44 = arith.divf %42, %43 : vector<4x128xf32>
    %45 = vector.extract_strided_slice %38 {offsets = [0, 128], sizes = [4, 128], strides = [1, 1]} : vector<4x512xf32> to vector<4x128xf32>
    %46 = arith.negf %45 : vector<4x128xf32>
    %47 = math.exp %46 : vector<4x128xf32>
    %cst_19 = arith.constant 1.000000e+00 : f32
    %48 = vector.broadcast %cst_19 : f32 to vector<4x128xf32>
    %49 = arith.addf %48, %47 : vector<4x128xf32>
    %50 = arith.divf %48, %49 : vector<4x128xf32>
    %51 = vector.extract_strided_slice %38 {offsets = [0, 256], sizes = [4, 128], strides = [1, 1]} : vector<4x512xf32> to vector<4x128xf32>
    %52 = math.tanh %51 : vector<4x128xf32>
    %53 = vector.extract_strided_slice %38 {offsets = [0, 384], sizes = [4, 128], strides = [1, 1]} : vector<4x512xf32> to vector<4x128xf32>
    %54 = arith.negf %53 : vector<4x128xf32>
    %55 = math.exp %54 : vector<4x128xf32>
    %cst_20 = arith.constant 1.000000e+00 : f32
    %56 = vector.broadcast %cst_20 : f32 to vector<4x128xf32>
    %57 = arith.addf %56, %55 : vector<4x128xf32>
    %58 = arith.divf %56, %57 : vector<4x128xf32>
    %59 = arith.mulf %50, %31 : vector<4x128xf32>
    %60 = arith.mulf %44, %52 : vector<4x128xf32>
    %61 = arith.addf %59, %60 : vector<4x128xf32>
    %62 = math.tanh %61 : vector<4x128xf32>
    %63 = arith.mulf %58, %62 : vector<4x128xf32>
    %64 = vector.extract_strided_slice %63 {offsets = [0, 0], sizes = [2, 128], strides = [1, 1]} : vector<4x128xf32> to vector<2x128xf32>
    %c0_21 = arith.constant 0 : index
    %c0_22 = arith.constant 0 : index
    %65 = vector.load %arg11[%c0_21, %c0_22] : memref<16x256xf32, #tpu.memory_space<vmem>>, vector<2x128xf32>
    tpu.vector_store %arg11[%c0_21, %c0_22], %64 {strides = array<i32>} : memref<16x256xf32, #tpu.memory_space<vmem>>, vector<2x128xf32>,
    %66 = vector.extract_strided_slice %63 {offsets = [2, 0], sizes = [2, 128], strides = [1, 1]} : vector<4x128xf32> to vector<2x128xf32>
    %c14 = arith.constant 14 : index
    %c128 = arith.constant 128 : index
    %67 = vector.load %arg11[%c14, %c128] : memref<16x256xf32, #tpu.memory_space<vmem>>, vector<2x128xf32>
    tpu.vector_store %arg11[%c14, %c128], %66 {strides = array<i32>} : memref<16x256xf32, #tpu.memory_space<vmem>>, vector<2x128xf32>,
    %68 = tpu.concatenate %63, %63 in 1 : vector<4x128xf32>, vector<4x128xf32> -> vector<4x256xf32>
    %69 = arith.mulf %68, %27 : vector<4x256xf32>
    %70 = vector.extract_strided_slice %17 {offsets = [2, 0], sizes = [2, 512], strides = [1, 1]} : vector<16x1024xf32> to vector<2x512xf32>
    %71 = vector.extract_strided_slice %17 {offsets = [12, 512], sizes = [2, 512], strides = [1, 1]} : vector<16x1024xf32> to vector<2x512xf32>
    %72 = tpu.concatenate %70, %71 in 0 : vector<2x512xf32>, vector<2x512xf32> -> vector<4x512xf32>
    %73 = arith.truncf %69 : vector<4x256xf32> to vector<4x256xbf16>
    %c0_23 = arith.constant 0 : index
    %c0_24 = arith.constant 0 : index
    %74 = vector.load %arg9[%c0_23, %c0_24] : memref<256x512xbf16, #tpu.memory_space<vmem>>, vector<256x512xbf16>
    %cst_25 = arith.constant dense<0.000000e+00> : vector<4x512xf32>
    %75 = tpu.matmul %73, %74, %cst_25 {dimension_numbers = #tpu.dot_dimension_numbers<[1], [0], [0], [1], [0, 0, 1, 1], [], []>} : vector<4x256xbf16>, vector<256x512xbf16>, vector<4x512xf32> -> vector<4x512xf32>
    %76 = arith.addf %72, %75 : vector<4x512xf32>
    %77 = vector.extract_strided_slice %76 {offsets = [0, 0], sizes = [4, 128], strides = [1, 1]} : vector<4x512xf32> to vector<4x128xf32>
    %78 = arith.negf %77 : vector<4x128xf32>
    %79 = math.exp %78 : vector<4x128xf32>
    %cst_26 = arith.constant 1.000000e+00 : f32
    %80 = vector.broadcast %cst_26 : f32 to vector<4x128xf32>
    %81 = arith.addf %80, %79 : vector<4x128xf32>
    %82 = arith.divf %80, %81 : vector<4x128xf32>
    %83 = vector.extract_strided_slice %76 {offsets = [0, 128], sizes = [4, 128], strides = [1, 1]} : vector<4x512xf32> to vector<4x128xf32>
    %84 = arith.negf %83 : vector<4x128xf32>
    %85 = math.exp %84 : vector<4x128xf32>
    %cst_27 = arith.constant 1.000000e+00 : f32
    %86 = vector.broadcast %cst_27 : f32 to vector<4x128xf32>
    %87 = arith.addf %86, %85 : vector<4x128xf32>
    %88 = arith.divf %86, %87 : vector<4x128xf32>
    %89 = vector.extract_strided_slice %76 {offsets = [0, 256], sizes = [4, 128], strides = [1, 1]} : vector<4x512xf32> to vector<4x128xf32>
    %90 = math.tanh %89 : vector<4x128xf32>
    %91 = vector.extract_strided_slice %76 {offsets = [0, 384], sizes = [4, 128], strides = [1, 1]} : vector<4x512xf32> to vector<4x128xf32>
    %92 = arith.negf %91 : vector<4x128xf32>
    %93 = math.exp %92 : vector<4x128xf32>
    %cst_28 = arith.constant 1.000000e+00 : f32
    %94 = vector.broadcast %cst_28 : f32 to vector<4x128xf32>
    %95 = arith.addf %94, %93 : vector<4x128xf32>
    %96 = arith.divf %94, %95 : vector<4x128xf32>
    %97 = arith.mulf %88, %61 : vector<4x128xf32>
    %98 = arith.mulf %82, %90 : vector<4x128xf32>
    %99 = arith.addf %97, %98 : vector<4x128xf32>
    %100 = math.tanh %99 : vector<4x128xf32>
    %101 = arith.mulf %96, %100 : vector<4x128xf32>
    %102 = vector.extract_strided_slice %101 {offsets = [0, 0], sizes = [2, 128], strides = [1, 1]} : vector<4x128xf32> to vector<2x128xf32>
    %c2 = arith.constant 2 : index
    %c0_29 = arith.constant 0 : index
    %103 = vector.load %arg11[%c2, %c0_29] : memref<16x256xf32, #tpu.memory_space<vmem>>, vector<2x128xf32>
    tpu.vector_store %arg11[%c2, %c0_29], %102 {strides = array<i32>} : memref<16x256xf32, #tpu.memory_space<vmem>>, vector<2x128xf32>,
    %104 = vector.extract_strided_slice %101 {offsets = [2, 0], sizes = [2, 128], strides = [1, 1]} : vector<4x128xf32> to vector<2x128xf32>
    %c12 = arith.constant 12 : index
    %c128_30 = arith.constant 128 : index
    %105 = vector.load %arg11[%c12, %c128_30] : memref<16x256xf32, #tpu.memory_space<vmem>>, vector<2x128xf32>
    tpu.vector_store %arg11[%c12, %c128_30], %104 {strides = array<i32>} : memref<16x256xf32, #tpu.memory_space<vmem>>, vector<2x128xf32>,
    %106 = tpu.concatenate %101, %101 in 1 : vector<4x128xf32>, vector<4x128xf32> -> vector<4x256xf32>
    %107 = arith.mulf %106, %27 : vector<4x256xf32>
    %108 = vector.extract_strided_slice %17 {offsets = [4, 0], sizes = [2, 512], strides = [1, 1]} : vector<16x1024xf32> to vector<2x512xf32>
    %109 = vector.extract_strided_slice %17 {offsets = [10, 512], sizes = [2, 512], strides = [1, 1]} : vector<16x1024xf32> to vector<2x512xf32>
    %110 = tpu.concatenate %108, %109 in 0 : vector<2x512xf32>, vector<2x512xf32> -> vector<4x512xf32>
    %111 = arith.truncf %107 : vector<4x256xf32> to vector<4x256xbf16>
    %c0_31 = arith.constant 0 : index
    %c0_32 = arith.constant 0 : index
    %112 = vector.load %arg9[%c0_31, %c0_32] : memref<256x512xbf16, #tpu.memory_space<vmem>>, vector<256x512xbf16>
    %cst_33 = arith.constant dense<0.000000e+00> : vector<4x512xf32>
    %113 = tpu.matmul %111, %112, %cst_33 {dimension_numbers = #tpu.dot_dimension_numbers<[1], [0], [0], [1], [0, 0, 1, 1], [], []>} : vector<4x256xbf16>, vector<256x512xbf16>, vector<4x512xf32> -> vector<4x512xf32>
    %114 = arith.addf %110, %113 : vector<4x512xf32>
    %115 = vector.extract_strided_slice %114 {offsets = [0, 0], sizes = [4, 128], strides = [1, 1]} : vector<4x512xf32> to vector<4x128xf32>
    %116 = arith.negf %115 : vector<4x128xf32>
    %117 = math.exp %116 : vector<4x128xf32>
    %cst_34 = arith.constant 1.000000e+00 : f32
    %118 = vector.broadcast %cst_34 : f32 to vector<4x128xf32>
    %119 = arith.addf %118, %117 : vector<4x128xf32>
    %120 = arith.divf %118, %119 : vector<4x128xf32>
    %121 = vector.extract_strided_slice %114 {offsets = [0, 128], sizes = [4, 128], strides = [1, 1]} : vector<4x512xf32> to vector<4x128xf32>
    %122 = arith.negf %121 : vector<4x128xf32>
    %123 = math.exp %122 : vector<4x128xf32>
    %cst_35 = arith.constant 1.000000e+00 : f32
    %124 = vector.broadcast %cst_35 : f32 to vector<4x128xf32>
    %125 = arith.addf %124, %123 : vector<4x128xf32>
    %126 = arith.divf %124, %125 : vector<4x128xf32>
    %127 = vector.extract_strided_slice %114 {offsets = [0, 256], sizes = [4, 128], strides = [1, 1]} : vector<4x512xf32> to vector<4x128xf32>
    %128 = math.tanh %127 : vector<4x128xf32>
    %129 = vector.extract_strided_slice %114 {offsets = [0, 384], sizes = [4, 128], strides = [1, 1]} : vector<4x512xf32> to vector<4x128xf32>
    %130 = arith.negf %129 : vector<4x128xf32>
    %131 = math.exp %130 : vector<4x128xf32>
    %cst_36 = arith.constant 1.000000e+00 : f32
    %132 = vector.broadcast %cst_36 : f32 to vector<4x128xf32>
    %133 = arith.addf %132, %131 : vector<4x128xf32>
    %134 = arith.divf %132, %133 : vector<4x128xf32>
    %135 = arith.mulf %126, %99 : vector<4x128xf32>
    %136 = arith.mulf %120, %128 : vector<4x128xf32>
    %137 = arith.addf %135, %136 : vector<4x128xf32>
    %138 = math.tanh %137 : vector<4x128xf32>
    %139 = arith.mulf %134, %138 : vector<4x128xf32>
    %140 = vector.extract_strided_slice %139 {offsets = [0, 0], sizes = [2, 128], strides = [1, 1]} : vector<4x128xf32> to vector<2x128xf32>
    %c4 = arith.constant 4 : index
    %c0_37 = arith.constant 0 : index
    %141 = vector.load %arg11[%c4, %c0_37] : memref<16x256xf32, #tpu.memory_space<vmem>>, vector<2x128xf32>
    tpu.vector_store %arg11[%c4, %c0_37], %140 {strides = array<i32>} : memref<16x256xf32, #tpu.memory_space<vmem>>, vector<2x128xf32>,
    %142 = vector.extract_strided_slice %139 {offsets = [2, 0], sizes = [2, 128], strides = [1, 1]} : vector<4x128xf32> to vector<2x128xf32>
    %c10 = arith.constant 10 : index
    %c128_38 = arith.constant 128 : index
    %143 = vector.load %arg11[%c10, %c128_38] : memref<16x256xf32, #tpu.memory_space<vmem>>, vector<2x128xf32>
    tpu.vector_store %arg11[%c10, %c128_38], %142 {strides = array<i32>} : memref<16x256xf32, #tpu.memory_space<vmem>>, vector<2x128xf32>,
    %144 = tpu.concatenate %139, %139 in 1 : vector<4x128xf32>, vector<4x128xf32> -> vector<4x256xf32>
    %145 = arith.mulf %144, %27 : vector<4x256xf32>
    %146 = vector.extract_strided_slice %17 {offsets = [6, 0], sizes = [2, 512], strides = [1, 1]} : vector<16x1024xf32> to vector<2x512xf32>
    %147 = vector.extract_strided_slice %17 {offsets = [8, 512], sizes = [2, 512], strides = [1, 1]} : vector<16x1024xf32> to vector<2x512xf32>
    %148 = tpu.concatenate %146, %147 in 0 : vector<2x512xf32>, vector<2x512xf32> -> vector<4x512xf32>
    %149 = arith.truncf %145 : vector<4x256xf32> to vector<4x256xbf16>
    %c0_39 = arith.constant 0 : index
    %c0_40 = arith.constant 0 : index
    %150 = vector.load %arg9[%c0_39, %c0_40] : memref<256x512xbf16, #tpu.memory_space<vmem>>, vector<256x512xbf16>
    %cst_41 = arith.constant dense<0.000000e+00> : vector<4x512xf32>
    %151 = tpu.matmul %149, %150, %cst_41 {dimension_numbers = #tpu.dot_dimension_numbers<[1], [0], [0], [1], [0, 0, 1, 1], [], []>} : vector<4x256xbf16>, vector<256x512xbf16>, vector<4x512xf32> -> vector<4x512xf32>
    %152 = arith.addf %148, %151 : vector<4x512xf32>
    %153 = vector.extract_strided_slice %152 {offsets = [0, 0], sizes = [4, 128], strides = [1, 1]} : vector<4x512xf32> to vector<4x128xf32>
    %154 = arith.negf %153 : vector<4x128xf32>
    %155 = math.exp %154 : vector<4x128xf32>
    %cst_42 = arith.constant 1.000000e+00 : f32
    %156 = vector.broadcast %cst_42 : f32 to vector<4x128xf32>
    %157 = arith.addf %156, %155 : vector<4x128xf32>
    %158 = arith.divf %156, %157 : vector<4x128xf32>
    %159 = vector.extract_strided_slice %152 {offsets = [0, 128], sizes = [4, 128], strides = [1, 1]} : vector<4x512xf32> to vector<4x128xf32>
    %160 = arith.negf %159 : vector<4x128xf32>
    %161 = math.exp %160 : vector<4x128xf32>
    %cst_43 = arith.constant 1.000000e+00 : f32
    %162 = vector.broadcast %cst_43 : f32 to vector<4x128xf32>
    %163 = arith.addf %162, %161 : vector<4x128xf32>
    %164 = arith.divf %162, %163 : vector<4x128xf32>
    %165 = vector.extract_strided_slice %152 {offsets = [0, 256], sizes = [4, 128], strides = [1, 1]} : vector<4x512xf32> to vector<4x128xf32>
    %166 = math.tanh %165 : vector<4x128xf32>
    %167 = vector.extract_strided_slice %152 {offsets = [0, 384], sizes = [4, 128], strides = [1, 1]} : vector<4x512xf32> to vector<4x128xf32>
    %168 = arith.negf %167 : vector<4x128xf32>
    %169 = math.exp %168 : vector<4x128xf32>
    %cst_44 = arith.constant 1.000000e+00 : f32
    %170 = vector.broadcast %cst_44 : f32 to vector<4x128xf32>
    %171 = arith.addf %170, %169 : vector<4x128xf32>
    %172 = arith.divf %170, %171 : vector<4x128xf32>
    %173 = arith.mulf %164, %137 : vector<4x128xf32>
    %174 = arith.mulf %158, %166 : vector<4x128xf32>
    %175 = arith.addf %173, %174 : vector<4x128xf32>
    %176 = math.tanh %175 : vector<4x128xf32>
    %177 = arith.mulf %172, %176 : vector<4x128xf32>
    %178 = vector.extract_strided_slice %177 {offsets = [0, 0], sizes = [2, 128], strides = [1, 1]} : vector<4x128xf32> to vector<2x128xf32>
    %c6 = arith.constant 6 : index
    %c0_45 = arith.constant 0 : index
    %179 = vector.load %arg11[%c6, %c0_45] : memref<16x256xf32, #tpu.memory_space<vmem>>, vector<2x128xf32>
    tpu.vector_store %arg11[%c6, %c0_45], %178 {strides = array<i32>} : memref<16x256xf32, #tpu.memory_space<vmem>>, vector<2x128xf32>,
    %180 = vector.extract_strided_slice %177 {offsets = [2, 0], sizes = [2, 128], strides = [1, 1]} : vector<4x128xf32> to vector<2x128xf32>
    %c8 = arith.constant 8 : index
    %c128_46 = arith.constant 128 : index
    %181 = vector.load %arg11[%c8, %c128_46] : memref<16x256xf32, #tpu.memory_space<vmem>>, vector<2x128xf32>
    tpu.vector_store %arg11[%c8, %c128_46], %180 {strides = array<i32>} : memref<16x256xf32, #tpu.memory_space<vmem>>, vector<2x128xf32>,
    %182 = tpu.concatenate %177, %177 in 1 : vector<4x128xf32>, vector<4x128xf32> -> vector<4x256xf32>
    %183 = arith.mulf %182, %27 : vector<4x256xf32>
    %184 = vector.extract_strided_slice %17 {offsets = [8, 0], sizes = [2, 512], strides = [1, 1]} : vector<16x1024xf32> to vector<2x512xf32>
    %185 = vector.extract_strided_slice %17 {offsets = [6, 512], sizes = [2, 512], strides = [1, 1]} : vector<16x1024xf32> to vector<2x512xf32>
    %186 = tpu.concatenate %184, %185 in 0 : vector<2x512xf32>, vector<2x512xf32> -> vector<4x512xf32>
    %187 = arith.truncf %183 : vector<4x256xf32> to vector<4x256xbf16>
    %c0_47 = arith.constant 0 : index
    %c0_48 = arith.constant 0 : index
    %188 = vector.load %arg9[%c0_47, %c0_48] : memref<256x512xbf16, #tpu.memory_space<vmem>>, vector<256x512xbf16>
    %cst_49 = arith.constant dense<0.000000e+00> : vector<4x512xf32>
    %189 = tpu.matmul %187, %188, %cst_49 {dimension_numbers = #tpu.dot_dimension_numbers<[1], [0], [0], [1], [0, 0, 1, 1], [], []>} : vector<4x256xbf16>, vector<256x512xbf16>, vector<4x512xf32> -> vector<4x512xf32>
    %190 = arith.addf %186, %189 : vector<4x512xf32>
    %191 = vector.extract_strided_slice %190 {offsets = [0, 0], sizes = [4, 128], strides = [1, 1]} : vector<4x512xf32> to vector<4x128xf32>
    %192 = arith.negf %191 : vector<4x128xf32>
    %193 = math.exp %192 : vector<4x128xf32>
    %cst_50 = arith.constant 1.000000e+00 : f32
    %194 = vector.broadcast %cst_50 : f32 to vector<4x128xf32>
    %195 = arith.addf %194, %193 : vector<4x128xf32>
    %196 = arith.divf %194, %195 : vector<4x128xf32>
    %197 = vector.extract_strided_slice %190 {offsets = [0, 128], sizes = [4, 128], strides = [1, 1]} : vector<4x512xf32> to vector<4x128xf32>
    %198 = arith.negf %197 : vector<4x128xf32>
    %199 = math.exp %198 : vector<4x128xf32>
    %cst_51 = arith.constant 1.000000e+00 : f32
    %200 = vector.broadcast %cst_51 : f32 to vector<4x128xf32>
    %201 = arith.addf %200, %199 : vector<4x128xf32>
    %202 = arith.divf %200, %201 : vector<4x128xf32>
    %203 = vector.extract_strided_slice %190 {offsets = [0, 256], sizes = [4, 128], strides = [1, 1]} : vector<4x512xf32> to vector<4x128xf32>
    %204 = math.tanh %203 : vector<4x128xf32>
    %205 = vector.extract_strided_slice %190 {offsets = [0, 384], sizes = [4, 128], strides = [1, 1]} : vector<4x512xf32> to vector<4x128xf32>
    %206 = arith.negf %205 : vector<4x128xf32>
    %207 = math.exp %206 : vector<4x128xf32>
    %cst_52 = arith.constant 1.000000e+00 : f32
    %208 = vector.broadcast %cst_52 : f32 to vector<4x128xf32>
    %209 = arith.addf %208, %207 : vector<4x128xf32>
    %210 = arith.divf %208, %209 : vector<4x128xf32>
    %211 = arith.mulf %202, %175 : vector<4x128xf32>
    %212 = arith.mulf %196, %204 : vector<4x128xf32>
    %213 = arith.addf %211, %212 : vector<4x128xf32>
    %214 = math.tanh %213 : vector<4x128xf32>
    %215 = arith.mulf %210, %214 : vector<4x128xf32>
    %216 = vector.extract_strided_slice %215 {offsets = [0, 0], sizes = [2, 128], strides = [1, 1]} : vector<4x128xf32> to vector<2x128xf32>
    %c8_53 = arith.constant 8 : index
    %c0_54 = arith.constant 0 : index
    %217 = vector.load %arg11[%c8_53, %c0_54] : memref<16x256xf32, #tpu.memory_space<vmem>>, vector<2x128xf32>
    tpu.vector_store %arg11[%c8_53, %c0_54], %216 {strides = array<i32>} : memref<16x256xf32, #tpu.memory_space<vmem>>, vector<2x128xf32>,
    %218 = vector.extract_strided_slice %215 {offsets = [2, 0], sizes = [2, 128], strides = [1, 1]} : vector<4x128xf32> to vector<2x128xf32>
    %c6_55 = arith.constant 6 : index
    %c128_56 = arith.constant 128 : index
    %219 = vector.load %arg11[%c6_55, %c128_56] : memref<16x256xf32, #tpu.memory_space<vmem>>, vector<2x128xf32>
    tpu.vector_store %arg11[%c6_55, %c128_56], %218 {strides = array<i32>} : memref<16x256xf32, #tpu.memory_space<vmem>>, vector<2x128xf32>,
    %220 = tpu.concatenate %215, %215 in 1 : vector<4x128xf32>, vector<4x128xf32> -> vector<4x256xf32>
    %221 = arith.mulf %220, %27 : vector<4x256xf32>
    %222 = vector.extract_strided_slice %17 {offsets = [10, 0], sizes = [2, 512], strides = [1, 1]} : vector<16x1024xf32> to vector<2x512xf32>
    %223 = vector.extract_strided_slice %17 {offsets = [4, 512], sizes = [2, 512], strides = [1, 1]} : vector<16x1024xf32> to vector<2x512xf32>
    %224 = tpu.concatenate %222, %223 in 0 : vector<2x512xf32>, vector<2x512xf32> -> vector<4x512xf32>
    %225 = arith.truncf %221 : vector<4x256xf32> to vector<4x256xbf16>
    %c0_57 = arith.constant 0 : index
    %c0_58 = arith.constant 0 : index
    %226 = vector.load %arg9[%c0_57, %c0_58] : memref<256x512xbf16, #tpu.memory_space<vmem>>, vector<256x512xbf16>
    %cst_59 = arith.constant dense<0.000000e+00> : vector<4x512xf32>
    %227 = tpu.matmul %225, %226, %cst_59 {dimension_numbers = #tpu.dot_dimension_numbers<[1], [0], [0], [1], [0, 0, 1, 1], [], []>} : vector<4x256xbf16>, vector<256x512xbf16>, vector<4x512xf32> -> vector<4x512xf32>
    %228 = arith.addf %224, %227 : vector<4x512xf32>
    %229 = vector.extract_strided_slice %228 {offsets = [0, 0], sizes = [4, 128], strides = [1, 1]} : vector<4x512xf32> to vector<4x128xf32>
    %230 = arith.negf %229 : vector<4x128xf32>
    %231 = math.exp %230 : vector<4x128xf32>
    %cst_60 = arith.constant 1.000000e+00 : f32
    %232 = vector.broadcast %cst_60 : f32 to vector<4x128xf32>
    %233 = arith.addf %232, %231 : vector<4x128xf32>
    %234 = arith.divf %232, %233 : vector<4x128xf32>
    %235 = vector.extract_strided_slice %228 {offsets = [0, 128], sizes = [4, 128], strides = [1, 1]} : vector<4x512xf32> to vector<4x128xf32>
    %236 = arith.negf %235 : vector<4x128xf32>
    %237 = math.exp %236 : vector<4x128xf32>
    %cst_61 = arith.constant 1.000000e+00 : f32
    %238 = vector.broadcast %cst_61 : f32 to vector<4x128xf32>
    %239 = arith.addf %238, %237 : vector<4x128xf32>
    %240 = arith.divf %238, %239 : vector<4x128xf32>
    %241 = vector.extract_strided_slice %228 {offsets = [0, 256], sizes = [4, 128], strides = [1, 1]} : vector<4x512xf32> to vector<4x128xf32>
    %242 = math.tanh %241 : vector<4x128xf32>
    %243 = vector.extract_strided_slice %228 {offsets = [0, 384], sizes = [4, 128], strides = [1, 1]} : vector<4x512xf32> to vector<4x128xf32>
    %244 = arith.negf %243 : vector<4x128xf32>
    %245 = math.exp %244 : vector<4x128xf32>
    %cst_62 = arith.constant 1.000000e+00 : f32
    %246 = vector.broadcast %cst_62 : f32 to vector<4x128xf32>
    %247 = arith.addf %246, %245 : vector<4x128xf32>
    %248 = arith.divf %246, %247 : vector<4x128xf32>
    %249 = arith.mulf %240, %213 : vector<4x128xf32>
    %250 = arith.mulf %234, %242 : vector<4x128xf32>
    %251 = arith.addf %249, %250 : vector<4x128xf32>
    %252 = math.tanh %251 : vector<4x128xf32>
    %253 = arith.mulf %248, %252 : vector<4x128xf32>
    %254 = vector.extract_strided_slice %253 {offsets = [0, 0], sizes = [2, 128], strides = [1, 1]} : vector<4x128xf32> to vector<2x128xf32>
    %c10_63 = arith.constant 10 : index
    %c0_64 = arith.constant 0 : index
    %255 = vector.load %arg11[%c10_63, %c0_64] : memref<16x256xf32, #tpu.memory_space<vmem>>, vector<2x128xf32>
    tpu.vector_store %arg11[%c10_63, %c0_64], %254 {strides = array<i32>} : memref<16x256xf32, #tpu.memory_space<vmem>>, vector<2x128xf32>,
    %256 = vector.extract_strided_slice %253 {offsets = [2, 0], sizes = [2, 128], strides = [1, 1]} : vector<4x128xf32> to vector<2x128xf32>
    %c4_65 = arith.constant 4 : index
    %c128_66 = arith.constant 128 : index
    %257 = vector.load %arg11[%c4_65, %c128_66] : memref<16x256xf32, #tpu.memory_space<vmem>>, vector<2x128xf32>
    tpu.vector_store %arg11[%c4_65, %c128_66], %256 {strides = array<i32>} : memref<16x256xf32, #tpu.memory_space<vmem>>, vector<2x128xf32>,
    %258 = tpu.concatenate %253, %253 in 1 : vector<4x128xf32>, vector<4x128xf32> -> vector<4x256xf32>
    %259 = arith.mulf %258, %27 : vector<4x256xf32>
    %260 = vector.extract_strided_slice %17 {offsets = [12, 0], sizes = [2, 512], strides = [1, 1]} : vector<16x1024xf32> to vector<2x512xf32>
    %261 = vector.extract_strided_slice %17 {offsets = [2, 512], sizes = [2, 512], strides = [1, 1]} : vector<16x1024xf32> to vector<2x512xf32>
    %262 = tpu.concatenate %260, %261 in 0 : vector<2x512xf32>, vector<2x512xf32> -> vector<4x512xf32>
    %263 = arith.truncf %259 : vector<4x256xf32> to vector<4x256xbf16>
    %c0_67 = arith.constant 0 : index
    %c0_68 = arith.constant 0 : index
    %264 = vector.load %arg9[%c0_67, %c0_68] : memref<256x512xbf16, #tpu.memory_space<vmem>>, vector<256x512xbf16>
    %cst_69 = arith.constant dense<0.000000e+00> : vector<4x512xf32>
    %265 = tpu.matmul %263, %264, %cst_69 {dimension_numbers = #tpu.dot_dimension_numbers<[1], [0], [0], [1], [0, 0, 1, 1], [], []>} : vector<4x256xbf16>, vector<256x512xbf16>, vector<4x512xf32> -> vector<4x512xf32>
    %266 = arith.addf %262, %265 : vector<4x512xf32>
    %267 = vector.extract_strided_slice %266 {offsets = [0, 0], sizes = [4, 128], strides = [1, 1]} : vector<4x512xf32> to vector<4x128xf32>
    %268 = arith.negf %267 : vector<4x128xf32>
    %269 = math.exp %268 : vector<4x128xf32>
    %cst_70 = arith.constant 1.000000e+00 : f32
    %270 = vector.broadcast %cst_70 : f32 to vector<4x128xf32>
    %271 = arith.addf %270, %269 : vector<4x128xf32>
    %272 = arith.divf %270, %271 : vector<4x128xf32>
    %273 = vector.extract_strided_slice %266 {offsets = [0, 128], sizes = [4, 128], strides = [1, 1]} : vector<4x512xf32> to vector<4x128xf32>
    %274 = arith.negf %273 : vector<4x128xf32>
    %275 = math.exp %274 : vector<4x128xf32>
    %cst_71 = arith.constant 1.000000e+00 : f32
    %276 = vector.broadcast %cst_71 : f32 to vector<4x128xf32>
    %277 = arith.addf %276, %275 : vector<4x128xf32>
    %278 = arith.divf %276, %277 : vector<4x128xf32>
    %279 = vector.extract_strided_slice %266 {offsets = [0, 256], sizes = [4, 128], strides = [1, 1]} : vector<4x512xf32> to vector<4x128xf32>
    %280 = math.tanh %279 : vector<4x128xf32>
    %281 = vector.extract_strided_slice %266 {offsets = [0, 384], sizes = [4, 128], strides = [1, 1]} : vector<4x512xf32> to vector<4x128xf32>
    %282 = arith.negf %281 : vector<4x128xf32>
    %283 = math.exp %282 : vector<4x128xf32>
    %cst_72 = arith.constant 1.000000e+00 : f32
    %284 = vector.broadcast %cst_72 : f32 to vector<4x128xf32>
    %285 = arith.addf %284, %283 : vector<4x128xf32>
    %286 = arith.divf %284, %285 : vector<4x128xf32>
    %287 = arith.mulf %278, %251 : vector<4x128xf32>
    %288 = arith.mulf %272, %280 : vector<4x128xf32>
    %289 = arith.addf %287, %288 : vector<4x128xf32>
    %290 = math.tanh %289 : vector<4x128xf32>
    %291 = arith.mulf %286, %290 : vector<4x128xf32>
    %292 = vector.extract_strided_slice %291 {offsets = [0, 0], sizes = [2, 128], strides = [1, 1]} : vector<4x128xf32> to vector<2x128xf32>
    %c12_73 = arith.constant 12 : index
    %c0_74 = arith.constant 0 : index
    %293 = vector.load %arg11[%c12_73, %c0_74] : memref<16x256xf32, #tpu.memory_space<vmem>>, vector<2x128xf32>
    tpu.vector_store %arg11[%c12_73, %c0_74], %292 {strides = array<i32>} : memref<16x256xf32, #tpu.memory_space<vmem>>, vector<2x128xf32>,
    %294 = vector.extract_strided_slice %291 {offsets = [2, 0], sizes = [2, 128], strides = [1, 1]} : vector<4x128xf32> to vector<2x128xf32>
    %c2_75 = arith.constant 2 : index
    %c128_76 = arith.constant 128 : index
    %295 = vector.load %arg11[%c2_75, %c128_76] : memref<16x256xf32, #tpu.memory_space<vmem>>, vector<2x128xf32>
    tpu.vector_store %arg11[%c2_75, %c128_76], %294 {strides = array<i32>} : memref<16x256xf32, #tpu.memory_space<vmem>>, vector<2x128xf32>,
    %296 = tpu.concatenate %291, %291 in 1 : vector<4x128xf32>, vector<4x128xf32> -> vector<4x256xf32>
    %297 = arith.mulf %296, %27 : vector<4x256xf32>
    %298 = vector.extract_strided_slice %17 {offsets = [14, 0], sizes = [2, 512], strides = [1, 1]} : vector<16x1024xf32> to vector<2x512xf32>
    %299 = vector.extract_strided_slice %17 {offsets = [0, 512], sizes = [2, 512], strides = [1, 1]} : vector<16x1024xf32> to vector<2x512xf32>
    %300 = tpu.concatenate %298, %299 in 0 : vector<2x512xf32>, vector<2x512xf32> -> vector<4x512xf32>
    %301 = arith.truncf %297 : vector<4x256xf32> to vector<4x256xbf16>
    %c0_77 = arith.constant 0 : index
    %c0_78 = arith.constant 0 : index
    %302 = vector.load %arg9[%c0_77, %c0_78] : memref<256x512xbf16, #tpu.memory_space<vmem>>, vector<256x512xbf16>
    %cst_79 = arith.constant dense<0.000000e+00> : vector<4x512xf32>
    %303 = tpu.matmul %301, %302, %cst_79 {dimension_numbers = #tpu.dot_dimension_numbers<[1], [0], [0], [1], [0, 0, 1, 1], [], []>} : vector<4x256xbf16>, vector<256x512xbf16>, vector<4x512xf32> -> vector<4x512xf32>
    %304 = arith.addf %300, %303 : vector<4x512xf32>
    %305 = vector.extract_strided_slice %304 {offsets = [0, 0], sizes = [4, 128], strides = [1, 1]} : vector<4x512xf32> to vector<4x128xf32>
    %306 = arith.negf %305 : vector<4x128xf32>
    %307 = math.exp %306 : vector<4x128xf32>
    %cst_80 = arith.constant 1.000000e+00 : f32
    %308 = vector.broadcast %cst_80 : f32 to vector<4x128xf32>
    %309 = arith.addf %308, %307 : vector<4x128xf32>
    %310 = arith.divf %308, %309 : vector<4x128xf32>
    %311 = vector.extract_strided_slice %304 {offsets = [0, 128], sizes = [4, 128], strides = [1, 1]} : vector<4x512xf32> to vector<4x128xf32>
    %312 = arith.negf %311 : vector<4x128xf32>
    %313 = math.exp %312 : vector<4x128xf32>
    %cst_81 = arith.constant 1.000000e+00 : f32
    %314 = vector.broadcast %cst_81 : f32 to vector<4x128xf32>
    %315 = arith.addf %314, %313 : vector<4x128xf32>
    %316 = arith.divf %314, %315 : vector<4x128xf32>
    %317 = vector.extract_strided_slice %304 {offsets = [0, 256], sizes = [4, 128], strides = [1, 1]} : vector<4x512xf32> to vector<4x128xf32>
    %318 = math.tanh %317 : vector<4x128xf32>
    %319 = vector.extract_strided_slice %304 {offsets = [0, 384], sizes = [4, 128], strides = [1, 1]} : vector<4x512xf32> to vector<4x128xf32>
    %320 = arith.negf %319 : vector<4x128xf32>
    %321 = math.exp %320 : vector<4x128xf32>
    %cst_82 = arith.constant 1.000000e+00 : f32
    %322 = vector.broadcast %cst_82 : f32 to vector<4x128xf32>
    %323 = arith.addf %322, %321 : vector<4x128xf32>
    %324 = arith.divf %322, %323 : vector<4x128xf32>
    %325 = arith.mulf %316, %289 : vector<4x128xf32>
    %326 = arith.mulf %310, %318 : vector<4x128xf32>
    %327 = arith.addf %325, %326 : vector<4x128xf32>
    %328 = math.tanh %327 : vector<4x128xf32>
    %329 = arith.mulf %324, %328 : vector<4x128xf32>
    %330 = vector.extract_strided_slice %329 {offsets = [0, 0], sizes = [2, 128], strides = [1, 1]} : vector<4x128xf32> to vector<2x128xf32>
    %c14_83 = arith.constant 14 : index
    %c0_84 = arith.constant 0 : index
    %331 = vector.load %arg11[%c14_83, %c0_84] : memref<16x256xf32, #tpu.memory_space<vmem>>, vector<2x128xf32>
    tpu.vector_store %arg11[%c14_83, %c0_84], %330 {strides = array<i32>} : memref<16x256xf32, #tpu.memory_space<vmem>>, vector<2x128xf32>,
    %332 = vector.extract_strided_slice %329 {offsets = [2, 0], sizes = [2, 128], strides = [1, 1]} : vector<4x128xf32> to vector<2x128xf32>
    %c0_85 = arith.constant 0 : index
    %c128_86 = arith.constant 128 : index
    %333 = vector.load %arg11[%c0_85, %c128_86] : memref<16x256xf32, #tpu.memory_space<vmem>>, vector<2x128xf32>
    tpu.vector_store %arg11[%c0_85, %c128_86], %332 {strides = array<i32>} : memref<16x256xf32, #tpu.memory_space<vmem>>, vector<2x128xf32>,
    %c1_i32_87 = arith.constant 1 : i32
    %334 = tpu.memref_slice %arg12[%c1_i32_87] : memref<2x!tpu.dma_semaphore, #tpu.memory_space<semaphore_mem>> -> memref<1x!tpu.dma_semaphore, #tpu.memory_space<semaphore_mem>>
    %335 = tpu.memref_squeeze %334 : memref<1x!tpu.dma_semaphore, #tpu.memory_space<semaphore_mem>> -> memref<!tpu.dma_semaphore, #tpu.memory_space<semaphore_mem>>
    tpu.wait_dma2 semaphore(%335 : memref<!tpu.dma_semaphore, #tpu.memory_space<semaphore_mem>>) src(%arg7 : memref<256x128xbf16, #tpu.memory_space<any>>) dst(%arg10 : memref<256x128xbf16, #tpu.memory_space<vmem>>)
    %c0_88 = arith.constant 0 : index
    %c0_89 = arith.constant 0 : index
    %336 = vector.load %arg11[%c0_88, %c0_89] : memref<16x256xf32, #tpu.memory_space<vmem>>, vector<16x256xf32>
    %337 = arith.truncf %336 : vector<16x256xf32> to vector<16x256xbf16>
    %c0_90 = arith.constant 0 : index
    %c0_91 = arith.constant 0 : index
    %338 = vector.load %arg10[%c0_90, %c0_91] : memref<256x128xbf16, #tpu.memory_space<vmem>>, vector<256x128xbf16>
    %cst_92 = arith.constant dense<0.000000e+00> : vector<16x128xf32>
    %339 = tpu.matmul %337, %338, %cst_92 {dimension_numbers = #tpu.dot_dimension_numbers<[1], [0], [0], [1], [0, 0, 1, 1], [], []>} : vector<16x256xbf16>, vector<256x128xbf16>, vector<16x128xf32> -> vector<16x128xf32>
    %c0_93 = arith.constant 0 : index
    %c0_94 = arith.constant 0 : index
    %340 = vector.load %arg5[%c0_93, %c0_94] : memref<1x128xf32, #tpu.memory_space<vmem>>, vector<1x128xf32>
    %341 = vector.broadcast %340 : vector<1x128xf32> to vector<16x128xf32>
    %342 = arith.addf %339, %341 : vector<16x128xf32>
    %c0_95 = arith.constant 0 : index
    %c0_96 = arith.constant 0 : index
    %343 = vector.load %arg8[%c0_95, %c0_96] : memref<16x128xf32, #tpu.memory_space<vmem>>, vector<16x128xf32>
    tpu.vector_store %arg8[%c0_95, %c0_96], %342 {strides = array<i32>} : memref<16x128xf32, #tpu.memory_space<vmem>>, vector<16x128xf32>,
    return
  }
}

</mosaic_0001>

<bundles_post_ra>
// kernel: blstm_ctc_forward.1
= control target key start
LH: loop header
LB: loop body
LE: loop exit
PB: predicated region body
PF: predicated region fallthrough
CT: control target
= control target key end

     0   :  { %13 = vsyncpa [#allocation7], 0  ;;  %s5328_s0 = inlined_call_operand.vmem [shape: bf16[16,256], index: 0, kind: input, shape index: {}]   ;;  %s5329_s1 = inlined_call_operand.vmem [shape: bf16[256,128], index: 1, kind: input, shape index: {}]   ;;  %s5330_s2 = inlined_call_operand.vmem [shape: f32[1,128], index: 2, kind: input, shape index: {}]   ;;  %s5331_s3 = inlined_call_operand.vmem [shape: bf16[128,1024], index: 3, kind: input, shape index: {}]   ;;  %s5332_s4 = inlined_call_operand.vmem [shape: f32[1,1024], index: 4, kind: input, shape index: {}]   ;;  %s5333_s5 = inlined_call_operand.vmem [shape: f32[1,128], index: 5, kind: input, shape index: {}]   ;;  %s5334_s6 = inlined_call_operand.vmem [shape: bf16[256,512], index: 6, kind: input, shape index: {}]   ;;  %s5335_s7 = inlined_call_operand.vmem [shape: bf16[256,128], index: 7, kind: input, shape index: {}]   ;;  %s5336_s8 = inlined_call_operand.hbm [shape: f32[16,128], index: 8, kind: output, shape index: {}]  }
   0x1   :  { %v44_v0 = vld [vmem:[%s5334_s6] sm:$0xf]  ;;  %v46_v1 = vld [vmem:[%s5334_s6 + $0x10] sm:$0xf]  ;;  %v48_v2 = vld [vmem:[%s5334_s6 + $0x4] sm:$0xf] }
   0x2   :  { %45 = vst [vmem:[#allocation2] sm:$0xf] %v44_v0  ;;  %47 = vst [vmem:[#allocation2 + $0x4] sm:$0xf] %v46_v1  ;;  %v50_v3 = vld [vmem:[%s5334_s6 + $0x14] sm:$0xf] }
   0x3   :  { %v52_v4 = vld [vmem:[%s5334_s6 + $0x8] sm:$0xf]  ;;  %49 = vst [vmem:[#allocation2 + $0x8] sm:$0xf] %v48_v2  ;;  %51 = vst [vmem:[#allocation2 + $0xc] sm:$0xf] %v50_v3 }
   0x4   :  { %53 = vst [vmem:[#allocation2 + $0x10] sm:$0xf] %v52_v4  ;;  %v54_v5 = vld [vmem:[%s5334_s6 + $0x18] sm:$0xf]  ;;  %v56_v6 = vld [vmem:[%s5334_s6 + $0xc] sm:$0xf] }
   0x5   :  { %v58_v7 = vld [vmem:[%s5334_s6 + $0x1c] sm:$0xff]   ;;  %55 = vst [vmem:[#allocation2 + $0x14] sm:$0xf] %v54_v5  ;;  %57 = vst [vmem:[#allocation2 + $0x18] sm:$0xf] %v56_v6 }
   0x6   :  { %59 = vst [vmem:[#allocation2 + $0x1c] sm:$0xff] %v58_v7   ;;  %v62_v8 = vld [vmem:[%s5334_s6 + $0x30] sm:$0xf]  ;;  %v64_v9 = vld [vmem:[%s5334_s6 + $0x24] sm:$0xf]  ;;  %v74_v14 = vld [vmem:[%s5334_s6 + $0x3c] sm:$0xff]  }
   0x7   :  { %v66_v10 = vld [vmem:[%s5334_s6 + $0x34] sm:$0xf]  ;;  %63 = vst [vmem:[#allocation2 + $0x24] sm:$0xf] %v62_v8  ;;  %65 = vst [vmem:[#allocation2 + $0x28] sm:$0xf] %v64_v9 }
   0x8   :  { %67 = vst [vmem:[#allocation2 + $0x2c] sm:$0xf] %v66_v10  ;;  %v68_v11 = vld [vmem:[%s5334_s6 + $0x28] sm:$0xf]  ;;  %v70_v12 = vld [vmem:[%s5334_s6 + $0x38] sm:$0xf] }
   0x9   :  { %v72_v13 = vld [vmem:[%s5334_s6 + $0x2c] sm:$0xf]  ;;  %69 = vst [vmem:[#allocation2 + $0x30] sm:$0xf] %v68_v11  ;;  %71 = vst [vmem:[#allocation2 + $0x34] sm:$0xf] %v70_v12 }
   0xa   :  { %73 = vst [vmem:[#allocation2 + $0x38] sm:$0xf] %v72_v13  ;;  %v78_v15 = vld [vmem:[%s5334_s6 + $0x50] sm:$0xf]  ;;  %v80_v16 = vld [vmem:[%s5334_s6 + $0x44] sm:$0xf] }
   0xb   :  { %75 = vst [vmem:[#allocation2 + $0x3c] sm:$0xff] %v74_v14   ;;  %79 = vst [vmem:[#allocation2 + $0x44] sm:$0xf] %v78_v15  ;;  %v82_v17 = vld [vmem:[%s5334_s6 + $0x54] sm:$0xf]  ;;  %v90_v21 = vld [vmem:[%s5334_s6 + $0x5c] sm:$0xff]  }
   0xc   :  { %81 = vst [vmem:[#allocation2 + $0x48] sm:$0xf] %v80_v16  ;;  %v84_v18 = vld [vmem:[%s5334_s6 + $0x48] sm:$0xf]  ;;  %v86_v19 = vld [vmem:[%s5334_s6 + $0x58] sm:$0xf] }
   0xd   :  { %83 = vst [vmem:[#allocation2 + $0x4c] sm:$0xf] %v82_v17  ;;  %85 = vst [vmem:[#allocation2 + $0x50] sm:$0xf] %v84_v18  ;;  %v88_v20 = vld [vmem:[%s5334_s6 + $0x4c] sm:$0xf] }
   0xe   :  { %87 = vst [vmem:[#allocation2 + $0x54] sm:$0xf] %v86_v19  ;;  %v94_v22 = vld [vmem:[%s5334_s6 + $0x70] sm:$0xf]  ;;  %89 = vst [vmem:[#allocation2 + $0x58] sm:$0xf] %v88_v20 }
   0xf   :  { %91 = vst [vmem:[#allocation2 + $0x5c] sm:$0xff] %v90_v21   ;;  %95 = vst [vmem:[#allocation2 + $0x64] sm:$0xf] %v94_v22  ;;  %v96_v23 = vld [vmem:[%s5334_s6 + $0x64] sm:$0xf]  ;;  %v106_v28 = vld [vmem:[%s5334_s6 + $0x7c] sm:$0xff]  }
  0x10   :  { %v98_v24 = vld [vmem:[%s5334_s6 + $0x74] sm:$0xf]  ;;  %v100_v25 = vld [vmem:[%s5334_s6 + $0x68] sm:$0xf]  ;;  %97 = vst [vmem:[#allocation2 + $0x68] sm:$0xf] %v96_v23 }
  0x11   :  { %99 = vst [vmem:[#allocation2 + $0x6c] sm:$0xf] %v98_v24  ;;  %101 = vst [vmem:[#allocation2 + $0x70] sm:$0xf] %v100_v25  ;;  %v102_v26 = vld [vmem:[%s5334_s6 + $0x78] sm:$0xf] }
  0x12   :  { %v104_v27 = vld [vmem:[%s5334_s6 + $0x6c] sm:$0xf]  ;;  %103 = vst [vmem:[#allocation2 + $0x74] sm:$0xf] %v102_v26  ;;  %107 = vst [vmem:[#allocation2 + $0x7c] sm:$0xff] %v106_v28   ;;  %v122_v35 = vld [vmem:[%s5334_s6 + $0x9c] sm:$0xff]  }
  0x13   :  { %105 = vst [vmem:[#allocation2 + $0x78] sm:$0xf] %v104_v27  ;;  %v110_v29 = vld [vmem:[%s5334_s6 + $0x90] sm:$0xf]  ;;  %v112_v30 = vld [vmem:[%s5334_s6 + $0x84] sm:$0xf] }
  0x14   :  { %v114_v31 = vld [vmem:[%s5334_s6 + $0x94] sm:$0xf]  ;;  %111 = vst [vmem:[#allocation2 + $0x84] sm:$0xf] %v110_v29  ;;  %113 = vst [vmem:[#allocation2 + $0x88] sm:$0xf] %v112_v30 }
  0x15   :  { %115 = vst [vmem:[#allocation2 + $0x8c] sm:$0xf] %v114_v31  ;;  %v116_v32 = vld [vmem:[%s5334_s6 + $0x88] sm:$0xf]  ;;  %v118_v33 = vld [vmem:[%s5334_s6 + $0x98] sm:$0xf] }
  0x16   :  { %v120_v34 = vld [vmem:[%s5334_s6 + $0x8c] sm:$0xf]  ;;  %117 = vst [vmem:[#allocation2 + $0x90] sm:$0xf] %v116_v32  ;;  %119 = vst [vmem:[#allocation2 + $0x94] sm:$0xf] %v118_v33 }
  0x17   :  { %121 = vst [vmem:[#allocation2 + $0x98] sm:$0xf] %v120_v34  ;;  %v126_v36 = vld [vmem:[%s5334_s6 + $0xb0] sm:$0xf]  ;;  %v128_v37 = vld [vmem:[%s5334_s6 + $0xa4] sm:$0xf] }
  0x18   :  { %123 = vst [vmem:[#allocation2 + $0x9c] sm:$0xff] %v122_v35   ;;  %127 = vst [vmem:[#allocation2 + $0xa4] sm:$0xf] %v126_v36  ;;  %v130_v38 = vld [vmem:[%s5334_s6 + $0xb4] sm:$0xf]  ;;  %v138_v42 = vld [vmem:[%s5334_s6 + $0xbc] sm:$0xff]  }
  0x19   :  { %129 = vst [vmem:[#allocation2 + $0xa8] sm:$0xf] %v128_v37  ;;  %v132_v39 = vld [vmem:[%s5334_s6 + $0xa8] sm:$0xf]  ;;  %v134_v40 = vld [vmem:[%s5334_s6 + $0xb8] sm:$0xf] }
  0x1a   :  { %131 = vst [vmem:[#allocation2 + $0xac] sm:$0xf] %v130_v38  ;;  %133 = vst [vmem:[#allocation2 + $0xb0] sm:$0xf] %v132_v39  ;;  %v136_v41 = vld [vmem:[%s5334_s6 + $0xac] sm:$0xf] }
  0x1b   :  { %135 = vst [vmem:[#allocation2 + $0xb4] sm:$0xf] %v134_v40  ;;  %v142_v43 = vld [vmem:[%s5334_s6 + $0xd0] sm:$0xf]  ;;  %137 = vst [vmem:[#allocation2 + $0xb8] sm:$0xf] %v136_v41 }
  0x1c   :  { %139 = vst [vmem:[#allocation2 + $0xbc] sm:$0xff] %v138_v42   ;;  %143 = vst [vmem:[#allocation2 + $0xc4] sm:$0xf] %v142_v43  ;;  %v144_v44 = vld [vmem:[%s5334_s6 + $0xc4] sm:$0xf]  ;;  %v154_v49 = vld [vmem:[%s5334_s6 + $0xdc] sm:$0xff]  }
  0x1d   :  { %v146_v45 = vld [vmem:[%s5334_s6 + $0xd4] sm:$0xf]  ;;  %v148_v46 = vld [vmem:[%s5334_s6 + $0xc8] sm:$0xf]  ;;  %145 = vst [vmem:[#allocation2 + $0xc8] sm:$0xf] %v144_v44 }
  0x1e   :  { %147 = vst [vmem:[#allocation2 + $0xcc] sm:$0xf] %v146_v45  ;;  %149 = vst [vmem:[#allocation2 + $0xd0] sm:$0xf] %v148_v46  ;;  %v150_v47 = vld [vmem:[%s5334_s6 + $0xd8] sm:$0xf] }
  0x1f   :  { %v152_v48 = vld [vmem:[%s5334_s6 + $0xcc] sm:$0xf]  ;;  %151 = vst [vmem:[#allocation2 + $0xd4] sm:$0xf] %v150_v47  ;;  %155 = vst [vmem:[#allocation2 + $0xdc] sm:$0xff] %v154_v49   ;;  %v170_v56 = vld [vmem:[%s5334_s6 + $0xfc] sm:$0xff]  }
  0x20   :  { %153 = vst [vmem:[#allocation2 + $0xd8] sm:$0xf] %v152_v48  ;;  %v158_v50 = vld [vmem:[%s5334_s6 + $0xf0] sm:$0xf]  ;;  %v160_v51 = vld [vmem:[%s5334_s6 + $0xe4] sm:$0xf] }
  0x21   :  { %v162_v52 = vld [vmem:[%s5334_s6 + $0xf4] sm:$0xf]  ;;  %159 = vst [vmem:[#allocation2 + $0xe4] sm:$0xf] %v158_v50  ;;  %161 = vst [vmem:[#allocation2 + $0xe8] sm:$0xf] %v160_v51 }
  0x22   :  { %163 = vst [vmem:[#allocation2 + $0xec] sm:$0xf] %v162_v52  ;;  %v164_v53 = vld [vmem:[%s5334_s6 + $0xe8] sm:$0xf]  ;;  %v166_v54 = vld [vmem:[%s5334_s6 + $0xf8] sm:$0xf] }
  0x23   :  { %v168_v55 = vld [vmem:[%s5334_s6 + $0xec] sm:$0xf]  ;;  %165 = vst [vmem:[#allocation2 + $0xf0] sm:$0xf] %v164_v53  ;;  %167 = vst [vmem:[#allocation2 + $0xf4] sm:$0xf] %v166_v54 }
  0x24   :  { %169 = vst [vmem:[#allocation2 + $0xf8] sm:$0xf] %v168_v55  ;;  %v174_v57 = vld [vmem:[%s5334_s6 + $0x110] sm:$0xf]  ;;  %v176_v58 = vld [vmem:[%s5334_s6 + $0x104] sm:$0xf] }
  0x25   :  { %171 = vst [vmem:[#allocation2 + $0xfc] sm:$0xff] %v170_v56   ;;  %175 = vst [vmem:[#allocation2 + $0x104] sm:$0xf] %v174_v57  ;;  %v178_v59 = vld [vmem:[%s5334_s6 + $0x114] sm:$0xf]  ;;  %v186_v63 = vld [vmem:[%s5334_s6 + $0x11c] sm:$0xff]  }
  0x26   :  { %177 = vst [vmem:[#allocation2 + $0x108] sm:$0xf] %v176_v58  ;;  %v180_v60 = vld [vmem:[%s5334_s6 + $0x108] sm:$0xf]  ;;  %v182_v61 = vld [vmem:[%s5334_s6 + $0x118] sm:$0xf] }
  0x27   :  { %179 = vst [vmem:[#allocation2 + $0x10c] sm:$0xf] %v178_v59  ;;  %181 = vst [vmem:[#allocation2 + $0x110] sm:$0xf] %v180_v60  ;;  %v184_v62 = vld [vmem:[%s5334_s6 + $0x10c] sm:$0xf] }
  0x28   :  { %183 = vst [vmem:[#allocation2 + $0x114] sm:$0xf] %v182_v61  ;;  %v190_v0 = vld [vmem:[%s5334_s6 + $0x130] sm:$0xf]  ;;  %185 = vst [vmem:[#allocation2 + $0x118] sm:$0xf] %v184_v62 }
  0x29   :  { %187 = vst [vmem:[#allocation2 + $0x11c] sm:$0xff] %v186_v63   ;;  %191 = vst [vmem:[#allocation2 + $0x124] sm:$0xf] %v190_v0  ;;  %v192_v1 = vld [vmem:[%s5334_s6 + $0x124] sm:$0xf]  ;;  %v202_v6 = vld [vmem:[%s5334_s6 + $0x13c] sm:$0xff]  }
  0x2a   :  { %v194_v2 = vld [vmem:[%s5334_s6 + $0x134] sm:$0xf]  ;;  %v196_v3 = vld [vmem:[%s5334_s6 + $0x128] sm:$0xf]  ;;  %193 = vst [vmem:[#allocation2 + $0x128] sm:$0xf] %v192_v1 }
  0x2b   :  { %195 = vst [vmem:[#allocation2 + $0x12c] sm:$0xf] %v194_v2  ;;  %197 = vst [vmem:[#allocation2 + $0x130] sm:$0xf] %v196_v3  ;;  %v198_v4 = vld [vmem:[%s5334_s6 + $0x138] sm:$0xf] }
  0x2c   :  { %v200_v5 = vld [vmem:[%s5334_s6 + $0x12c] sm:$0xf]  ;;  %199 = vst [vmem:[#allocation2 + $0x134] sm:$0xf] %v198_v4  ;;  %203 = vst [vmem:[#allocation2 + $0x13c] sm:$0xff] %v202_v6   ;;  %v218_v13 = vld [vmem:[%s5334_s6 + $0x15c] sm:$0xff]  }
  0x2d   :  { %201 = vst [vmem:[#allocation2 + $0x138] sm:$0xf] %v200_v5  ;;  %v206_v7 = vld [vmem:[%s5334_s6 + $0x150] sm:$0xf]  ;;  %v208_v8 = vld [vmem:[%s5334_s6 + $0x144] sm:$0xf] }
  0x2e   :  { %v210_v9 = vld [vmem:[%s5334_s6 + $0x154] sm:$0xf]  ;;  %207 = vst [vmem:[#allocation2 + $0x144] sm:$0xf] %v206_v7  ;;  %209 = vst [vmem:[#allocation2 + $0x148] sm:$0xf] %v208_v8 }
  0x2f   :  { %211 = vst [vmem:[#allocation2 + $0x14c] sm:$0xf] %v210_v9  ;;  %v212_v10 = vld [vmem:[%s5334_s6 + $0x148] sm:$0xf]  ;;  %v214_v11 = vld [vmem:[%s5334_s6 + $0x158] sm:$0xf] }
  0x30   :  { %v216_v12 = vld [vmem:[%s5334_s6 + $0x14c] sm:$0xf]  ;;  %213 = vst [vmem:[#allocation2 + $0x150] sm:$0xf] %v212_v10  ;;  %215 = vst [vmem:[#allocation2 + $0x154] sm:$0xf] %v214_v11 }
  0x31   :  { %217 = vst [vmem:[#allocation2 + $0x158] sm:$0xf] %v216_v12  ;;  %v222_v14 = vld [vmem:[%s5334_s6 + $0x170] sm:$0xf]  ;;  %v224_v15 = vld [vmem:[%s5334_s6 + $0x164] sm:$0xf] }
  0x32   :  { %219 = vst [vmem:[#allocation2 + $0x15c] sm:$0xff] %v218_v13   ;;  %223 = vst [vmem:[#allocation2 + $0x164] sm:$0xf] %v222_v14  ;;  %v226_v16 = vld [vmem:[%s5334_s6 + $0x174] sm:$0xf]  ;;  %v234_v20 = vld [vmem:[%s5334_s6 + $0x17c] sm:$0xff]  }
  0x33   :  { %225 = vst [vmem:[#allocation2 + $0x168] sm:$0xf] %v224_v15  ;;  %v228_v17 = vld [vmem:[%s5334_s6 + $0x168] sm:$0xf]  ;;  %v230_v18 = vld [vmem:[%s5334_s6 + $0x178] sm:$0xf] }
  0x34   :  { %227 = vst [vmem:[#allocation2 + $0x16c] sm:$0xf] %v226_v16  ;;  %229 = vst [vmem:[#allocation2 + $0x170] sm:$0xf] %v228_v17  ;;  %v232_v19 = vld [vmem:[%s5334_s6 + $0x16c] sm:$0xf] }
  0x35   :  { %231 = vst [vmem:[#allocation2 + $0x174] sm:$0xf] %v230_v18  ;;  %v238_v21 = vld [vmem:[%s5334_s6 + $0x190] sm:$0xf]  ;;  %233 = vst [vmem:[#allocation2 + $0x178] sm:$0xf] %v232_v19 }
  0x36   :  { %235 = vst [vmem:[#allocation2 + $0x17c] sm:$0xff] %v234_v20   ;;  %239 = vst [vmem:[#allocation2 + $0x184] sm:$0xf] %v238_v21  ;;  %v240_v22 = vld [vmem:[%s5334_s6 + $0x184] sm:$0xf]  ;;  %v250_v27 = vld [vmem:[%s5334_s6 + $0x19c] sm:$0xff]  }
  0x37   :  { %v242_v23 = vld [vmem:[%s5334_s6 + $0x194] sm:$0xf]  ;;  %v244_v24 = vld [vmem:[%s5334_s6 + $0x188] sm:$0xf]  ;;  %241 = vst [vmem:[#allocation2 + $0x188] sm:$0xf] %v240_v22 }
  0x38   :  { %243 = vst [vmem:[#allocation2 + $0x18c] sm:$0xf] %v242_v23  ;;  %245 = vst [vmem:[#allocation2 + $0x190] sm:$0xf] %v244_v24  ;;  %v246_v25 = vld [vmem:[%s5334_s6 + $0x198] sm:$0xf] }
  0x39   :  { %v248_v26 = vld [vmem:[%s5334_s6 + $0x18c] sm:$0xf]  ;;  %247 = vst [vmem:[#allocation2 + $0x194] sm:$0xf] %v246_v25  ;;  %251 = vst [vmem:[#allocation2 + $0x19c] sm:$0xff] %v250_v27   ;;  %v266_v34 = vld [vmem:[%s5334_s6 + $0x1bc] sm:$0xff]  }
  0x3a   :  { %249 = vst [vmem:[#allocation2 + $0x198] sm:$0xf] %v248_v26  ;;  %v254_v28 = vld [vmem:[%s5334_s6 + $0x1b0] sm:$0xf]  ;;  %v256_v29 = vld [vmem:[%s5334_s6 + $0x1a4] sm:$0xf] }
  0x3b   :  { %v258_v30 = vld [vmem:[%s5334_s6 + $0x1b4] sm:$0xf]  ;;  %255 = vst [vmem:[#allocation2 + $0x1a4] sm:$0xf] %v254_v28  ;;  %257 = vst [vmem:[#allocation2 + $0x1a8] sm:$0xf] %v256_v29 }
  0x3c   :  { %259 = vst [vmem:[#allocation2 + $0x1ac] sm:$0xf] %v258_v30  ;;  %v260_v31 = vld [vmem:[%s5334_s6 + $0x1a8] sm:$0xf]  ;;  %v262_v32 = vld [vmem:[%s5334_s6 + $0x1b8] sm:$0xf] }
  0x3d   :  { %v264_v33 = vld [vmem:[%s5334_s6 + $0x1ac] sm:$0xf]  ;;  %261 = vst [vmem:[#allocation2 + $0x1b0] sm:$0xf] %v260_v31  ;;  %263 = vst [vmem:[#allocation2 + $0x1b4] sm:$0xf] %v262_v32 }
  0x3e   :  { %265 = vst [vmem:[#allocation2 + $0x1b8] sm:$0xf] %v264_v33  ;;  %v270_v35 = vld [vmem:[%s5334_s6 + $0x1d0] sm:$0xf]  ;;  %v272_v36 = vld [vmem:[%s5334_s6 + $0x1c4] sm:$0xf] }
  0x3f   :  { %267 = vst [vmem:[#allocation2 + $0x1bc] sm:$0xff] %v266_v34   ;;  %271 = vst [vmem:[#allocation2 + $0x1c4] sm:$0xf] %v270_v35  ;;  %v274_v37 = vld [vmem:[%s5334_s6 + $0x1d4] sm:$0xf]  ;;  %v282_v41 = vld [vmem:[%s5334_s6 + $0x1dc] sm:$0xff]  }
  0x40   :  { %273 = vst [vmem:[#allocation2 + $0x1c8] sm:$0xf] %v272_v36  ;;  %v276_v38 = vld [vmem:[%s5334_s6 + $0x1c8] sm:$0xf]  ;;  %v278_v39 = vld [vmem:[%s5334_s6 + $0x1d8] sm:$0xf] }
  0x41   :  { %275 = vst [vmem:[#allocation2 + $0x1cc] sm:$0xf] %v274_v37  ;;  %277 = vst [vmem:[#allocation2 + $0x1d0] sm:$0xf] %v276_v38  ;;  %v280_v40 = vld [vmem:[%s5334_s6 + $0x1cc] sm:$0xf] }
  0x42   :  { %279 = vst [vmem:[#allocation2 + $0x1d4] sm:$0xf] %v278_v39  ;;  %v286_v42 = vld [vmem:[%s5334_s6 + $0x1f0] sm:$0xf]  ;;  %281 = vst [vmem:[#allocation2 + $0x1d8] sm:$0xf] %v280_v40 }
  0x43   :  { %283 = vst [vmem:[#allocation2 + $0x1dc] sm:$0xff] %v282_v41   ;;  %287 = vst [vmem:[#allocation2 + $0x1e4] sm:$0xf] %v286_v42  ;;  %v288_v43 = vld [vmem:[%s5334_s6 + $0x1e4] sm:$0xf] }
  0x44   :  { %v290_v44 = vld [vmem:[%s5334_s6 + $0x1f4] sm:$0xf]  ;;  %v292_v45 = vld [vmem:[%s5334_s6 + $0x1e8] sm:$0xf]  ;;  %289 = vst [vmem:[#allocation2 + $0x1e8] sm:$0xf] %v288_v43 }
  0x45   :  { %291 = vst [vmem:[#allocation2 + $0x1ec] sm:$0xf] %v290_v44  ;;  %293 = vst [vmem:[#allocation2 + $0x1f0] sm:$0xf] %v292_v45  ;;  %v294_v46 = vld [vmem:[%s5334_s6 + $0x1f8] sm:$0xf] }
  0x46   :  { %v296_v47 = vld [vmem:[%s5334_s6 + $0x1ec] sm:$0xf]  ;;  %v298_v48 = vld [vmem:[%s5334_s6 + $0x1fc] sm:$0xf]  ;;  %295 = vst [vmem:[#allocation2 + $0x1f4] sm:$0xf] %v294_v46 }
  0x47   :  { %297 = vst [vmem:[#allocation2 + $0x1f8] sm:$0xf] %v296_v47  ;;  %299 = vst [vmem:[#allocation2 + $0x1fc] sm:$0xf] %v298_v48 }
  0x48   :  { %586 = vsyncadd [#allocation5], 8192  ;;  %v3930_v49 = vld [vmem:[%s5335_s7] sm:$0xff]  ;;  %v3935_v50 = vld [vmem:[%s5335_s7 + $0x8] sm:$0xff] }
  0x49   :  { %5442 = vst [vmem:[#allocation13_spill] sm:$0xff] %v3930_v49  ;;  %5443 = vst [vmem:[#allocation14_spill] sm:$0xff] %v3935_v50  ;;  %v3940_v51 = vld [vmem:[%s5335_s7 + $0x10] sm:$0xff]  ;;  %v3945_v52 = vld [vmem:[%s5335_s7 + $0x18] sm:$0xff] }
  0x4a   :  { %5444 = vst [vmem:[#allocation15_spill] sm:$0xff] %v3940_v51  ;;  %5445 = vst [vmem:[#allocation16_spill] sm:$0xff] %v3945_v52  ;;  %v3950_v53 = vld [vmem:[%s5335_s7 + $0x20] sm:$0xff]  ;;  %v3955_v54 = vld [vmem:[%s5335_s7 + $0x28] sm:$0xff] }
  0x4b   :  { %5446 = vst [vmem:[#allocation17_spill] sm:$0xff] %v3950_v53  ;;  %5447 = vst [vmem:[#allocation18_spill] sm:$0xff] %v3955_v54  ;;  %v3960_v55 = vld [vmem:[%s5335_s7 + $0x30] sm:$0xff]  ;;  %v3965_v56 = vld [vmem:[%s5335_s7 + $0x38] sm:$0xff] }
  0x4c   :  { %5448 = vst [vmem:[#allocation19_spill] sm:$0xff] %v3960_v55  ;;  %5449 = vst [vmem:[#allocation20_spill] sm:$0xff] %v3965_v56  ;;  %v3970_v57 = vld [vmem:[%s5335_s7 + $0x40] sm:$0xff]  ;;  %v3975_v58 = vld [vmem:[%s5335_s7 + $0x48] sm:$0xff] }
  0x4d   :  { %5450 = vst [vmem:[#allocation21_spill] sm:$0xff] %v3970_v57  ;;  %5451 = vst [vmem:[#allocation22_spill] sm:$0xff] %v3975_v58  ;;  %v3980_v59 = vld [vmem:[%s5335_s7 + $0x50] sm:$0xff]  ;;  %v3985_v60 = vld [vmem:[%s5335_s7 + $0x58] sm:$0xff] }
  0x4e   :  { %5452 = vst [vmem:[#allocation23_spill] sm:$0xff] %v3980_v59  ;;  %5453 = vst [vmem:[#allocation24_spill] sm:$0xff] %v3985_v60  ;;  %v3990_v61 = vld [vmem:[%s5335_s7 + $0x60] sm:$0xff]  ;;  %v3995_v62 = vld [vmem:[%s5335_s7 + $0x68] sm:$0xff] }
  0x4f   :  { %5454 = vst [vmem:[#allocation25_spill] sm:$0xff] %v3990_v61  ;;  %5455 = vst [vmem:[#allocation26_spill] sm:$0xff] %v3995_v62  ;;  %v4000_v63 = vld [vmem:[%s5335_s7 + $0x70] sm:$0xff]  ;;  %v4005_v0 = vld [vmem:[%s5335_s7 + $0x78] sm:$0xff] }
  0x50   :  { %5456 = vst [vmem:[#allocation27_spill] sm:$0xff] %v4000_v63  ;;  %5457 = vst [vmem:[#allocation28_spill] sm:$0xff] %v4005_v0 }
  0x51   :  { %659 = vsyncadd [#allocation5 + $0x1], 2048  ;;  %v3362_v1 = vld [vmem:[%s5329_s1 + $0x40] sm:$0xff]   ;;  %v3364_v3 = vld [vmem:[%s5329_s1 + $0x48] sm:$0xff]   ;;  %vm3538_vm1 = vmmov 1  }
  0x52   :  { %v3363_v2 = vld [vmem:[%s5329_s1] sm:$0xff]   ;;  %3312 = vmatprep.subr.bf16.mxu0 %v3362_v1  ;;  %v3365_v4 = vld [vmem:[%s5329_s1 + $0x8] sm:$0xff]   ;;  %v3366_v5 = vld [vmem:[%s5329_s1 + $0x50] sm:$0xff]  }
  0x53   :  { %3313 = vmatpush3.bf16.msra.mxu0 %v3363_v2  ;;  %v3367_v6 = vld [vmem:[%s5329_s1 + $0x10] sm:$0xff]   ;;  %v3368_v7 = vld [vmem:[%s5329_s1 + $0x58] sm:$0xff]   ;;  %v3370_v9 = vld [vmem:[%s5329_s1 + $0x60] sm:$0xff]  }
  0x54   :  { %3314 = vmatprep.subr.bf16.mxu0 %v3364_v3  ;;  %v3369_v8 = vld [vmem:[%s5329_s1 + $0x18] sm:$0xff]   ;;  %v3371_v10 = vld [vmem:[%s5329_s1 + $0x20] sm:$0xff]   ;;  %v3372_v11 = vld [vmem:[%s5329_s1 + $0x68] sm:$0xff]  }
  0x55   :  { %v3380_v12 = vld [vmem:[%s5328_s0 + $0x4] ss:$8 sps:$4 sm:$0xff]   ;;  %v3374_v23 = vld [vmem:[%s5329_s1 + $0x70] sm:$0xff]   ;;  %v3376_v29 = vld [vmem:[%s5329_s1 + $0x78] sm:$0xff]  }
  0x56   :  { %v851_v13 = vld [vmem:[%s5331_s3] sm:$0xff]  ;;  %839 = vmatprep.mubr.bf16.mxu0 %v3380_v12  ;;  %v3373_v19 = vld [vmem:[%s5329_s1 + $0x28] sm:$0xff]   ;;  %v3375_v26 = vld [vmem:[%s5329_s1 + $0x30] sm:$0xff]  }
  0x57   :  { %3315 = vmatpush3.bf16.msra.mxu0 %v3365_v4  ;;  %v855_v14 = vld [vmem:[%s5331_s3 + $0x20] sm:$0xff]  ;;  %v852_v30 = vld [vmem:[%s5331_s3 + $0x8] sm:$0xff]  ;;  %v3377_v34 = vld [vmem:[%s5329_s1 + $0x38] sm:$0xff]  }
  0x58   :  { %3316 = vmatprep.subr.bf16.mxu0 %v3366_v5  ;;  %v3220_v15 = vcombine.high %v851_v13, %v855_v14  ;;  %v3219_v16 = vcombine.low %v851_v13, %v855_v14  ;;  %v859_v17 = vld [vmem:[%s5331_s3 + $0x40] sm:$0xff]  ;;  %v856_v31 = vld [vmem:[%s5331_s3 + $0x28] sm:$0xff] }
  0x59   :  { %v863_v18 = vld [vmem:[%s5331_s3 + $0x60] sm:$0xff]  ;;  %v3222_v37 = vcombine.high %v852_v30, %v856_v31  ;;  %v860_v38 = vld [vmem:[%s5331_s3 + $0x48] sm:$0xff]  ;;  %v3221_v43 = vcombine.low %v852_v30, %v856_v31 }
  0x5a   :  { %v3228_v20 = vcombine.high %v859_v17, %v863_v18  ;;  %v867_v21 = vld [vmem:[%s5331_s3 + $0x80] sm:$0xff]  ;;  %1277 = vmatprep.subr.bf16.mxu1 %v3220_v15  ;;  %v3227_v24 = vcombine.low %v859_v17, %v863_v18  ;;  %v864_v39 = vld [vmem:[%s5331_s3 + $0x68] sm:$0xff] }
  0x5b   :  { %3317 = vmatpush3.bf16.msra.mxu0 %v3367_v6  ;;  %v871_v22 = vld [vmem:[%s5331_s3 + $0xa0] sm:$0xff]  ;;  %1278 = vmatpush1.bf16.msra.mxu1 %v3219_v16  ;;  %v3230_v46 = vcombine.high %v860_v38, %v864_v39  ;;  %v868_v47 = vld [vmem:[%s5331_s3 + $0x88] sm:$0xff]  ;;  %v3229_v3 = vcombine.low %v860_v38, %v864_v39  ;;  %v858_v39 = vld [vmem:[%s5331_s3 + $0x38] sm:$0xff] }
  0x5c   :  { %3318 = vmatprep.subr.bf16.mxu0 %v3368_v7  ;;  %1279 = vmatprep.subr.bf16.mxu1 %v3228_v20  ;;  %v3236_v25 = vcombine.high %v867_v21, %v871_v22  ;;  %v875_v27 = vld [vmem:[%s5331_s3 + $0xc0] sm:$0xff]  ;;  %v3235_v32 = vcombine.low %v867_v21, %v871_v22  ;;  %v872_v48 = vld [vmem:[%s5331_s3 + $0xa8] sm:$0xff] }
  0x5d   :  { %v879_v28 = vld [vmem:[%s5331_s3 + $0xe0] sm:$0xff]  ;;  %v3238_v4 = vcombine.high %v868_v47, %v872_v48  ;;  %v876_v5 = vld [vmem:[%s5331_s3 + $0xc8] sm:$0xff]  ;;  %v3237_v7 = vcombine.low %v868_v47, %v872_v48 }
  0x5e   :  { %v3244_v33 = vcombine.high %v875_v27, %v879_v28  ;;  %v883_v35 = vld [vmem:[%s5331_s3 + $0x100] sm:$0xff]  ;;  %v3243_v40 = vcombine.low %v875_v27, %v879_v28  ;;  %v880_v6 = vld [vmem:[%s5331_s3 + $0xe8] sm:$0xff] }
  0x5f   :  { %3319 = vmatpush3.bf16.msra.mxu0 %v3369_v8  ;;  %1280 = vmatpush1.bf16.msra.mxu1 %v3227_v24  ;;  %v887_v36 = vld [vmem:[%s5331_s3 + $0x120] sm:$0xff]  ;;  %v3246_v8 = vcombine.high %v876_v5, %v880_v6  ;;  %v892_v13 = vld [vmem:[%s5331_s3 + $0x148] sm:$0xff] }
  0x60   :  { %3320 = vmatprep.subr.bf16.mxu0 %v3370_v9  ;;  %1281 = vmatprep.subr.bf16.mxu1 %v3236_v25  ;;  %v3378_v41 = vld [vmem:[%s5328_s0] ss:$8 sps:$4 sm:$0xff]   ;;  %v3252_v42 = vcombine.high %v883_v35, %v887_v36  ;;  %v3251_v1 = vcombine.low %v883_v35, %v887_v36  ;;  %v853_v35 = vld [vmem:[%s5331_s3 + $0x10] sm:$0xff] }
  0x61   :  { %v891_v44 = vld [vmem:[%s5331_s3 + $0x140] sm:$0xff]  ;;  %v884_v9 = vld [vmem:[%s5331_s3 + $0x108] sm:$0xff]  ;;  %v857_v36 = vld [vmem:[%s5331_s3 + $0x30] sm:$0xff] }
  0x62   :  { %v895_v45 = vld [vmem:[%s5331_s3 + $0x160] sm:$0xff]  ;;  %v896_v14 = vld [vmem:[%s5331_s3 + $0x168] sm:$0xff]  ;;  %v3224_v38 = vcombine.high %v853_v35, %v857_v36 }
  0x63   :  { %3321 = vmatpush3.bf16.msra.mxu0 %v3371_v10  ;;  %1282 = vmatpush1.bf16.msra.mxu1 %v3235_v32  ;;  %v3260_v2 = vcombine.high %v891_v44, %v895_v45  ;;  %v888_v10 = vld [vmem:[%s5331_s3 + $0x128] sm:$0xff]  ;;  %v3262_v16 = vcombine.high %v892_v13, %v896_v14  ;;  %v3261_v17 = vcombine.low %v892_v13, %v896_v14  ;;  %v903_v20 = vld [vmem:[%s5331_s3 + $0x1a0] sm:$0xff]  ;;  %v869_v14 = vld [vmem:[%s5331_s3 + $0x90] sm:$0xff] }
  0x64   :  { %3322 = vmatprep.subr.bf16.mxu0 %v3372_v11  ;;  %1283 = vmatprep.subr.bf16.mxu1 %v3244_v33  ;;  %v3245_v11 = vcombine.low %v876_v5, %v880_v6  ;;  %v3254_v12 = vcombine.high %v884_v9, %v888_v10  ;;  %v3253_v15 = vcombine.low %v884_v9, %v888_v10  ;;  %v900_v22 = vld [vmem:[%s5331_s3 + $0x188] sm:$0xff]  ;;  %v907_v27 = vld [vmem:[%s5331_s3 + $0x1c0] sm:$0xff]  ;;  %v861_v5 = vld [vmem:[%s5331_s3 + $0x50] sm:$0xff] }
  0x65   :  { %v3259_v18 = vcombine.low %v891_v44, %v895_v45  ;;  %v911_v28 = vld [vmem:[%s5331_s3 + $0x1e0] sm:$0xff]  ;;  %v912_v31 = vld [vmem:[%s5331_s3 + $0x1e8] sm:$0xff]  ;;  %v865_v6 = vld [vmem:[%s5331_s3 + $0x70] sm:$0xff] }
  0x66   :  { %v3276_v30 = vcombine.high %v907_v27, %v911_v28  ;;  %v3200_v45 = vld [vmem:[%s5330_s2] ss:$0 sm:$0xff] }
  0x67   :  { %3323 = vmatpush3.bf16.msra.mxu0 %v3373_v19  ;;  %1284 = vmatpush1.bf16.msra.mxu1 %v3243_v40  ;;  %v899_v19 = vld [vmem:[%s5331_s3 + $0x180] sm:$0xff]  ;;  %v3223_v40 = vcombine.low %v853_v35, %v857_v36 }
  0x68   :  { %3324 = vmatprep.subr.bf16.mxu0 %v3374_v23  ;;  %1285 = vmatprep.subr.bf16.mxu1 %v3252_v42  ;;  %v3268_v21 = vcombine.high %v899_v19, %v903_v20  ;;  %v904_v23 = vld [vmem:[%s5331_s3 + $0x1a8] sm:$0xff] }
  0x69   :  { %v3269_v24 = vcombine.low %v900_v22, %v904_v23  ;;  %v3270_v25 = vcombine.high %v900_v22, %v904_v23  ;;  %v877_v22 = vld [vmem:[%s5331_s3 + $0xd0] sm:$0xff] }
  0x6a   :  { %v881_v23 = vld [vmem:[%s5331_s3 + $0xf0] sm:$0xff] }
  0x6b   :  { %3325 = vmatpush3.bf16.msra.mxu0 %v3375_v26  ;;  %1286 = vmatpush1.bf16.msra.mxu1 %v3251_v1  ;;  %v3267_v26 = vcombine.low %v899_v19, %v903_v20 }
  0x6c   :  { %3326 = vmatprep.subr.bf16.mxu0 %v3376_v29  ;;  %1287 = vmatprep.subr.bf16.mxu1 %v3260_v2  ;;  %v908_v29 = vld [vmem:[%s5331_s3 + $0x1c8] sm:$0xff] }
  0x6d   :  { %v3277_v32 = vcombine.low %v908_v29, %v912_v31  ;;  %v3278_v33 = vcombine.high %v908_v29, %v912_v31  ;;  %v889_v31 = vld [vmem:[%s5331_s3 + $0x130] sm:$0xff] }
  0x6f   :  { %3327 = vmatpush3.bf16.msra.mxu0 %v3377_v34  ;;  %1288 = vmatpush1.bf16.msra.mxu1 %v3259_v18  ;;  %v3275_v34 = vcombine.low %v907_v27, %v911_v28  ;;  %v3231_v18 = vcombine.low %v861_v5, %v865_v6  ;;  %v3248_v28 = vcombine.high %v877_v22, %v881_v23 }
  0x70   :  { %1320 = vmatprep.subr.bf16.mxu0 %v3222_v37  ;;  %1289 = vmatprep.subr.bf16.mxu1 %v3268_v21  ;;  %v854_v37 = vld [vmem:[%s5331_s3 + $0x18] sm:$0xff] }
  0x71   :  { %v3226_v42 = vcombine.high %v854_v37, %v858_v39 }
  0x72   :  { %840 = vmatmul.mubr.bf16.vlgmr.msra.gmra.mrb[0].mxu0 %v3378_v41  ;;  %v3225_v41 = vcombine.low %v854_v37, %v858_v39  ;;  %v897_v39 = vld [vmem:[%s5331_s3 + $0x170] sm:$0xff] }
  0x73   :  { %1321 = vmatpush1.bf16.msra.mxu0 %v3221_v43  ;;  %1290 = vmatpush1.bf16.msra.mxu1 %v3267_v26  ;;  %v5337_v43 = vmov 0  }
  0x74   :  { %1322 = vmatprep.subr.bf16.mxu0 %v3230_v46  ;;  %1291 = vmatprep.subr.bf16.mxu1 %v3276_v30  ;;  %v885_v30 = vld [vmem:[%s5331_s3 + $0x110] sm:$0xff] }
  0x75   :  { %1309 = vmatprep.mubr.bf16.mxu1 %v5337_v43  ;;  %1352 = vmatprep.mubr.bf16.mxu0 %v5337_v43  ;;  %v3256_v36 = vcombine.high %v885_v30, %v889_v31 }
  0x77   :  { %1323 = vmatpush1.bf16.msra.mxu0 %v3229_v3  ;;  %1292 = vmatpush1.bf16.msra.mxu1 %v3275_v34  ;;  %v3247_v34 = vcombine.low %v877_v22, %v881_v23 }
  0x78   :  { %1324 = vmatprep.subr.bf16.mxu0 %v3238_v4  ;;  %1363 = vmatprep.subr.bf16.mxu1 %v3224_v38  ;;  %v893_v38 = vld [vmem:[%s5331_s3 + $0x150] sm:$0xff] }
  0x7b   :  { %1325 = vmatpush1.bf16.msra.mxu0 %v3237_v7  ;;  %v862_v7 = vld [vmem:[%s5331_s3 + $0x58] sm:$0xff] }
  0x7c   :  { %1326 = vmatprep.subr.bf16.mxu0 %v3246_v8  ;;  %v866_v8 = vld [vmem:[%s5331_s3 + $0x78] sm:$0xff] }
  0x7d   :  { %v3234_v13 = vcombine.high %v862_v7, %v866_v8  ;;  %v3233_v19 = vcombine.low %v862_v7, %v866_v8  ;;  %v909_v7 = vld [vmem:[%s5331_s3 + $0x1d0] sm:$0xff] }
  0x7e   :  { %v913_v8 = vld [vmem:[%s5331_s3 + $0x1f0] sm:$0xff] }
  0x7f   :  { %1327 = vmatpush1.bf16.msra.mxu0 %v3245_v11 }
  0x80   :  { %1328 = vmatprep.subr.bf16.mxu0 %v3254_v12  ;;  %v3232_v12 = vcombine.high %v861_v5, %v865_v6 }
  0x83   :  { %1329 = vmatpush1.bf16.msra.mxu0 %v3253_v15  ;;  %v873_v15 = vld [vmem:[%s5331_s3 + $0xb0] sm:$0xff] }
  0x84   :  { %1330 = vmatprep.subr.bf16.mxu0 %v3262_v16  ;;  %v870_v16 = vld [vmem:[%s5331_s3 + $0x98] sm:$0xff]  ;;  %v3240_v20 = vcombine.high %v869_v14, %v873_v15  ;;  %v3239_v26 = vcombine.low %v869_v14, %v873_v15  ;;  %v3280_v14 = vcombine.high %v909_v7, %v913_v8 }
  0x87   :  { %1331 = vmatpush1.bf16.msra.mxu0 %v3261_v17  ;;  %v874_v17 = vld [vmem:[%s5331_s3 + $0xb8] sm:$0xff] }
  0x88   :  { %1332 = vmatprep.subr.bf16.mxu0 %v3270_v25  ;;  %v3242_v21 = vcombine.high %v870_v16, %v874_v17  ;;  %v882_v25 = vld [vmem:[%s5331_s3 + $0xf8] sm:$0xff]  ;;  %v3241_v27 = vcombine.low %v870_v16, %v874_v17  ;;  %v3279_v16 = vcombine.low %v909_v7, %v913_v8 }
  0x8b   :  { %1333 = vmatpush1.bf16.msra.mxu0 %v3269_v24  ;;  %v878_v24 = vld [vmem:[%s5331_s3 + $0xd8] sm:$0xff] }
  0x8c   :  { %1334 = vmatprep.subr.bf16.mxu0 %v3278_v33  ;;  %v3250_v29 = vcombine.high %v878_v24, %v882_v25  ;;  %v890_v33 = vld [vmem:[%s5331_s3 + $0x138] sm:$0xff]  ;;  %v3249_v35 = vcombine.low %v878_v24, %v882_v25  ;;  %v915_v25 = vld [vmem:[%s5332_s4] sm:$0xff] }
  0x8f   :  { %1335 = vmatpush1.bf16.msra.mxu0 %v3277_v32  ;;  %v886_v32 = vld [vmem:[%s5331_s3 + $0x118] sm:$0xff] }
  0x90   :  { %1406 = vmatprep.subr.bf16.mxu0 %v3226_v42  ;;  %v3258_v37 = vcombine.high %v886_v32, %v890_v33  ;;  %v3255_v42 = vcombine.low %v885_v30, %v889_v31 }
 0x145   :  { %v3328_v44 = vpop.f32.mrb[0].mxu0 }
 0x146   :  { %v3329_v46 = vpop.f32.mrb[1].mxu0 }
 0x147   :  { %v3330_v47 = vadd.f32 %v3329_v46, %v3328_v44  ;;  %v3331_v48 = vpop.f32.mrb[2].mxu0  ;;  %v3257_v44 = vcombine.low %v886_v32, %v890_v33 }
 0x148   :  { %v3332_v1 = vpop.f32.mrb[3].mxu0 }
 0x149   :  { %v842_v2 = vadd.f32 %v3330_v47, %v3200_v45  ;;  %v3333_v3 = vadd.f32 %v3332_v1, %v3331_v48  ;;  %v901_v47 = vld [vmem:[%s5331_s3 + $0x190] sm:$0xff]  ;;  %v902_v1 = vld [vmem:[%s5331_s3 + $0x198] sm:$0xff] }
 0x14a   :  { %v905_v48 = vld [vmem:[%s5331_s3 + $0x1b0] sm:$0xff] }
 0x14b   :  { %v845_v4 = vadd.f32 %v3333_v3, %v3200_v45  ;;  %v848_v9 = vmax.f32 %v842_v2, 0.0  ;;  %v3264_v45 = vcombine.high %v893_v38, %v897_v39  ;;  %v906_v2 = vld [vmem:[%s5331_s3 + $0x1b8] sm:$0xff]  ;;  %v3263_v3 = vcombine.low %v893_v38, %v897_v39 }
 0x14c   :  { %v3272_v5 = vcombine.high %v901_v47, %v905_v48  ;;  %v3274_v6 = vcombine.high %v902_v1, %v906_v2 }
 0x14d   :  { %v849_v10 = vmax.f32 %v845_v4, 0.0 }
 0x14f   :  { %v4186_v11 = vpack.c.bf16 %v849_v10, %v848_v9  ;;  %v910_v9 = vld [vmem:[%s5331_s3 + $0x1d8] sm:$0xff] }
 0x150   :  { %v914_v10 = vld [vmem:[%s5331_s3 + $0x1f8] sm:$0xff] }
 0x151   :  { %1310 = vmatmul.mubr.bf16.vlgmr.msra.gmra.mrb[0].mxu1 %v4186_v11  ;;  %1353 = vmatmul.mubr.bf16.vlgmr.msra.gmra.mrb[4].mxu0 %v4186_v11  ;;  %v3282_v15 = vcombine.high %v910_v9, %v914_v10  ;;  %v3281_v17 = vcombine.low %v910_v9, %v914_v10 }
 0x152   :  { %1364 = vmatpush1.bf16.msra.mxu1 %v3223_v40  ;;  %1407 = vmatpush1.bf16.msra.mxu0 %v3225_v41  ;;  %v894_v40 = vld [vmem:[%s5331_s3 + $0x158] sm:$0xff] }
 0x153   :  { %1365 = vmatprep.subr.bf16.mxu1 %v3232_v12  ;;  %1408 = vmatprep.subr.bf16.mxu0 %v3234_v13  ;;  %v898_v41 = vld [vmem:[%s5331_s3 + $0x178] sm:$0xff]  ;;  %v3271_v12 = vcombine.low %v901_v47, %v905_v48  ;;  %v3273_v13 = vcombine.low %v902_v1, %v906_v2 }
 0x154   :  { %1395 = vmatprep.mubr.bf16.mxu1 %v5337_v43  ;;  %1438 = vmatprep.mubr.bf16.mxu0 %v5337_v43  ;;  %v3266_v46 = vcombine.high %v894_v40, %v898_v41  ;;  %v3265_v4 = vcombine.low %v894_v40, %v898_v41 }
 0x156   :  { %1366 = vmatpush1.bf16.msra.mxu1 %v3231_v18  ;;  %1409 = vmatpush1.bf16.msra.mxu0 %v3233_v19  ;;  %v917_v18 = vlaneseq }
 0x157   :  { %1367 = vmatprep.subr.bf16.mxu1 %v3240_v20  ;;  %1410 = vmatprep.subr.bf16.mxu0 %v3242_v21  ;;  %v3539_v20 = vmov 0.0  }
 0x158   :  { %v918_v19 = vshrl.u32 %v917_v18, 7 }
 0x15a   :  { %1368 = vmatpush1.bf16.msra.mxu1 %v3239_v26  ;;  %1411 = vmatpush1.bf16.msra.mxu0 %v3241_v27  ;;  %vm1451_vm0 = vcmp.ge.s32.totalorder %v918_v19, 2  ;;  %v919_v23 = vsub.s32 0, %v918_v19  ;;  %v927_v24 = vsub.s32 2, %v918_v19  ;;  %v923_v26 = vsub.s32 1, %v918_v19 }
 0x15b   :  { %1369 = vmatprep.subr.bf16.mxu1 %v3248_v28  ;;  %1412 = vmatprep.subr.bf16.mxu0 %v3250_v29  ;;  %vm1458_vm2 = vmxor %vm1451_vm0, %vm3538_vm1  ;;  %v931_v27 = vsub.s32 3, %v918_v19  ;;  %v935_v48 = vsub.s32 4, %v918_v19  ;;  %v943_v1 = vsub.s32 6, %v918_v19  ;;  %v939_v2 = vsub.s32 5, %v918_v19 }
 0x15c   :  { %vm1460_vm3 = vmxor %vm1458_vm2, %vm3538_vm1  ;;  %v4266_v21 = vsel %vm1458_vm2, 1.0, %v3539_v20  ;;  %v928_v28 = vrot.slane %v915_v25, %v927_v24  ;;  %v924_v29 = vrot.slane %v915_v25, %v923_v26 }
 0x15d   :  { %5458 = vst [vmem:[#allocation29_spill] sm:$0xff] %v4266_v21  ;;  %v4268_v22 = vsel %vm1460_vm3, 1.0, %v3539_v20  ;;  %v932_v30 = vrot.slane %v915_v25, %v931_v27 }
 0x15e   :  { %1370 = vmatpush1.bf16.msra.mxu1 %v3247_v34  ;;  %1413 = vmatpush1.bf16.msra.mxu0 %v3249_v35  ;;  %5459 = vst [vmem:[#allocation30_spill] sm:$0xff] %v4268_v22 }
 0x15f   :  { %1371 = vmatprep.subr.bf16.mxu1 %v3256_v36  ;;  %1414 = vmatprep.subr.bf16.mxu0 %v3258_v37 }
 0x162   :  { %1372 = vmatpush1.bf16.msra.mxu1 %v3255_v42  ;;  %1415 = vmatpush1.bf16.msra.mxu0 %v3257_v44 }
 0x163   :  { %1373 = vmatprep.subr.bf16.mxu1 %v3264_v45  ;;  %1416 = vmatprep.subr.bf16.mxu0 %v3266_v46 }
 0x166   :  { %1374 = vmatpush1.bf16.msra.mxu1 %v3263_v3  ;;  %1417 = vmatpush1.bf16.msra.mxu0 %v3265_v4  ;;  %v947_v3 = vsub.s32 7, %v918_v19  ;;  %v936_v4 = vrot.slane %v915_v25, %v935_v48 }
 0x167   :  { %1375 = vmatprep.subr.bf16.mxu1 %v3272_v5  ;;  %1418 = vmatprep.subr.bf16.mxu0 %v3274_v6  ;;  %v944_v5 = vrot.slane %v915_v25, %v943_v1  ;;  %v940_v6 = vrot.slane %v915_v25, %v939_v2 }
 0x168   :  { %v948_v7 = vrot.slane %v915_v25, %v947_v3 }
 0x16a   :  { %1376 = vmatpush1.bf16.msra.mxu1 %v3271_v12  ;;  %1419 = vmatpush1.bf16.msra.mxu0 %v3273_v13 }
 0x16b   :  { %1377 = vmatprep.subr.bf16.mxu1 %v3280_v14  ;;  %1420 = vmatprep.subr.bf16.mxu0 %v3282_v15 }
 0x16e   :  { %1378 = vmatpush1.bf16.msra.mxu1 %v3279_v16  ;;  %1421 = vmatpush1.bf16.msra.mxu0 %v3281_v17 }
 0x171   :  { %1396 = vmatmul.mubr.bf16.vlgmr.msra.gmra.mrb[4].mxu1 %v4186_v11  ;;  %1439 = vmatmul.mubr.bf16.vlgmr.msra.gmra.mrb[8].mxu0 %v4186_v11  ;;  %v920_v11 = vrot.slane %v915_v25, %v919_v23 }
 0x224   :  { %v1311_v31 = vpop.f32.mrb[0].mxu1  ;;  %v1354_v32 = vpop.f32.mrb[4].mxu0 }
 0x225   :  { %v4273_v33 = vadd.f32 %v1311_v31, %v920_v11  ;;  %v4275_v34 = vadd.f32 %v1354_v32, %v928_v28  ;;  %v1313_v35 = vpop.f32.mrb[1].mxu1  ;;  %v1356_v36 = vpop.f32.mrb[5].mxu0 }
 0x226   :  { %v4277_v37 = vadd.f32 %v1313_v35, %v924_v29  ;;  %v4279_v38 = vadd.f32 %v1356_v36, %v932_v30  ;;  %v1315_v39 = vpop.f32.mrb[2].mxu1  ;;  %v1358_v40 = vpop.f32.mrb[6].mxu0 }
 0x227   :  { %5460 = vst [vmem:[#allocation31_spill] sm:$0xff] %v4273_v33  ;;  %5461 = vst [vmem:[#allocation32_spill] sm:$0xff] %v4275_v34  ;;  %v4281_v41 = vadd.f32 %v1315_v39, %v920_v11  ;;  %v4283_v42 = vadd.f32 %v1358_v40, %v928_v28  ;;  %v1317_v44 = vpop.f32.mrb[3].mxu1  ;;  %v1360_v45 = vpop.f32.mrb[7].mxu0 }
 0x228   :  { %5462 = vst [vmem:[#allocation33_spill] sm:$0xff] %v4277_v37  ;;  %5463 = vst [vmem:[#allocation34_spill] sm:$0xff] %v4279_v38  ;;  %v4285_v46 = vadd.f32 %v1317_v44, %v924_v29  ;;  %v4287_v47 = vadd.f32 %v1360_v45, %v932_v30 }
 0x229   :  { %5464 = vst [vmem:[#allocation35_spill] sm:$0xff] %v4281_v41  ;;  %5465 = vst [vmem:[#allocation36_spill] sm:$0xff] %v4283_v42 }
 0x22a   :  { %5466 = vst [vmem:[#allocation37_spill] sm:$0xff] %v4285_v46  ;;  %5467 = vst [vmem:[#allocation38_spill] sm:$0xff] %v4287_v47 }
 0x244   :  { %v1397_v8 = vpop.f32.mrb[4].mxu1  ;;  %v1440_v9 = vpop.f32.mrb[8].mxu0 }
 0x245   :  { %v4289_v10 = vadd.f32 %v1397_v8, %v936_v4  ;;  %v4291_v12 = vadd.f32 %v1440_v9, %v944_v5  ;;  %v1399_v13 = vpop.f32.mrb[5].mxu1  ;;  %v1442_v14 = vpop.f32.mrb[9].mxu0 }
 0x246   :  { %v4293_v15 = vadd.f32 %v1399_v13, %v940_v6  ;;  %v4295_v16 = vadd.f32 %v1442_v14, %v948_v7  ;;  %v1401_v17 = vpop.f32.mrb[6].mxu1  ;;  %v1444_v18 = vpop.f32.mrb[10].mxu0 }
 0x247   :  { %5468 = vst [vmem:[#allocation39_spill] sm:$0xff] %v4289_v10  ;;  %5469 = vst [vmem:[#allocation40_spill] sm:$0xff] %v4291_v12  ;;  %v4297_v20 = vadd.f32 %v1401_v17, %v936_v4  ;;  %v4299_v19 = vadd.f32 %v1444_v18, %v944_v5  ;;  %v1403_v23 = vpop.f32.mrb[7].mxu1  ;;  %v1446_v24 = vpop.f32.mrb[11].mxu0 }
 0x248   :  { %5470 = vst [vmem:[#allocation41_spill] sm:$0xff] %v4293_v15  ;;  %5471 = vst [vmem:[#allocation42_spill] sm:$0xff] %v4295_v16  ;;  %v4301_v25 = vadd.f32 %v1403_v23, %v940_v6  ;;  %v4303_v26 = vadd.f32 %v1446_v24, %v948_v7 }
 0x249   :  { %5472 = vst [vmem:[#allocation43_spill] sm:$0xff] %v4297_v20  ;;  %5473 = vst [vmem:[#allocation44_spill] sm:$0xff] %v4299_v19 }
 0x24a   :  { %5474 = vst [vmem:[#allocation45_spill] sm:$0xff] %v4301_v25  ;;  %5475 = vst [vmem:[#allocation46_spill] sm:$0xff] %v4303_v26 }
 0x24b   :  { %3531 = dma.done.wait [#allocation5], 8192 }
 0x24c   :  { %3532 = vsyncadd [#allocation5], 4294959104  ;;  %1582 = vmatprep.mubr.bf16.mxu1 %v5337_v43  ;;  %1623 = vmatprep.mubr.bf16.mxu0 %v5337_v43  ;;  %v4307_v27 = vld [vmem:[#allocation2 + $0x8] sm:$0xff]  ;;  %v4309_v11 = vld [vmem:[#allocation2] sm:$0xff]  ;;  %vm1481_vm4 = vcmask 1041408  }
 0x24d   :  { %5476 = vst [vmem:[#allocation47_spill] sm:$0xff] %v4307_v27  ;;  %v4311_v28 = vld [vmem:[#allocation2 + $0x28] sm:$0xff]  ;;  %1550 = vmatprep.subr.bf16.mxu1 %v4307_v27  ;;  %v4315_v29 = vld [vmem:[#allocation2 + $0x18] sm:$0xff]  ;;  %v4318_v30 = vld [vmem:[#allocation2 + $0x20] sm:$0xff] }
 0x24e   :  { %1551 = vmatpush1.bf16.msra.mxu1 %v4309_v11  ;;  %5477 = vst [vmem:[#allocation48_spill] sm:$0xff] %v4315_v29  ;;  %1591 = vmatprep.subr.bf16.mxu0 %v4315_v29  ;;  %v4321_v31 = vld [vmem:[#allocation2 + $0x10] sm:$0xff]  ;;  %v4323_v32 = vld [vmem:[#allocation2 + $0x38] sm:$0xff]  ;;  %v4325_v35 = vld [vmem:[#allocation2 + $0x48] sm:$0xff] }
 0x24f   :  { %1552 = vmatprep.subr.bf16.mxu1 %v4311_v28  ;;  %1592 = vmatpush1.bf16.msra.mxu0 %v4321_v31  ;;  %v4329_v36 = vld [vmem:[#allocation2 + $0x30] sm:$0xff]  ;;  %v4332_v39 = vld [vmem:[#allocation2 + $0x58] sm:$0xff]  ;;  %v4335_v40 = vld [vmem:[#allocation2 + $0x40] sm:$0xff] }
 0x250   :  { %1593 = vmatprep.subr.bf16.mxu0 %v4323_v32  ;;  %v4337_v44 = vld [vmem:[#allocation2 + $0x68] sm:$0xff]  ;;  %v4341_v45 = vld [vmem:[#allocation2 + $0x50] sm:$0xff]  ;;  %v4344_v48 = vld [vmem:[#allocation2 + $0x78] sm:$0xff] }
 0x251   :  { %v4347_v1 = vld [vmem:[#allocation2 + $0x60] sm:$0xff]  ;;  %v4349_v2 = vld [vmem:[#allocation2 + $0x88] sm:$0xff]  ;;  %v4353_v3 = vld [vmem:[#allocation2 + $0x70] sm:$0xff] }
 0x252   :  { %1553 = vmatpush1.bf16.msra.mxu1 %v4318_v30  ;;  %v4356_v4 = vld [vmem:[#allocation2 + $0x98] sm:$0xff]  ;;  %v4359_v5 = vld [vmem:[#allocation2 + $0x80] sm:$0xff]  ;;  %v4361_v6 = vld [vmem:[#allocation2 + $0xa8] sm:$0xff] }
 0x253   :  { %1554 = vmatprep.subr.bf16.mxu1 %v4325_v35  ;;  %1594 = vmatpush1.bf16.msra.mxu0 %v4329_v36  ;;  %v4365_v7 = vld [vmem:[#allocation2 + $0x90] sm:$0xff]  ;;  %v4368_v8 = vld [vmem:[#allocation2 + $0xb8] sm:$0xff]  ;;  %v4371_v9 = vld [vmem:[#allocation2 + $0xa0] sm:$0xff] }
 0x254   :  { %1595 = vmatprep.subr.bf16.mxu0 %v4332_v39  ;;  %v4373_v13 = vld [vmem:[#allocation2 + $0xc8] sm:$0xff]  ;;  %v4377_v14 = vld [vmem:[#allocation2 + $0xb0] sm:$0xff]  ;;  %v4380_v17 = vld [vmem:[#allocation2 + $0xd8] sm:$0xff] }
 0x255   :  { %v4383_v18 = vld [vmem:[#allocation2 + $0xc0] sm:$0xff]  ;;  %v4385_v23 = vld [vmem:[#allocation2 + $0xe8] sm:$0xff]  ;;  %v4389_v24 = vld [vmem:[#allocation2 + $0xd0] sm:$0xff] }
 0x256   :  { %1555 = vmatpush1.bf16.msra.mxu1 %v4335_v40  ;;  %v4392_v43 = vld [vmem:[#allocation2 + $0xf8] sm:$0xff]  ;;  %v4395_v56 = vld [vmem:[#allocation2 + $0xe0] sm:$0xff]  ;;  %v4397_v0 = vld [vmem:[#allocation2 + $0x108] sm:$0xff] }
 0x257   :  { %1556 = vmatprep.subr.bf16.mxu1 %v4337_v44  ;;  %1596 = vmatpush1.bf16.msra.mxu0 %v4341_v45  ;;  %v4401_v55 = vld [vmem:[#allocation2 + $0xf0] sm:$0xff]  ;;  %v4404_v63 = vld [vmem:[#allocation2 + $0x118] sm:$0xff]  ;;  %v4407_v54 = vld [vmem:[#allocation2 + $0x100] sm:$0xff] }
 0x258   :  { %1597 = vmatprep.subr.bf16.mxu0 %v4344_v48  ;;  %v4409_v62 = vld [vmem:[#allocation2 + $0x128] sm:$0xff]  ;;  %v4413_v53 = vld [vmem:[#allocation2 + $0x110] sm:$0xff]  ;;  %v4416_v61 = vld [vmem:[#allocation2 + $0x138] sm:$0xff] }
 0x259   :  { %v4419_v52 = vld [vmem:[#allocation2 + $0x120] sm:$0xff]  ;;  %v4421_v60 = vld [vmem:[#allocation2 + $0x148] sm:$0xff]  ;;  %v4425_v51 = vld [vmem:[#allocation2 + $0x130] sm:$0xff] }
 0x25a   :  { %1557 = vmatpush1.bf16.msra.mxu1 %v4347_v1  ;;  %v4428_v59 = vld [vmem:[#allocation2 + $0x158] sm:$0xff]  ;;  %v4431_v50 = vld [vmem:[#allocation2 + $0x140] sm:$0xff]  ;;  %v4433_v58 = vld [vmem:[#allocation2 + $0x168] sm:$0xff] }
 0x25b   :  { %1558 = vmatprep.subr.bf16.mxu1 %v4349_v2  ;;  %1598 = vmatpush1.bf16.msra.mxu0 %v4353_v3  ;;  %v4437_v49 = vld [vmem:[#allocation2 + $0x150] sm:$0xff]  ;;  %v4440_v57 = vld [vmem:[#allocation2 + $0x178] sm:$0xff]  ;;  %v4443_v42 = vld [vmem:[#allocation2 + $0x160] sm:$0xff] }
 0x25c   :  { %1599 = vmatprep.subr.bf16.mxu0 %v4356_v4  ;;  %5478 = vst [vmem:[#allocation49_spill] sm:$0xff] %v4440_v57  ;;  %5479 = vst [vmem:[#allocation50_spill] sm:$0xff] %v4443_v42  ;;  %v4445_v12 = vld [vmem:[#allocation2 + $0x188] sm:$0xff]  ;;  %v4449_v47 = vld [vmem:[#allocation2 + $0x170] sm:$0xff] }
 0x25d   :  { %5480 = vst [vmem:[#allocation51_spill] sm:$0xff] %v4445_v12  ;;  %5481 = vst [vmem:[#allocation52_spill] sm:$0xff] %v4449_v47  ;;  %v4452_v16 = vld [vmem:[#allocation2 + $0x198] sm:$0xff]  ;;  %v4455_v46 = vld [vmem:[#allocation2 + $0x180] sm:$0xff] }
 0x25e   :  { %1559 = vmatpush1.bf16.msra.mxu1 %v4359_v5  ;;  %5482 = vst [vmem:[#allocation53_spill] sm:$0xff] %v4452_v16  ;;  %5483 = vst [vmem:[#allocation54_spill] sm:$0xff] %v4455_v46  ;;  %v4457_v41 = vld [vmem:[#allocation2 + $0x1a8] sm:$0xff]  ;;  %v4461_v15 = vld [vmem:[#allocation2 + $0x190] sm:$0xff] }
 0x25f   :  { %1560 = vmatprep.subr.bf16.mxu1 %v4361_v6  ;;  %1600 = vmatpush1.bf16.msra.mxu0 %v4365_v7  ;;  %5484 = vst [vmem:[#allocation55_spill] sm:$0xff] %v4457_v41  ;;  %5485 = vst [vmem:[#allocation56_spill] sm:$0xff] %v4461_v15  ;;  %v4464_v10 = vld [vmem:[#allocation2 + $0x1b8] sm:$0xff]  ;;  %v4467_v21 = vld [vmem:[#allocation2 + $0x1a0] sm:$0xff] }
 0x260   :  { %1601 = vmatprep.subr.bf16.mxu0 %v4368_v8  ;;  %5486 = vst [vmem:[#allocation57_spill] sm:$0xff] %v4464_v10  ;;  %5487 = vst [vmem:[#allocation58_spill] sm:$0xff] %v4467_v21  ;;  %v4469_v22 = vld [vmem:[#allocation2 + $0x1c8] sm:$0xff]  ;;  %v4473_v34 = vld [vmem:[#allocation2 + $0x1b0] sm:$0xff] }
 0x261   :  { %5488 = vst [vmem:[#allocation59_spill] sm:$0xff] %v4469_v22  ;;  %5489 = vst [vmem:[#allocation60_spill] sm:$0xff] %v4473_v34  ;;  %v4476_v19 = vld [vmem:[#allocation2 + $0x1d8] sm:$0xff]  ;;  %v4479_v38 = vld [vmem:[#allocation2 + $0x1c0] sm:$0xff] }
 0x262   :  { %1561 = vmatpush1.bf16.msra.mxu1 %v4371_v9  ;;  %5490 = vst [vmem:[#allocation61_spill] sm:$0xff] %v4476_v19  ;;  %5491 = vst [vmem:[#allocation62_spill] sm:$0xff] %v4479_v38  ;;  %v4481_v26 = vld [vmem:[#allocation2 + $0x1e8] sm:$0xff]  ;;  %v4485_v37 = vld [vmem:[#allocation2 + $0x1d0] sm:$0xff] }
 0x263   :  { %1562 = vmatprep.subr.bf16.mxu1 %v4373_v13  ;;  %1602 = vmatpush1.bf16.msra.mxu0 %v4377_v14  ;;  %5492 = vst [vmem:[#allocation63_spill] sm:$0xff] %v4481_v26  ;;  %5493 = vst [vmem:[#allocation64_spill] sm:$0xff] %v4485_v37  ;;  %v4488_v33 = vld [vmem:[#allocation2 + $0x1f8] sm:$0xff]  ;;  %v4491_v25 = vld [vmem:[#allocation2 + $0x1e0] sm:$0xff] }
 0x264   :  { %1603 = vmatprep.subr.bf16.mxu0 %v4380_v17  ;;  %5494 = vst [vmem:[#allocation65_spill] sm:$0xff] %v4488_v33  ;;  %5495 = vst [vmem:[#allocation66_spill] sm:$0xff] %v4491_v25  ;;  %v4495_v20 = vld [vmem:[#allocation2 + $0x1f0] sm:$0xff] }
 0x265   :  { %5496 = vst [vmem:[#allocation67_spill] sm:$0xff] %v4495_v20 }
 0x266   :  { %1563 = vmatpush1.bf16.msra.mxu1 %v4383_v18 }
 0x267   :  { %1564 = vmatprep.subr.bf16.mxu1 %v4385_v23  ;;  %1604 = vmatpush1.bf16.msra.mxu0 %v4389_v24 }
 0x268   :  { %1605 = vmatprep.subr.bf16.mxu0 %v4392_v43 }
 0x26a   :  { %1565 = vmatpush1.bf16.msra.mxu1 %v4395_v56 }
 0x26b   :  { %1566 = vmatprep.subr.bf16.mxu1 %v4397_v0  ;;  %1606 = vmatpush1.bf16.msra.mxu0 %v4401_v55 }
 0x26c   :  { %1607 = vmatprep.subr.bf16.mxu0 %v4404_v63 }
 0x26e   :  { %1567 = vmatpush1.bf16.msra.mxu1 %v4407_v54 }
 0x26f   :  { %1568 = vmatprep.subr.bf16.mxu1 %v4409_v62  ;;  %1608 = vmatpush1.bf16.msra.mxu0 %v4413_v53 }
 0x270   :  { %1609 = vmatprep.subr.bf16.mxu0 %v4416_v61 }
 0x272   :  { %1569 = vmatpush1.bf16.msra.mxu1 %v4419_v52 }
 0x273   :  { %1570 = vmatprep.subr.bf16.mxu1 %v4421_v60  ;;  %1610 = vmatpush1.bf16.msra.mxu0 %v4425_v51 }
 0x274   :  { %1611 = vmatprep.subr.bf16.mxu0 %v4428_v59 }
 0x276   :  { %1571 = vmatpush1.bf16.msra.mxu1 %v4431_v50 }
 0x277   :  { %1572 = vmatprep.subr.bf16.mxu1 %v4433_v58  ;;  %1612 = vmatpush1.bf16.msra.mxu0 %v4437_v49 }
 0x278   :  { %1613 = vmatprep.subr.bf16.mxu0 %v4440_v57 }
 0x27a   :  { %1573 = vmatpush1.bf16.msra.mxu1 %v4443_v42 }
 0x27b   :  { %1574 = vmatprep.subr.bf16.mxu1 %v4445_v12  ;;  %1614 = vmatpush1.bf16.msra.mxu0 %v4449_v47 }
 0x27c   :  { %1615 = vmatprep.subr.bf16.mxu0 %v4452_v16 }
 0x27e   :  { %1575 = vmatpush1.bf16.msra.mxu1 %v4455_v46 }
 0x27f   :  { %1576 = vmatprep.subr.bf16.mxu1 %v4457_v41  ;;  %1616 = vmatpush1.bf16.msra.mxu0 %v4461_v15 }
 0x280   :  { %1617 = vmatprep.subr.bf16.mxu0 %v4464_v10 }
 0x282   :  { %1577 = vmatpush1.bf16.msra.mxu1 %v4467_v21 }
 0x283   :  { %1578 = vmatprep.subr.bf16.mxu1 %v4469_v22  ;;  %1618 = vmatpush1.bf16.msra.mxu0 %v4473_v34 }
 0x284   :  { %1619 = vmatprep.subr.bf16.mxu0 %v4476_v19  ;;  %v5497_v19 = vmov 0  }
 0x286   :  { %1579 = vmatpush1.bf16.msra.mxu1 %v4479_v38 }
 0x287   :  { %1580 = vmatprep.subr.bf16.mxu1 %v4481_v26  ;;  %1620 = vmatpush1.bf16.msra.mxu0 %v4485_v37 }
 0x288   :  { %1621 = vmatprep.subr.bf16.mxu0 %v4488_v33 }
 0x28a   :  { %1581 = vmatpush1.bf16.msra.mxu1 %v4491_v25 }
 0x28b   :  { %1757 = vmatprep.subr.bf16.mxu1 %v4307_v27  ;;  %1622 = vmatpush1.bf16.msra.mxu0 %v4495_v20 }
 0x28c   :  { %1798 = vmatprep.subr.bf16.mxu0 %v4315_v29 }
 0x28d   :  { %1583 = vmatmul.mubr.bf16.vlgmr.msra.gmra.mrb[8].mxu1 %v5497_v19 }
 0x28e   :  { %1758 = vmatpush1.bf16.msra.mxu1 %v4309_v11  ;;  %1624 = vmatmul.mubr.bf16.vlgmr.msra.gmra.mrb[12].mxu0 %v5497_v19  ;;  %v5498_v19 = vld [vmem:[#allocation61_spill] sm:$0xff] }
 0x28f   :  { %1759 = vmatprep.subr.bf16.mxu1 %v4311_v28  ;;  %1799 = vmatpush1.bf16.msra.mxu0 %v4321_v31 }
 0x290   :  { %1800 = vmatprep.subr.bf16.mxu0 %v4323_v32 }
 0x292   :  { %1760 = vmatpush1.bf16.msra.mxu1 %v4318_v30 }
 0x293   :  { %1761 = vmatprep.subr.bf16.mxu1 %v4325_v35  ;;  %1801 = vmatpush1.bf16.msra.mxu0 %v4329_v36 }
 0x294   :  { %1802 = vmatprep.subr.bf16.mxu0 %v4332_v39 }
 0x296   :  { %1762 = vmatpush1.bf16.msra.mxu1 %v4335_v40 }
 0x297   :  { %1763 = vmatprep.subr.bf16.mxu1 %v4337_v44  ;;  %1803 = vmatpush1.bf16.msra.mxu0 %v4341_v45 }
 0x298   :  { %1804 = vmatprep.subr.bf16.mxu0 %v4344_v48 }
 0x29a   :  { %1764 = vmatpush1.bf16.msra.mxu1 %v4347_v1 }
 0x29b   :  { %1765 = vmatprep.subr.bf16.mxu1 %v4349_v2  ;;  %1805 = vmatpush1.bf16.msra.mxu0 %v4353_v3 }
 0x29c   :  { %1806 = vmatprep.subr.bf16.mxu0 %v4356_v4 }
 0x29e   :  { %1766 = vmatpush1.bf16.msra.mxu1 %v4359_v5 }
 0x29f   :  { %1767 = vmatprep.subr.bf16.mxu1 %v4361_v6  ;;  %1807 = vmatpush1.bf16.msra.mxu0 %v4365_v7 }
 0x2a0   :  { %1808 = vmatprep.subr.bf16.mxu0 %v4368_v8 }
 0x2a2   :  { %1768 = vmatpush1.bf16.msra.mxu1 %v4371_v9 }
 0x2a3   :  { %1769 = vmatprep.subr.bf16.mxu1 %v4373_v13  ;;  %1809 = vmatpush1.bf16.msra.mxu0 %v4377_v14 }
 0x2a4   :  { %1810 = vmatprep.subr.bf16.mxu0 %v4380_v17 }
 0x2a6   :  { %1770 = vmatpush1.bf16.msra.mxu1 %v4383_v18 }
 0x2a7   :  { %1771 = vmatprep.subr.bf16.mxu1 %v4385_v23  ;;  %1811 = vmatpush1.bf16.msra.mxu0 %v4389_v24 }
 0x2a8   :  { %1812 = vmatprep.subr.bf16.mxu0 %v4392_v43 }
 0x2aa   :  { %1772 = vmatpush1.bf16.msra.mxu1 %v4395_v56 }
 0x2ab   :  { %1773 = vmatprep.subr.bf16.mxu1 %v4397_v0  ;;  %1813 = vmatpush1.bf16.msra.mxu0 %v4401_v55 }
 0x2ac   :  { %1814 = vmatprep.subr.bf16.mxu0 %v4404_v63 }
 0x2ae   :  { %1774 = vmatpush1.bf16.msra.mxu1 %v4407_v54 }
 0x2af   :  { %1775 = vmatprep.subr.bf16.mxu1 %v4409_v62  ;;  %1815 = vmatpush1.bf16.msra.mxu0 %v4413_v53 }
 0x2b0   :  { %1816 = vmatprep.subr.bf16.mxu0 %v4416_v61 }
 0x2b2   :  { %1776 = vmatpush1.bf16.msra.mxu1 %v4419_v52 }
 0x2b3   :  { %1777 = vmatprep.subr.bf16.mxu1 %v4421_v60  ;;  %1817 = vmatpush1.bf16.msra.mxu0 %v4425_v51 }
 0x2b4   :  { %1818 = vmatprep.subr.bf16.mxu0 %v4428_v59 }
 0x2b6   :  { %1778 = vmatpush1.bf16.msra.mxu1 %v4431_v50 }
 0x2b7   :  { %1779 = vmatprep.subr.bf16.mxu1 %v4433_v58  ;;  %1819 = vmatpush1.bf16.msra.mxu0 %v4437_v49 }
 0x2b8   :  { %1820 = vmatprep.subr.bf16.mxu0 %v4440_v57 }
 0x2ba   :  { %1780 = vmatpush1.bf16.msra.mxu1 %v4443_v42  ;;  %v5504_v42 = vld [vmem:[#allocation34_spill] sm:$0xff] }
 0x2bb   :  { %1781 = vmatprep.subr.bf16.mxu1 %v4445_v12  ;;  %1821 = vmatpush1.bf16.msra.mxu0 %v4449_v47 }
 0x2bc   :  { %1822 = vmatprep.subr.bf16.mxu0 %v4452_v16 }
 0x2be   :  { %1782 = vmatpush1.bf16.msra.mxu1 %v4455_v46 }
 0x2bf   :  { %1783 = vmatprep.subr.bf16.mxu1 %v4457_v41  ;;  %1823 = vmatpush1.bf16.msra.mxu0 %v4461_v15  ;;  %v5503_v41 = vld [vmem:[#allocation46_spill] sm:$0xff] }
 0x2c0   :  { %1824 = vmatprep.subr.bf16.mxu0 %v4464_v10  ;;  %v5502_v10 = vld [vmem:[#allocation33_spill] sm:$0xff] }
 0x2c2   :  { %1784 = vmatpush1.bf16.msra.mxu1 %v4467_v21 }
 0x2c3   :  { %1785 = vmatprep.subr.bf16.mxu1 %v4469_v22  ;;  %1825 = vmatpush1.bf16.msra.mxu0 %v4473_v34  ;;  %v5499_v22 = vld [vmem:[#allocation43_spill] sm:$0xff] }
 0x2c4   :  { %1826 = vmatprep.subr.bf16.mxu0 %v5498_v19  ;;  %v1473_v34 = vrot.slane %v5499_v22, 4  ;;  %v5500_v19 = vld [vmem:[#allocation45_spill] sm:$0xff] }
 0x2c5   :  { %v1474_v21 = vrot.slane %v5500_v19, 4 }
 0x2c6   :  { %1786 = vmatpush1.bf16.msra.mxu1 %v4479_v38  ;;  %v5501_v38 = vld [vmem:[#allocation31_spill] sm:$0xff] }
 0x2c7   :  { %1787 = vmatprep.subr.bf16.mxu1 %v4481_v26  ;;  %1827 = vmatpush1.bf16.msra.mxu0 %v4485_v37  ;;  %v1482_v26 = vsel %vm1481_vm4, %v5501_v38, %v1473_v34  ;;  %v1483_v37 = vsel %vm1481_vm4, %v5502_v10, %v1474_v21  ;;  %v5505_v34 = vld [vmem:[#allocation44_spill] sm:$0xff] }
 0x2c8   :  { %1828 = vmatprep.subr.bf16.mxu0 %v4488_v33  ;;  %v1475_v38 = vrot.slane %v5505_v34, 4 }
 0x2ca   :  { %1788 = vmatpush1.bf16.msra.mxu1 %v4491_v25  ;;  %v1476_v25 = vrot.slane %v5503_v41, 4  ;;  %v5506_v41 = vld [vmem:[#allocation32_spill] sm:$0xff] }
 0x2cb   :  { %1952 = vmatprep.subr.bf16.mxu1 %v4307_v27  ;;  %1829 = vmatpush1.bf16.msra.mxu0 %v4495_v20 }
 0x2cc   :  { %1993 = vmatprep.subr.bf16.mxu0 %v4315_v29  ;;  %v1485_v19 = vsel %vm1481_vm4, %v5504_v42, %v1476_v25 }
 0x360   :  { %v1584_v33 = vpop.f32.mrb[8].mxu1 }
 0x361   :  { %v1632_v15 = vadd.f32 %v1584_v33, %v1482_v26  ;;  %v1586_v27 = vpop.f32.mrb[9].mxu1  ;;  %v1625_v16 = vpop.f32.mrb[12].mxu0  ;;  %v1484_v33 = vsel %vm1481_vm4, %v5506_v41, %v1475_v38 }
 0x362   :  { %v1633_v46 = vadd.f32 %v1586_v27, %v1483_v37  ;;  %v1588_v20 = vpop.f32.mrb[10].mxu1  ;;  %v1627_v22 = vpop.f32.mrb[13].mxu0 }
 0x363   :  { %v3285_v29 = vmul.f32 -1.442695, %v1632_v15  ;;  %v1589_v12 = vpop.f32.mrb[11].mxu1  ;;  %v1629_v57 = vpop.f32.mrb[14].mxu0  ;;  %v1635_v10 = vadd.f32 %v1627_v22, %v1485_v19  ;;  %v1634_v20 = vadd.f32 %v1625_v16, %v1484_v33 }
 0x364   :  { %v3286_v47 = vmul.f32 -1.442695, %v1633_v46  ;;  %v1630_v21 = vpop.f32.mrb[15].mxu0 }
 0x365   :  { %3381 = vpow2.f32 %v3285_v29  ;;  %v3287_v37 = vmul.f32 -1.442695, %v1635_v10 }
 0x366   :  { %3383 = vpow2.f32 %v3286_v47 }
 0x367   :  { %3385 = vpow2.f32 %v3287_v37  ;;  %v5507_v37 = vld [vmem:[#allocation30_spill] sm:$0xff] }
 0x368   :  { %3387 = vtanh.f32 %v1634_v20 }
 0x36f   :  { %v3382_v26 = vpop.eup %3381 }
 0x370   :  { %v3384_v12 = vpop.eup %3383  ;;  %v1639_v15 = vadd.f32 1.0, %v3382_v26  ;;  %v5508_v26 = vld [vmem:[#allocation29_spill] sm:$0xff] }
 0x371   :  { %v1645_v46 = vadd.f32 1.0, %v3384_v12  ;;  %v3386_v57 = vpop.eup %3385 }
 0x372   :  { %3389 = vrcp.f32 %v1639_v15  ;;  %v3388_v25 = vpop.eup %3387  ;;  %v1652_v29 = vadd.f32 1.0, %v3386_v57 }
 0x373   :  { %3391 = vrcp.f32 %v1645_v46 }
 0x374   :  { %3393 = vrcp.f32 %v1652_v29 }
 0x37c   :  { %v3390_v27 = vpop.eup %3389 }
 0x37d   :  { %v3392_v21 = vpop.eup %3391  ;;  %v1656_v47 = vmul.f32 %v3390_v27, %v3388_v25 }
 0x37e   :  { %v1655_v22 = vmul.f32 0.0, %v3392_v21  ;;  %v3394_v38 = vpop.eup %3393  ;;  %v1674_v21 = vrot.slane %v5504_v42, 2 }
 0x380   :  { %v4579_v19 = vadd.f32 %v1656_v47, %v1655_v22  ;;  %v5534_v47 = vld [vmem:[#allocation46_spill] sm:$0xff] }
 0x381   :  { %v1682_v22 = vrot.slane %v5534_v47, 2 }
 0x382   :  { %3395 = vtanh.f32 %v4579_v19 }
 0x38c   :  { %v3396_v10 = vpop.eup %3395 }
 0x38d   :  { %v1659_v16 = vmul.f32 %v3396_v10, %v3394_v38 }
 0x38f   :  { %1660 = vst [vmem:[#allocation4] sm:$0x3] %v1659_v16  ;;  %v1662_v33 = vrot.slane %v1659_v16, 4  ;;  %v1666_v20 = vmul.f32 %v5507_v37, %v1659_v16  ;;  %v1665_v12 = vmul.f32 %v5508_v26, %v1659_v16 }
 0x391   :  { %1664 = vst [vmem:[#allocation4 + $0x18] sm:$0xc0] %v1662_v33  ;;  %v1692_v15 = vpack.c.bf16 %v1666_v20, %v1666_v20  ;;  %v1691_v46 = vpack.c.bf16 %v1665_v12, %v1665_v12 }
 0x393   :  { %1789 = vmatprep.mubr.bf16.mxu1 %v1692_v15  ;;  %1830 = vmatprep.mubr.bf16.mxu0 %v1692_v15 }
 0x394   :  { %1790 = vmatmul.mubr.bf16.vlgmr.msra.gmra.mrb[12].mxu1 %v1691_v46  ;;  %1831 = vmatmul.mubr.bf16.vlgmr.msra.gmra.mrb[16].mxu0 %v1691_v46 }
 0x395   :  { %1953 = vmatpush1.bf16.msra.mxu1 %v4309_v11  ;;  %1994 = vmatpush1.bf16.msra.mxu0 %v4321_v31 }
 0x396   :  { %1954 = vmatprep.subr.bf16.mxu1 %v4311_v28  ;;  %1995 = vmatprep.subr.bf16.mxu0 %v4323_v32 }
 0x399   :  { %1955 = vmatpush1.bf16.msra.mxu1 %v4318_v30  ;;  %1996 = vmatpush1.bf16.msra.mxu0 %v4329_v36 }
 0x39a   :  { %1956 = vmatprep.subr.bf16.mxu1 %v4325_v35  ;;  %1997 = vmatprep.subr.bf16.mxu0 %v4332_v39 }
 0x39d   :  { %1957 = vmatpush1.bf16.msra.mxu1 %v4335_v40  ;;  %1998 = vmatpush1.bf16.msra.mxu0 %v4341_v45 }
 0x39e   :  { %1958 = vmatprep.subr.bf16.mxu1 %v4337_v44  ;;  %1999 = vmatprep.subr.bf16.mxu0 %v4344_v48  ;;  %v5525_v44 = vld [vmem:[#allocation65_spill] sm:$0xff] }
 0x3a1   :  { %1959 = vmatpush1.bf16.msra.mxu1 %v4347_v1  ;;  %2000 = vmatpush1.bf16.msra.mxu0 %v4353_v3  ;;  %v5526_v1 = vld [vmem:[#allocation66_spill] sm:$0xff] }
 0x3a2   :  { %1960 = vmatprep.subr.bf16.mxu1 %v4349_v2  ;;  %2001 = vmatprep.subr.bf16.mxu0 %v4356_v4  ;;  %v5527_v2 = vld [vmem:[#allocation67_spill] sm:$0xff] }
 0x3a3   :  { %v5528_v4 = vld [vmem:[#allocation47_spill] sm:$0xff] }
 0x3a5   :  { %1961 = vmatpush1.bf16.msra.mxu1 %v4359_v5  ;;  %2002 = vmatpush1.bf16.msra.mxu0 %v4365_v7  ;;  %v5529_v5 = vld [vmem:[#allocation48_spill] sm:$0xff] }
 0x3a6   :  { %1962 = vmatprep.subr.bf16.mxu1 %v4361_v6  ;;  %2003 = vmatprep.subr.bf16.mxu0 %v4368_v8  ;;  %v5530_v6 = vld [vmem:[#allocation31_spill] sm:$0xff] }
 0x3a7   :  { %v1671_v7 = vrot.slane %v5530_v6, 2  ;;  %v5531_v8 = vld [vmem:[#allocation43_spill] sm:$0xff] }
 0x3a9   :  { %1963 = vmatpush1.bf16.msra.mxu1 %v4371_v9  ;;  %2004 = vmatpush1.bf16.msra.mxu0 %v4377_v14  ;;  %v1679_v9 = vrot.slane %v5531_v8, 2 }
 0x3aa   :  { %1964 = vmatprep.subr.bf16.mxu1 %v4373_v13  ;;  %2005 = vmatprep.subr.bf16.mxu0 %v4380_v17  ;;  %v5532_v13 = vld [vmem:[#allocation33_spill] sm:$0xff] }
 0x3ab   :  { %v1672_v14 = vrot.slane %v5532_v13, 2  ;;  %v5533_v17 = vld [vmem:[#allocation45_spill] sm:$0xff] }
 0x3ad   :  { %1965 = vmatpush1.bf16.msra.mxu1 %v4383_v18  ;;  %2006 = vmatpush1.bf16.msra.mxu0 %v4389_v24  ;;  %v1680_v18 = vrot.slane %v5533_v17, 2 }
 0x3ae   :  { %1966 = vmatprep.subr.bf16.mxu1 %v4385_v23  ;;  %2007 = vmatprep.subr.bf16.mxu0 %v4392_v43  ;;  %v5524_v43 = vld [vmem:[#allocation63_spill] sm:$0xff]  ;;  %v1687_v23 = vsel %vm1481_vm4, %v1671_v7, %v1679_v9 }
 0x3af   :  { %v1688_v24 = vsel %vm1481_vm4, %v1672_v14, %v1680_v18 }
 0x3b1   :  { %1967 = vmatpush1.bf16.msra.mxu1 %v4395_v56  ;;  %2008 = vmatpush1.bf16.msra.mxu0 %v4401_v55  ;;  %v5511_v55 = vld [vmem:[#allocation52_spill] sm:$0xff]  ;;  %v5512_v56 = vld [vmem:[#allocation51_spill] sm:$0xff] }
 0x3b2   :  { %1968 = vmatprep.subr.bf16.mxu1 %v4397_v0  ;;  %2009 = vmatprep.subr.bf16.mxu0 %v4404_v63  ;;  %v5522_v63 = vld [vmem:[#allocation62_spill] sm:$0xff]  ;;  %v5523_v0 = vld [vmem:[#allocation64_spill] sm:$0xff] }
 0x3b5   :  { %1969 = vmatpush1.bf16.msra.mxu1 %v4407_v54  ;;  %2010 = vmatpush1.bf16.msra.mxu0 %v4413_v53  ;;  %v5509_v54 = vld [vmem:[#allocation49_spill] sm:$0xff]  ;;  %v5510_v53 = vld [vmem:[#allocation50_spill] sm:$0xff] }
 0x3b6   :  { %1970 = vmatprep.subr.bf16.mxu1 %v4409_v62  ;;  %2011 = vmatprep.subr.bf16.mxu0 %v4416_v61  ;;  %v5520_v61 = vld [vmem:[#allocation59_spill] sm:$0xff]  ;;  %v5521_v62 = vld [vmem:[#allocation61_spill] sm:$0xff] }
 0x3b9   :  { %1971 = vmatpush1.bf16.msra.mxu1 %v4419_v52  ;;  %2012 = vmatpush1.bf16.msra.mxu0 %v4425_v51  ;;  %v5513_v52 = vld [vmem:[#allocation53_spill] sm:$0xff]  ;;  %v5514_v51 = vld [vmem:[#allocation54_spill] sm:$0xff] }
 0x3ba   :  { %1972 = vmatprep.subr.bf16.mxu1 %v4421_v60  ;;  %2013 = vmatprep.subr.bf16.mxu0 %v4428_v59  ;;  %v5515_v60 = vld [vmem:[#allocation56_spill] sm:$0xff]  ;;  %v5516_v59 = vld [vmem:[#allocation55_spill] sm:$0xff] }
 0x3bd   :  { %1973 = vmatpush1.bf16.msra.mxu1 %v4431_v50  ;;  %2014 = vmatpush1.bf16.msra.mxu0 %v4437_v49  ;;  %v5517_v50 = vld [vmem:[#allocation57_spill] sm:$0xff]  ;;  %v5518_v49 = vld [vmem:[#allocation58_spill] sm:$0xff] }
 0x3be   :  { %1974 = vmatprep.subr.bf16.mxu1 %v4433_v58  ;;  %2015 = vmatprep.subr.bf16.mxu0 %v5509_v54  ;;  %v5519_v58 = vld [vmem:[#allocation60_spill] sm:$0xff]  ;;  %v1690_v54 = vsel %vm1481_vm4, %v1674_v21, %v1682_v22  ;;  %v4728_v21 = vld [vmem:[#allocation2 + $0xf0] sm:$0xff] }
 0x3bf   :  { %v4732_v22 = vld [vmem:[#allocation2 + $0x108] sm:$0xff] }
 0x3c1   :  { %1975 = vmatpush1.bf16.msra.mxu1 %v5510_v53  ;;  %2016 = vmatpush1.bf16.msra.mxu0 %v5511_v55  ;;  %v1673_v53 = vrot.slane %v5506_v41, 2  ;;  %v1681_v55 = vrot.slane %v5505_v34, 2 }
 0x3c2   :  { %1976 = vmatprep.subr.bf16.mxu1 %v5512_v56  ;;  %2017 = vmatprep.subr.bf16.mxu0 %v5513_v52 }
 0x3c3   :  { %v1689_v52 = vsel %vm1481_vm4, %v1673_v53, %v1681_v55  ;;  %v4762_v53 = vld [vmem:[#allocation2 + $0x140] sm:$0xff]  ;;  %v4764_v55 = vld [vmem:[#allocation2 + $0x150] sm:$0xff] }
 0x3c4   :  { %5538 = vst [vmem:[#allocation29_spill] sm:$0xff] %v4762_v53  ;;  %5539 = vst [vmem:[#allocation49_spill] sm:$0xff] %v4764_v55 }
 0x3c5   :  { %1977 = vmatpush1.bf16.msra.mxu1 %v5514_v51  ;;  %2018 = vmatpush1.bf16.msra.mxu0 %v5515_v60 }
 0x3c6   :  { %1978 = vmatprep.subr.bf16.mxu1 %v5516_v59  ;;  %2019 = vmatprep.subr.bf16.mxu0 %v5517_v50 }
 0x3c9   :  { %1979 = vmatpush1.bf16.msra.mxu1 %v5518_v49  ;;  %2020 = vmatpush1.bf16.msra.mxu0 %v5519_v58 }
 0x3ca   :  { %1980 = vmatprep.subr.bf16.mxu1 %v5520_v61  ;;  %2021 = vmatprep.subr.bf16.mxu0 %v5521_v62 }
 0x3cd   :  { %1981 = vmatpush1.bf16.msra.mxu1 %v5522_v63  ;;  %2022 = vmatpush1.bf16.msra.mxu0 %v5523_v0 }
 0x3ce   :  { %1982 = vmatprep.subr.bf16.mxu1 %v5524_v43  ;;  %2023 = vmatprep.subr.bf16.mxu0 %v5525_v44 }
 0x3d1   :  { %1983 = vmatpush1.bf16.msra.mxu1 %v5526_v1  ;;  %2024 = vmatpush1.bf16.msra.mxu0 %v5527_v2 }
 0x3d2   :  { %2155 = vmatprep.subr.bf16.mxu1 %v5528_v4  ;;  %2196 = vmatprep.subr.bf16.mxu0 %v5529_v5 }
 0x467   :  { %v1791_v57 = vpop.f32.mrb[12].mxu1  ;;  %v1832_v25 = vpop.f32.mrb[16].mxu0 }
 0x468   :  { %v1839_v27 = vadd.f32 %v1791_v57, %v1687_v23  ;;  %v1793_v29 = vpop.f32.mrb[13].mxu1  ;;  %v1834_v38 = vpop.f32.mrb[17].mxu0  ;;  %v1841_v60 = vadd.f32 %v1832_v25, %v1689_v52  ;;  %v4716_v57 = vld [vmem:[#allocation2 + $0xd0] sm:$0xff]  ;;  %v4720_v25 = vld [vmem:[#allocation2 + $0xe8] sm:$0xff]  ;;  %v4770_v52 = vld [vmem:[#allocation2 + $0x178] sm:$0xff] }
 0x469   :  { %v1840_v10 = vadd.f32 %v1793_v29, %v1688_v24  ;;  %v1795_v16 = vpop.f32.mrb[14].mxu1  ;;  %v1836_v33 = vpop.f32.mrb[18].mxu0  ;;  %v1842_v56 = vadd.f32 %v1834_v38, %v1690_v54  ;;  %v4726_v29 = vld [vmem:[#allocation2 + $0xe0] sm:$0xff]  ;;  %v4734_v38 = vld [vmem:[#allocation2 + $0x118] sm:$0xff]  ;;  %5541 = vst [vmem:[#allocation52_spill] sm:$0xff] %v4770_v52 }
 0x46a   :  { %v3288_v20 = vmul.f32 -1.442695, %v1839_v27  ;;  %v1796_v12 = vpop.f32.mrb[15].mxu1  ;;  %v1837_v15 = vpop.f32.mrb[19].mxu0  ;;  %v4722_v27 = vld [vmem:[#allocation2 + $0xf8] sm:$0xff]  ;;  %v4740_v16 = vld [vmem:[#allocation2 + $0x110] sm:$0xff] }
 0x46b   :  { %v3289_v46 = vmul.f32 -1.442695, %v1840_v10  ;;  %v3290_v51 = vmul.f32 -1.442695, %v1842_v56  ;;  %v4738_v10 = vld [vmem:[#allocation2 + $0x100] sm:$0xff]  ;;  %v4744_v33 = vld [vmem:[#allocation2 + $0x128] sm:$0xff] }
 0x46c   :  { %3397 = vpow2.f32 %v3288_v20  ;;  %v4746_v20 = vld [vmem:[#allocation2 + $0x138] sm:$0xff]  ;;  %v4750_v12 = vld [vmem:[#allocation2 + $0x120] sm:$0xff]  ;;  %v4752_v15 = vld [vmem:[#allocation2 + $0x130] sm:$0xff] }
 0x46d   :  { %3399 = vpow2.f32 %v3289_v46  ;;  %5535 = vst [vmem:[#allocation44_spill] sm:$0xff] %v4752_v15  ;;  %v4756_v46 = vld [vmem:[#allocation2 + $0x148] sm:$0xff]  ;;  %v4758_v54 = vld [vmem:[#allocation2 + $0x158] sm:$0xff] }
 0x46e   :  { %3401 = vpow2.f32 %v3290_v51  ;;  %5536 = vst [vmem:[#allocation32_spill] sm:$0xff] %v4756_v46  ;;  %5537 = vst [vmem:[#allocation30_spill] sm:$0xff] %v4758_v54  ;;  %v4768_v56 = vld [vmem:[#allocation2 + $0x168] sm:$0xff]  ;;  %v4774_v51 = vld [vmem:[#allocation2 + $0x160] sm:$0xff] }
 0x46f   :  { %3403 = vtanh.f32 %v1841_v60  ;;  %5540 = vst [vmem:[#allocation50_spill] sm:$0xff] %v4768_v56  ;;  %5542 = vst [vmem:[#allocation51_spill] sm:$0xff] %v4774_v51  ;;  %v4776_v60 = vld [vmem:[#allocation2 + $0x170] sm:$0xff] }
 0x470   :  { %5543 = vst [vmem:[#allocation53_spill] sm:$0xff] %v4776_v60 }
 0x476   :  { %v3398_v59 = vpop.eup %3397 }
 0x477   :  { %v3400_v50 = vpop.eup %3399  ;;  %v1846_v49 = vadd.f32 1.0, %v3398_v59  ;;  %v4780_v59 = vld [vmem:[#allocation2 + $0x188] sm:$0xff] }
 0x478   :  { %v1852_v58 = vadd.f32 1.0, %v3400_v50  ;;  %v3402_v61 = vpop.eup %3401  ;;  %5544 = vst [vmem:[#allocation54_spill] sm:$0xff] %v4780_v59  ;;  %v4782_v50 = vld [vmem:[#allocation2 + $0x198] sm:$0xff] }
 0x479   :  { %3405 = vrcp.f32 %v1846_v49  ;;  %v3404_v62 = vpop.eup %3403  ;;  %v1859_v44 = vadd.f32 1.0, %v3402_v61  ;;  %5545 = vst [vmem:[#allocation56_spill] sm:$0xff] %v4782_v50  ;;  %v4786_v49 = vld [vmem:[#allocation2 + $0x180] sm:$0xff]  ;;  %v4790_v61 = vld [vmem:[#allocation2 + $0x1a8] sm:$0xff] }
 0x47a   :  { %3407 = vrcp.f32 %v1852_v58  ;;  %5546 = vst [vmem:[#allocation55_spill] sm:$0xff] %v4786_v49  ;;  %v4788_v58 = vld [vmem:[#allocation2 + $0x190] sm:$0xff]  ;;  %5548 = vst [vmem:[#allocation58_spill] sm:$0xff] %v4790_v61 }
 0x47b   :  { %3409 = vrcp.f32 %v1859_v44  ;;  %5547 = vst [vmem:[#allocation57_spill] sm:$0xff] %v4788_v58  ;;  %v4804_v44 = vld [vmem:[#allocation2 + $0x1d8] sm:$0xff] }
 0x47c   :  { %5553 = vst [vmem:[#allocation64_spill] sm:$0xff] %v4804_v44 }
 0x483   :  { %v3406_v63 = vpop.eup %3405 }
 0x484   :  { %v3408_v0 = vpop.eup %3407  ;;  %v1863_v43 = vmul.f32 %v3406_v63, %v3404_v62  ;;  %v4792_v62 = vld [vmem:[#allocation2 + $0x1b8] sm:$0xff]  ;;  %v4798_v63 = vld [vmem:[#allocation2 + $0x1a0] sm:$0xff] }
 0x485   :  { %v1862_v1 = vmul.f32 %v3408_v0, %v4579_v19  ;;  %v3410_v4 = vpop.eup %3409  ;;  %v4714_v19 = vld [vmem:[#allocation2 + $0xc0] sm:$0xff]  ;;  %5549 = vst [vmem:[#allocation60_spill] sm:$0xff] %v4792_v62  ;;  %5550 = vst [vmem:[#allocation59_spill] sm:$0xff] %v4798_v63  ;;  %v4800_v0 = vld [vmem:[#allocation2 + $0x1b0] sm:$0xff] }
 0x486   :  { %5551 = vst [vmem:[#allocation61_spill] sm:$0xff] %v4800_v0 }
 0x487   :  { %v4661_v2 = vadd.f32 %v1863_v43, %v1862_v1  ;;  %v4802_v43 = vld [vmem:[#allocation2 + $0x1c8] sm:$0xff]  ;;  %v4810_v1 = vld [vmem:[#allocation2 + $0x1c0] sm:$0xff] }
 0x488   :  { %5552 = vst [vmem:[#allocation62_spill] sm:$0xff] %v4802_v43  ;;  %5554 = vst [vmem:[#allocation63_spill] sm:$0xff] %v4810_v1 }
 0x489   :  { %3411 = vtanh.f32 %v4661_v2 }
 0x493   :  { %v3412_v5 = vpop.eup %3411 }
 0x494   :  { %v1866_v7 = vmul.f32 %v3412_v5, %v3410_v4  ;;  %v4812_v4 = vld [vmem:[#allocation2 + $0x1d0] sm:$0xff]  ;;  %v4814_v5 = vld [vmem:[#allocation2 + $0x1e8] sm:$0xff] }
 0x495   :  { %5555 = vst [vmem:[#allocation65_spill] sm:$0xff] %v4812_v4  ;;  %5556 = vst [vmem:[#allocation66_spill] sm:$0xff] %v4814_v5 }
 0x496   :  { %v1868_v9 = vrot.slane %v1866_v7, 6  ;;  %v1873_v14 = vmul.f32 %v5507_v37, %v1866_v7  ;;  %v1872_v18 = vmul.f32 %v5508_v26, %v1866_v7  ;;  %v4816_v7 = vld [vmem:[#allocation2 + $0x1f8] sm:$0xff] }
 0x497   :  { %5557 = vst [vmem:[#allocation67_spill] sm:$0xff] %v4816_v7 }
 0x498   :  { %1870 = vst [vmem:[#allocation4] ss:$28 sps:$4 sm:$0x3c] %v1868_v9   ;;  %v1887_v23 = vpack.c.bf16 %v1873_v14, %v1873_v14  ;;  %v1886_v24 = vpack.c.bf16 %v1872_v18, %v1872_v18  ;;  %v4822_v9 = vld [vmem:[#allocation2 + $0x1e0] sm:$0xff]  ;;  %v4824_v14 = vld [vmem:[#allocation2 + $0x1f0] sm:$0xff]  ;;  %v4828_v18 = vld [vmem:[#allocation2 + $0x8] sm:$0xff] }
 0x499   :  { %5558 = vst [vmem:[#allocation47_spill] sm:$0xff] %v4822_v9  ;;  %5559 = vst [vmem:[#allocation48_spill] sm:$0xff] %v4824_v14 }
 0x49a   :  { %1984 = vmatprep.mubr.bf16.mxu1 %v1887_v23  ;;  %2025 = vmatprep.mubr.bf16.mxu0 %v1887_v23  ;;  %5560 = vst [vmem:[#allocation43_spill] sm:$0xff] %v4828_v18  ;;  %v4830_v23 = vld [vmem:[#allocation2 + $0x18] sm:$0xff] }
 0x49b   :  { %1985 = vmatmul.mubr.bf16.vlgmr.msra.gmra.mrb[16].mxu1 %v1886_v24  ;;  %2026 = vmatmul.mubr.bf16.vlgmr.msra.gmra.mrb[20].mxu0 %v1886_v24  ;;  %5561 = vst [vmem:[#allocation46_spill] sm:$0xff] %v4830_v23  ;;  %v1874_v24 = vrot.slane %v5530_v6, 4 }
 0x49c   :  { %2156 = vmatpush1.bf16.msra.mxu1 %v4309_v11  ;;  %2197 = vmatpush1.bf16.msra.mxu0 %v4321_v31  ;;  %v4678_v11 = vld [vmem:[#allocation2 + $0x68] sm:$0xff]  ;;  %v4686_v31 = vld [vmem:[#allocation2 + $0x98] sm:$0xff] }
 0x49d   :  { %2157 = vmatprep.subr.bf16.mxu1 %v4311_v28  ;;  %2198 = vmatprep.subr.bf16.mxu0 %v4323_v32  ;;  %v4681_v28 = vld [vmem:[#allocation2 + $0x60] sm:$0xff] }
 0x49e   :  { %v4690_v32 = vld [vmem:[#allocation2 + $0x80] sm:$0xff] }
 0x4a0   :  { %2158 = vmatpush1.bf16.msra.mxu1 %v4318_v30  ;;  %2199 = vmatpush1.bf16.msra.mxu0 %v4329_v36  ;;  %v4684_v30 = vld [vmem:[#allocation2 + $0x88] sm:$0xff] }
 0x4a1   :  { %2159 = vmatprep.subr.bf16.mxu1 %v4325_v35  ;;  %2200 = vmatprep.subr.bf16.mxu0 %v4332_v39  ;;  %v4692_v35 = vld [vmem:[#allocation2 + $0x90] sm:$0xff]  ;;  %v4696_v36 = vld [vmem:[#allocation2 + $0xa8] sm:$0xff]  ;;  %v4698_v39 = vld [vmem:[#allocation2 + $0xb8] sm:$0xff] }
 0x4a4   :  { %2160 = vmatpush1.bf16.msra.mxu1 %v4335_v40  ;;  %2201 = vmatpush1.bf16.msra.mxu0 %v4341_v45  ;;  %v4702_v40 = vld [vmem:[#allocation2 + $0xa0] sm:$0xff]  ;;  %v4704_v45 = vld [vmem:[#allocation2 + $0xb0] sm:$0xff] }
 0x4a5   :  { %2202 = vmatprep.subr.bf16.mxu0 %v4344_v48  ;;  %2161 = vmatprep.subr.bf16.mxu1 %v4678_v11  ;;  %v4708_v48 = vld [vmem:[#allocation2 + $0xc8] sm:$0xff] }
 0x4a8   :  { %2203 = vmatpush1.bf16.msra.mxu0 %v4353_v3  ;;  %2162 = vmatpush1.bf16.msra.mxu1 %v4681_v28  ;;  %v4710_v3 = vld [vmem:[#allocation2 + $0xd8] sm:$0xff] }
 0x4a9   :  { %2163 = vmatprep.subr.bf16.mxu1 %v4684_v30  ;;  %2204 = vmatprep.subr.bf16.mxu0 %v4686_v31 }
 0x4ac   :  { %2164 = vmatpush1.bf16.msra.mxu1 %v4690_v32  ;;  %2205 = vmatpush1.bf16.msra.mxu0 %v4692_v35 }
 0x4ad   :  { %2165 = vmatprep.subr.bf16.mxu1 %v4696_v36  ;;  %2206 = vmatprep.subr.bf16.mxu0 %v4698_v39 }
 0x4b0   :  { %2166 = vmatpush1.bf16.msra.mxu1 %v4702_v40  ;;  %2207 = vmatpush1.bf16.msra.mxu0 %v4704_v45 }
 0x4b1   :  { %2167 = vmatprep.subr.bf16.mxu1 %v4708_v48  ;;  %2208 = vmatprep.subr.bf16.mxu0 %v4710_v3 }
 0x4b4   :  { %2168 = vmatpush1.bf16.msra.mxu1 %v4714_v19  ;;  %2209 = vmatpush1.bf16.msra.mxu0 %v4716_v57 }
 0x4b5   :  { %2169 = vmatprep.subr.bf16.mxu1 %v4720_v25  ;;  %2210 = vmatprep.subr.bf16.mxu0 %v4722_v27 }
 0x4b8   :  { %2170 = vmatpush1.bf16.msra.mxu1 %v4726_v29  ;;  %2211 = vmatpush1.bf16.msra.mxu0 %v4728_v21 }
 0x4b9   :  { %2171 = vmatprep.subr.bf16.mxu1 %v4732_v22  ;;  %2212 = vmatprep.subr.bf16.mxu0 %v4734_v38 }
 0x4bc   :  { %2172 = vmatpush1.bf16.msra.mxu1 %v4738_v10  ;;  %2213 = vmatpush1.bf16.msra.mxu0 %v4740_v16 }
 0x4bd   :  { %2173 = vmatprep.subr.bf16.mxu1 %v4744_v33  ;;  %2214 = vmatprep.subr.bf16.mxu0 %v4746_v20 }
 0x4c0   :  { %2174 = vmatpush1.bf16.msra.mxu1 %v4750_v12  ;;  %2215 = vmatpush1.bf16.msra.mxu0 %v4752_v15 }
 0x4c1   :  { %2175 = vmatprep.subr.bf16.mxu1 %v4756_v46  ;;  %2216 = vmatprep.subr.bf16.mxu0 %v4758_v54 }
 0x4c4   :  { %2176 = vmatpush1.bf16.msra.mxu1 %v4762_v53  ;;  %2217 = vmatpush1.bf16.msra.mxu0 %v4764_v55 }
 0x4c5   :  { %2177 = vmatprep.subr.bf16.mxu1 %v4768_v56  ;;  %2218 = vmatprep.subr.bf16.mxu0 %v4770_v52 }
 0x4c8   :  { %2178 = vmatpush1.bf16.msra.mxu1 %v4774_v51  ;;  %2219 = vmatpush1.bf16.msra.mxu0 %v4776_v60 }
 0x4c9   :  { %2179 = vmatprep.subr.bf16.mxu1 %v4780_v59  ;;  %2220 = vmatprep.subr.bf16.mxu0 %v4782_v50  ;;  %v1877_v50 = vrot.slane %v5504_v42, 4 }
 0x4cc   :  { %2180 = vmatpush1.bf16.msra.mxu1 %v4786_v49  ;;  %2221 = vmatpush1.bf16.msra.mxu0 %v4788_v58 }
 0x4cd   :  { %2181 = vmatprep.subr.bf16.mxu1 %v4790_v61  ;;  %2222 = vmatprep.subr.bf16.mxu0 %v4792_v62 }
 0x4d0   :  { %2182 = vmatpush1.bf16.msra.mxu1 %v4798_v63  ;;  %2223 = vmatpush1.bf16.msra.mxu0 %v4800_v0 }
 0x4d1   :  { %2183 = vmatprep.subr.bf16.mxu1 %v4802_v43  ;;  %2224 = vmatprep.subr.bf16.mxu0 %v4804_v44 }
 0x4d4   :  { %2184 = vmatpush1.bf16.msra.mxu1 %v4810_v1  ;;  %2225 = vmatpush1.bf16.msra.mxu0 %v4812_v4  ;;  %v1882_v4 = vsel %vm1481_vm4, %v1874_v24, %v5531_v8  ;;  %v1885_v24 = vsel %vm1481_vm4, %v1877_v50, %v5534_v47 }
 0x4d5   :  { %2185 = vmatprep.subr.bf16.mxu1 %v4814_v5  ;;  %2226 = vmatprep.subr.bf16.mxu0 %v4816_v7  ;;  %v1875_v7 = vrot.slane %v5532_v13, 4 }
 0x4d7   :  { %v1883_v44 = vsel %vm1481_vm4, %v1875_v7, %v5533_v17  ;;  %v1876_v7 = vrot.slane %v5506_v41, 4 }
 0x4d8   :  { %2186 = vmatpush1.bf16.msra.mxu1 %v4822_v9  ;;  %2227 = vmatpush1.bf16.msra.mxu0 %v4824_v14 }
 0x4d9   :  { %2354 = vmatprep.subr.bf16.mxu1 %v4828_v18  ;;  %2395 = vmatprep.subr.bf16.mxu0 %v4830_v23 }
 0x56e   :  { %v1986_v0 = vpop.f32.mrb[16].mxu1  ;;  %v2027_v14 = vpop.f32.mrb[20].mxu0 }
 0x56f   :  { %v2034_v62 = vadd.f32 %v1986_v0, %v1882_v4  ;;  %v1988_v58 = vpop.f32.mrb[17].mxu1  ;;  %v2029_v60 = vpop.f32.mrb[21].mxu0  ;;  %v1884_v0 = vsel %vm1481_vm4, %v1876_v7, %v5505_v34 }
 0x570   :  { %v2035_v52 = vadd.f32 %v1988_v58, %v1883_v44  ;;  %v1990_v55 = vpop.f32.mrb[18].mxu1  ;;  %v2031_v23 = vpop.f32.mrb[22].mxu0  ;;  %v2037_v17 = vadd.f32 %v2029_v60, %v1885_v24  ;;  %v2036_v42 = vadd.f32 %v2027_v14, %v1884_v0 }
 0x571   :  { %v3291_v54 = vmul.f32 -1.442695, %v2034_v62  ;;  %v1991_v6 = vpop.f32.mrb[19].mxu1  ;;  %v2032_v15 = vpop.f32.mrb[23].mxu0 }
 0x572   :  { %v3292_v13 = vmul.f32 -1.442695, %v2035_v52  ;;  %v3293_v4 = vmul.f32 -1.442695, %v2037_v17 }
 0x573   :  { %3413 = vpow2.f32 %v3291_v54 }
 0x574   :  { %3415 = vpow2.f32 %v3292_v13 }
 0x575   :  { %3417 = vpow2.f32 %v3293_v4 }
 0x576   :  { %3419 = vtanh.f32 %v2036_v42 }
 0x57d   :  { %v3414_v58 = vpop.eup %3413 }
 0x57e   :  { %v3416_v55 = vpop.eup %3415  ;;  %v2041_v44 = vadd.f32 1.0, %v3414_v58 }
 0x57f   :  { %v2047_v6 = vadd.f32 1.0, %v3416_v55  ;;  %v3418_v15 = vpop.eup %3417  ;;  %v4852_v55 = vld [vmem:[#allocation2] sm:$0xff] }
 0x580   :  { %3421 = vrcp.f32 %v2041_v44  ;;  %v3420_v54 = vpop.eup %3419  ;;  %v2054_v13 = vadd.f32 1.0, %v3418_v15  ;;  %v4856_v44 = vld [vmem:[#allocation2 + $0x28] sm:$0xff]  ;;  %v4864_v15 = vld [vmem:[#allocation2 + $0x20] sm:$0xff] }
 0x581   :  { %3423 = vrcp.f32 %v2047_v6  ;;  %v4858_v6 = vld [vmem:[#allocation2 + $0x38] sm:$0xff] }
 0x582   :  { %3425 = vrcp.f32 %v2054_v13  ;;  %v4878_v13 = vld [vmem:[#allocation2 + $0x50] sm:$0xff] }
 0x58a   :  { %v3422_v52 = vpop.eup %3421 }
 0x58b   :  { %v3424_v50 = vpop.eup %3423  ;;  %v2058_v62 = vmul.f32 %v3422_v52, %v3420_v54  ;;  %v4866_v54 = vld [vmem:[#allocation2 + $0x30] sm:$0xff]  ;;  %v4868_v52 = vld [vmem:[#allocation2 + $0x48] sm:$0xff] }
 0x58c   :  { %v2057_v60 = vmul.f32 %v3424_v50, %v4661_v2  ;;  %v3426_v17 = vpop.eup %3425  ;;  %v4854_v2 = vld [vmem:[#allocation2 + $0x10] sm:$0xff]  ;;  %v4870_v50 = vld [vmem:[#allocation2 + $0x58] sm:$0xff] }
 0x58e   :  { %v4847_v23 = vadd.f32 %v2058_v62, %v2057_v60  ;;  %v4876_v62 = vld [vmem:[#allocation2 + $0x40] sm:$0xff]  ;;  %v4909_v60 = vld [vmem:[#allocation2 + $0x78] sm:$0xff] }
 0x590   :  { %3427 = vtanh.f32 %v4847_v23 }
 0x59a   :  { %v3428_v14 = vpop.eup %3427 }
 0x59b   :  { %v2061_v24 = vmul.f32 %v3428_v14, %v3426_v17  ;;  %v4912_v17 = vld [vmem:[#allocation2 + $0x70] sm:$0xff]  ;;  %v5562_v14 = vld [vmem:[#allocation44_spill] sm:$0xff] }
 0x59d   :  { %v2063_v42 = vrot.slane %v2061_v24, 4  ;;  %2066 = vst [vmem:[#allocation4 + $0x18] sm:$0xc] %v2061_v24  ;;  %v2068_v7 = vmul.f32 %v5507_v37, %v2061_v24  ;;  %v2067_v0 = vmul.f32 %v5508_v26, %v2061_v24  ;;  %v5563_v24 = vld [vmem:[#allocation30_spill] sm:$0xff] }
 0x59f   :  { %2065 = vst [vmem:[#allocation4] sm:$0x30] %v2063_v42  ;;  %v2090_v4 = vpack.c.bf16 %v2068_v7, %v2068_v7  ;;  %v2089_v58 = vpack.c.bf16 %v2067_v0, %v2067_v0  ;;  %v5564_v42 = vld [vmem:[#allocation49_spill] sm:$0xff]  ;;  %v5565_v7 = vld [vmem:[#allocation52_spill] sm:$0xff] }
 0x5a0   :  { %v5566_v0 = vld [vmem:[#allocation53_spill] sm:$0xff] }
 0x5a1   :  { %2187 = vmatprep.mubr.bf16.mxu1 %v2090_v4  ;;  %2228 = vmatprep.mubr.bf16.mxu0 %v2090_v4  ;;  %v5567_v4 = vld [vmem:[#allocation56_spill] sm:$0xff] }
 0x5a2   :  { %2188 = vmatmul.mubr.bf16.vlgmr.msra.gmra.mrb[20].mxu1 %v2089_v58  ;;  %2229 = vmatmul.mubr.bf16.vlgmr.msra.gmra.mrb[24].mxu0 %v2089_v58  ;;  %v5568_v58 = vld [vmem:[#allocation57_spill] sm:$0xff] }
 0x5a3   :  { %2355 = vmatpush1.bf16.msra.mxu1 %v4852_v55  ;;  %2396 = vmatpush1.bf16.msra.mxu0 %v4854_v2 }
 0x5a4   :  { %2356 = vmatprep.subr.bf16.mxu1 %v4856_v44  ;;  %2397 = vmatprep.subr.bf16.mxu0 %v4858_v6 }
 0x5a7   :  { %2357 = vmatpush1.bf16.msra.mxu1 %v4864_v15  ;;  %2398 = vmatpush1.bf16.msra.mxu0 %v4866_v54 }
 0x5a8   :  { %2358 = vmatprep.subr.bf16.mxu1 %v4868_v52  ;;  %2399 = vmatprep.subr.bf16.mxu0 %v4870_v50 }
 0x5ab   :  { %2359 = vmatpush1.bf16.msra.mxu1 %v4876_v62  ;;  %2400 = vmatpush1.bf16.msra.mxu0 %v4878_v13 }
 0x5ac   :  { %2360 = vmatprep.subr.bf16.mxu1 %v4678_v11  ;;  %2401 = vmatprep.subr.bf16.mxu0 %v4909_v60 }
 0x5af   :  { %2361 = vmatpush1.bf16.msra.mxu1 %v4681_v28  ;;  %2402 = vmatpush1.bf16.msra.mxu0 %v4912_v17 }
 0x5b0   :  { %2362 = vmatprep.subr.bf16.mxu1 %v4684_v30  ;;  %2403 = vmatprep.subr.bf16.mxu0 %v4686_v31 }
 0x5b3   :  { %2363 = vmatpush1.bf16.msra.mxu1 %v4690_v32  ;;  %2404 = vmatpush1.bf16.msra.mxu0 %v4692_v35 }
 0x5b4   :  { %2364 = vmatprep.subr.bf16.mxu1 %v4696_v36  ;;  %2405 = vmatprep.subr.bf16.mxu0 %v4698_v39 }
 0x5b7   :  { %2365 = vmatpush1.bf16.msra.mxu1 %v4702_v40  ;;  %2406 = vmatpush1.bf16.msra.mxu0 %v4704_v45 }
 0x5b8   :  { %2366 = vmatprep.subr.bf16.mxu1 %v4708_v48  ;;  %2407 = vmatprep.subr.bf16.mxu0 %v4710_v3 }
 0x5bb   :  { %2367 = vmatpush1.bf16.msra.mxu1 %v4714_v19  ;;  %2408 = vmatpush1.bf16.msra.mxu0 %v4716_v57 }
 0x5bc   :  { %2368 = vmatprep.subr.bf16.mxu1 %v4720_v25  ;;  %2409 = vmatprep.subr.bf16.mxu0 %v4722_v27 }
 0x5bf   :  { %2369 = vmatpush1.bf16.msra.mxu1 %v4726_v29  ;;  %2410 = vmatpush1.bf16.msra.mxu0 %v4728_v21 }
 0x5c0   :  { %2370 = vmatprep.subr.bf16.mxu1 %v4732_v22  ;;  %2411 = vmatprep.subr.bf16.mxu0 %v4734_v38 }
 0x5c3   :  { %2371 = vmatpush1.bf16.msra.mxu1 %v4738_v10  ;;  %2412 = vmatpush1.bf16.msra.mxu0 %v4740_v16 }
 0x5c4   :  { %2372 = vmatprep.subr.bf16.mxu1 %v4744_v33  ;;  %2413 = vmatprep.subr.bf16.mxu0 %v4746_v20 }
 0x5c7   :  { %2373 = vmatpush1.bf16.msra.mxu1 %v4750_v12  ;;  %2414 = vmatpush1.bf16.msra.mxu0 %v5562_v14 }
 0x5c8   :  { %2374 = vmatprep.subr.bf16.mxu1 %v4756_v46  ;;  %2415 = vmatprep.subr.bf16.mxu0 %v5563_v24 }
 0x5cb   :  { %2375 = vmatpush1.bf16.msra.mxu1 %v4762_v53  ;;  %2416 = vmatpush1.bf16.msra.mxu0 %v5564_v42  ;;  %v5579_v42 = vld [vmem:[#allocation34_spill] sm:$0xff] }
 0x5cc   :  { %2376 = vmatprep.subr.bf16.mxu1 %v4768_v56  ;;  %2417 = vmatprep.subr.bf16.mxu0 %v5565_v7 }
 0x5cf   :  { %2377 = vmatpush1.bf16.msra.mxu1 %v4774_v51  ;;  %2418 = vmatpush1.bf16.msra.mxu0 %v5566_v0  ;;  %v5577_v0 = vld [vmem:[#allocation33_spill] sm:$0xff] }
 0x5d0   :  { %2378 = vmatprep.subr.bf16.mxu1 %v4780_v59  ;;  %2419 = vmatprep.subr.bf16.mxu0 %v5567_v4  ;;  %v2077_v4 = vrot.slane %v5531_v8, 6  ;;  %v5578_v51 = vld [vmem:[#allocation45_spill] sm:$0xff] }
 0x5d3   :  { %2379 = vmatpush1.bf16.msra.mxu1 %v4786_v49  ;;  %2420 = vmatpush1.bf16.msra.mxu0 %v5568_v58  ;;  %v5576_v49 = vld [vmem:[#allocation31_spill] sm:$0xff]  ;;  %v2070_v58 = vrot.slane %v5577_v0, 6 }
 0x5d4   :  { %2380 = vmatprep.subr.bf16.mxu1 %v4790_v61  ;;  %v5575_v61 = vld [vmem:[#allocation46_spill] sm:$0xff]  ;;  %v2069_v59 = vrot.slane %v5576_v49, 6 }
 0x5d7   :  { %2381 = vmatpush1.bf16.msra.mxu1 %v4798_v63  ;;  %v5574_v63 = vld [vmem:[#allocation48_spill] sm:$0xff] }
 0x5d8   :  { %2382 = vmatprep.subr.bf16.mxu1 %v4802_v43  ;;  %v5573_v43 = vld [vmem:[#allocation67_spill] sm:$0xff] }
 0x5db   :  { %2383 = vmatpush1.bf16.msra.mxu1 %v4810_v1  ;;  %v5572_v1 = vld [vmem:[#allocation65_spill] sm:$0xff] }
 0x5dc   :  { %2384 = vmatprep.subr.bf16.mxu1 %v4814_v5  ;;  %v5571_v5 = vld [vmem:[#allocation64_spill] sm:$0xff] }
 0x5df   :  { %2385 = vmatpush1.bf16.msra.mxu1 %v4822_v9  ;;  %v5570_v9 = vld [vmem:[#allocation61_spill] sm:$0xff] }
 0x5e0   :  { %2561 = vmatprep.subr.bf16.mxu1 %v4828_v18  ;;  %v5569_v18 = vld [vmem:[#allocation60_spill] sm:$0xff] }
 0x5e1   :  { %2421 = vmatprep.subr.bf16.mxu0 %v5569_v18  ;;  %v2078_v18 = vrot.slane %v5578_v51, 6 }
 0x5e2   :  { %2422 = vmatpush1.bf16.msra.mxu0 %v5570_v9  ;;  %v2085_v9 = vsel %vm1481_vm4, %v2069_v59, %v2077_v4 }
 0x5e3   :  { %2423 = vmatprep.subr.bf16.mxu0 %v5571_v5  ;;  %v2086_v5 = vsel %vm1481_vm4, %v2070_v58, %v2078_v18  ;;  %v2071_v18 = vrot.slane %v5506_v41, 6 }
 0x5e6   :  { %2424 = vmatpush1.bf16.msra.mxu0 %v5572_v1 }
 0x5e7   :  { %2425 = vmatprep.subr.bf16.mxu0 %v5573_v43 }
 0x5ea   :  { %2426 = vmatpush1.bf16.msra.mxu0 %v5574_v63  ;;  %v2072_v63 = vrot.slane %v5579_v42, 6 }
 0x5eb   :  { %2602 = vmatprep.subr.bf16.mxu0 %v5575_v61  ;;  %v2080_v61 = vrot.slane %v5534_v47, 6 }
 0x5ed   :  { %v2088_v59 = vsel %vm1481_vm4, %v2072_v63, %v2080_v61 }
 0x675   :  { %v2189_v7 = vpop.f32.mrb[20].mxu1  ;;  %v2230_v1 = vpop.f32.mrb[24].mxu0 }
 0x676   :  { %v2237_v56 = vadd.f32 %v2189_v7, %v2085_v9  ;;  %v2191_v43 = vpop.f32.mrb[21].mxu1  ;;  %v2232_v53 = vpop.f32.mrb[25].mxu0  ;;  %v2079_v9 = vrot.slane %v5505_v34, 6 }
 0x677   :  { %v2238_v49 = vadd.f32 %v2191_v43, %v2086_v5  ;;  %v2193_v24 = vpop.f32.mrb[22].mxu1  ;;  %v2234_v8 = vpop.f32.mrb[26].mxu0  ;;  %v2240_v7 = vadd.f32 %v2232_v53, %v2088_v59 }
 0x678   :  { %v3294_v46 = vmul.f32 -1.442695, %v2237_v56  ;;  %v2194_v0 = vpop.f32.mrb[23].mxu1  ;;  %v2235_v14 = vpop.f32.mrb[27].mxu0  ;;  %v2087_v42 = vsel %vm1481_vm4, %v2071_v18, %v2079_v9 }
 0x679   :  { %v3295_v51 = vmul.f32 -1.442695, %v2238_v49  ;;  %v3296_v47 = vmul.f32 -1.442695, %v2240_v7  ;;  %v2239_v4 = vadd.f32 %v2230_v1, %v2087_v42  ;;  %v5606_v7 = vld [vmem:[#allocation46_spill] sm:$0xff]  ;;  %v5607_v42 = vld [vmem:[#allocation39_spill] sm:$0xff] }
 0x67a   :  { %3429 = vpow2.f32 %v3294_v46 }
 0x67b   :  { %3431 = vpow2.f32 %v3295_v51 }
 0x67c   :  { %3433 = vpow2.f32 %v3296_v47  ;;  %v2276_v47 = vrot.slane %v5607_v42, 4 }
 0x67d   :  { %3435 = vtanh.f32 %v2239_v4  ;;  %v5608_v4 = vld [vmem:[#allocation41_spill] sm:$0xff] }
 0x684   :  { %v3430_v43 = vpop.eup %3429 }
 0x685   :  { %v3432_v5 = vpop.eup %3431  ;;  %v2244_v24 = vadd.f32 1.0, %v3430_v43  ;;  %v2277_v43 = vrot.slane %v5608_v4, 4 }
 0x686   :  { %v2250_v56 = vadd.f32 1.0, %v3432_v5  ;;  %v3434_v46 = vpop.eup %3433  ;;  %v5609_v5 = vld [vmem:[#allocation35_spill] sm:$0xff] }
 0x687   :  { %3437 = vrcp.f32 %v2244_v24  ;;  %v3436_v61 = vpop.eup %3435  ;;  %v2257_v34 = vadd.f32 1.0, %v3434_v46  ;;  %v2284_v24 = vsel %vm1481_vm4, %v5609_v5, %v2276_v47 }
 0x688   :  { %3439 = vrcp.f32 %v2250_v56  ;;  %v5610_v56 = vld [vmem:[#allocation37_spill] sm:$0xff] }
 0x689   :  { %3441 = vrcp.f32 %v2257_v34  ;;  %v2285_v46 = vsel %vm1481_vm4, %v5610_v56, %v2277_v43  ;;  %v5611_v34 = vld [vmem:[#allocation42_spill] sm:$0xff] }
 0x691   :  { %v3438_v63 = vpop.eup %3437 }
 0x692   :  { %v3440_v41 = vpop.eup %3439  ;;  %v2261_v14 = vmul.f32 %v3438_v63, %v3436_v61 }
 0x693   :  { %v2260_v53 = vmul.f32 %v3440_v41, %v4847_v23  ;;  %v3442_v1 = vpop.eup %3441  ;;  %v5605_v23 = vld [vmem:[#allocation43_spill] sm:$0xff] }
 0x695   :  { %v4953_v58 = vadd.f32 %v2261_v14, %v2260_v53  ;;  %v2279_v53 = vrot.slane %v5611_v34, 4 }
 0x697   :  { %3443 = vtanh.f32 %v4953_v58 }
 0x6a1   :  { %v3444_v49 = vpop.eup %3443 }
 0x6a2   :  { %v2264_v8 = vmul.f32 %v3444_v49, %v3442_v1 }
 0x6a4   :  { %v2266_v0 = vrot.slane %v2264_v8, 2  ;;  %v2271_v51 = vmul.f32 %v5507_v37, %v2264_v8  ;;  %v2270_v59 = vmul.f32 %v5508_v26, %v2264_v8 }
 0x6a6   :  { %2268 = vst [vmem:[#allocation4 + $0x18] ss:$-20 sps:$4 sm:$0xc3] %v2266_v0   ;;  %v2289_v18 = vpack.c.bf16 %v2271_v51, %v2271_v51  ;;  %v2288_v9 = vpack.c.bf16 %v2270_v59, %v2270_v59 }
 0x6a8   :  { %2386 = vmatprep.mubr.bf16.mxu1 %v2289_v18  ;;  %2427 = vmatprep.mubr.bf16.mxu0 %v2289_v18 }
 0x6a9   :  { %2387 = vmatmul.mubr.bf16.vlgmr.msra.gmra.mrb[24].mxu1 %v2288_v9  ;;  %2428 = vmatmul.mubr.bf16.vlgmr.msra.gmra.mrb[28].mxu0 %v2288_v9 }
 0x6aa   :  { %2562 = vmatpush1.bf16.msra.mxu1 %v4852_v55  ;;  %2603 = vmatpush1.bf16.msra.mxu0 %v4854_v2 }
 0x6ab   :  { %2563 = vmatprep.subr.bf16.mxu1 %v4856_v44  ;;  %2604 = vmatprep.subr.bf16.mxu0 %v4858_v6 }
 0x6ae   :  { %2564 = vmatpush1.bf16.msra.mxu1 %v4864_v15  ;;  %2605 = vmatpush1.bf16.msra.mxu0 %v4866_v54 }
 0x6af   :  { %2565 = vmatprep.subr.bf16.mxu1 %v4868_v52  ;;  %2606 = vmatprep.subr.bf16.mxu0 %v4870_v50 }
 0x6b2   :  { %2566 = vmatpush1.bf16.msra.mxu1 %v4876_v62  ;;  %2607 = vmatpush1.bf16.msra.mxu0 %v4878_v13 }
 0x6b3   :  { %2567 = vmatprep.subr.bf16.mxu1 %v4678_v11  ;;  %2608 = vmatprep.subr.bf16.mxu0 %v4909_v60  ;;  %v5580_v11 = vld [vmem:[#allocation44_spill] sm:$0xff] }
 0x6b6   :  { %2568 = vmatpush1.bf16.msra.mxu1 %v4681_v28  ;;  %2609 = vmatpush1.bf16.msra.mxu0 %v4912_v17  ;;  %v5581_v28 = vld [vmem:[#allocation32_spill] sm:$0xff] }
 0x6b7   :  { %2569 = vmatprep.subr.bf16.mxu1 %v4684_v30  ;;  %2610 = vmatprep.subr.bf16.mxu0 %v4686_v31  ;;  %v5582_v30 = vld [vmem:[#allocation30_spill] sm:$0xff]  ;;  %v5583_v31 = vld [vmem:[#allocation29_spill] sm:$0xff] }
 0x6ba   :  { %2570 = vmatpush1.bf16.msra.mxu1 %v4690_v32  ;;  %2611 = vmatpush1.bf16.msra.mxu0 %v4692_v35  ;;  %v5584_v32 = vld [vmem:[#allocation49_spill] sm:$0xff]  ;;  %v5585_v35 = vld [vmem:[#allocation50_spill] sm:$0xff] }
 0x6bb   :  { %2571 = vmatprep.subr.bf16.mxu1 %v4696_v36  ;;  %2612 = vmatprep.subr.bf16.mxu0 %v4698_v39  ;;  %v5586_v36 = vld [vmem:[#allocation52_spill] sm:$0xff]  ;;  %v5587_v39 = vld [vmem:[#allocation51_spill] sm:$0xff] }
 0x6be   :  { %2572 = vmatpush1.bf16.msra.mxu1 %v4702_v40  ;;  %2613 = vmatpush1.bf16.msra.mxu0 %v4704_v45  ;;  %v5588_v40 = vld [vmem:[#allocation53_spill] sm:$0xff]  ;;  %v5589_v45 = vld [vmem:[#allocation54_spill] sm:$0xff] }
 0x6bf   :  { %2573 = vmatprep.subr.bf16.mxu1 %v4708_v48  ;;  %2614 = vmatprep.subr.bf16.mxu0 %v4710_v3  ;;  %v5590_v48 = vld [vmem:[#allocation56_spill] sm:$0xff]  ;;  %v5591_v3 = vld [vmem:[#allocation55_spill] sm:$0xff] }
 0x6c2   :  { %2574 = vmatpush1.bf16.msra.mxu1 %v4714_v19  ;;  %2615 = vmatpush1.bf16.msra.mxu0 %v4716_v57  ;;  %v5592_v19 = vld [vmem:[#allocation57_spill] sm:$0xff]  ;;  %v5593_v57 = vld [vmem:[#allocation58_spill] sm:$0xff] }
 0x6c3   :  { %2575 = vmatprep.subr.bf16.mxu1 %v4720_v25  ;;  %2616 = vmatprep.subr.bf16.mxu0 %v4722_v27  ;;  %v5594_v25 = vld [vmem:[#allocation60_spill] sm:$0xff]  ;;  %v5595_v27 = vld [vmem:[#allocation59_spill] sm:$0xff] }
 0x6c6   :  { %2576 = vmatpush1.bf16.msra.mxu1 %v4726_v29  ;;  %2617 = vmatpush1.bf16.msra.mxu0 %v4728_v21  ;;  %v5596_v29 = vld [vmem:[#allocation61_spill] sm:$0xff]  ;;  %v5597_v21 = vld [vmem:[#allocation62_spill] sm:$0xff] }
 0x6c7   :  { %2577 = vmatprep.subr.bf16.mxu1 %v4732_v22  ;;  %2618 = vmatprep.subr.bf16.mxu0 %v4734_v38  ;;  %v5598_v22 = vld [vmem:[#allocation64_spill] sm:$0xff]  ;;  %v5599_v38 = vld [vmem:[#allocation63_spill] sm:$0xff] }
 0x6ca   :  { %2578 = vmatpush1.bf16.msra.mxu1 %v4738_v10  ;;  %2619 = vmatpush1.bf16.msra.mxu0 %v4740_v16  ;;  %v5600_v10 = vld [vmem:[#allocation65_spill] sm:$0xff]  ;;  %v5601_v16 = vld [vmem:[#allocation66_spill] sm:$0xff] }
 0x6cb   :  { %2579 = vmatprep.subr.bf16.mxu1 %v4744_v33  ;;  %2620 = vmatprep.subr.bf16.mxu0 %v4746_v20  ;;  %v5602_v33 = vld [vmem:[#allocation67_spill] sm:$0xff] }
 0x6cc   :  { %v5603_v20 = vld [vmem:[#allocation47_spill] sm:$0xff] }
 0x6ce   :  { %2580 = vmatpush1.bf16.msra.mxu1 %v4750_v12  ;;  %2621 = vmatpush1.bf16.msra.mxu0 %v5580_v11  ;;  %v5604_v12 = vld [vmem:[#allocation48_spill] sm:$0xff]  ;;  %v5612_v11 = vld [vmem:[#allocation38_spill] sm:$0xff] }
 0x6cf   :  { %2581 = vmatprep.subr.bf16.mxu1 %v5581_v28  ;;  %2622 = vmatprep.subr.bf16.mxu0 %v5582_v30  ;;  %v2287_v28 = vsel %vm1481_vm4, %v5612_v11, %v2279_v53  ;;  %v5613_v30 = vld [vmem:[#allocation40_spill] sm:$0xff]  ;;  %v5108_v53 = vld [vmem:[#allocation2 + $0x118] sm:$0xff] }
 0x6d2   :  { %2582 = vmatpush1.bf16.msra.mxu1 %v5583_v31  ;;  %2623 = vmatpush1.bf16.msra.mxu0 %v5584_v32  ;;  %v2278_v31 = vrot.slane %v5613_v30, 4 }
 0x6d3   :  { %2583 = vmatprep.subr.bf16.mxu1 %v5585_v35  ;;  %2624 = vmatprep.subr.bf16.mxu0 %v5586_v36  ;;  %v5614_v35 = vld [vmem:[#allocation36_spill] sm:$0xff] }
 0x6d4   :  { %v2286_v36 = vsel %vm1481_vm4, %v5614_v35, %v2278_v31  ;;  %v5138_v31 = vld [vmem:[#allocation2 + $0x150] sm:$0xff] }
 0x6d5   :  { %5617 = vst [vmem:[#allocation45_spill] sm:$0xff] %v5138_v31 }
 0x6d6   :  { %2584 = vmatpush1.bf16.msra.mxu1 %v5587_v39  ;;  %2625 = vmatpush1.bf16.msra.mxu0 %v5588_v40 }
 0x6d7   :  { %2585 = vmatprep.subr.bf16.mxu1 %v5589_v45  ;;  %2626 = vmatprep.subr.bf16.mxu0 %v5590_v48 }
 0x6da   :  { %2586 = vmatpush1.bf16.msra.mxu1 %v5591_v3  ;;  %2627 = vmatpush1.bf16.msra.mxu0 %v5592_v19 }
 0x6db   :  { %2587 = vmatprep.subr.bf16.mxu1 %v5593_v57  ;;  %2628 = vmatprep.subr.bf16.mxu0 %v5594_v25 }
 0x6de   :  { %2588 = vmatpush1.bf16.msra.mxu1 %v5595_v27  ;;  %2629 = vmatpush1.bf16.msra.mxu0 %v5596_v29 }
 0x6df   :  { %2589 = vmatprep.subr.bf16.mxu1 %v5597_v21  ;;  %2630 = vmatprep.subr.bf16.mxu0 %v5598_v22 }
 0x6e2   :  { %2590 = vmatpush1.bf16.msra.mxu1 %v5599_v38  ;;  %2631 = vmatpush1.bf16.msra.mxu0 %v5600_v10 }
 0x6e3   :  { %2591 = vmatprep.subr.bf16.mxu1 %v5601_v16  ;;  %2632 = vmatprep.subr.bf16.mxu0 %v5602_v33 }
 0x6e6   :  { %2592 = vmatpush1.bf16.msra.mxu1 %v5603_v20  ;;  %2633 = vmatpush1.bf16.msra.mxu0 %v5604_v12 }
 0x6e7   :  { %2756 = vmatprep.subr.bf16.mxu1 %v5605_v23  ;;  %2797 = vmatprep.subr.bf16.mxu0 %v5606_v7 }
 0x77c   :  { %v2388_v61 = vpop.f32.mrb[24].mxu1  ;;  %v2429_v63 = vpop.f32.mrb[28].mxu0 }
 0x77d   :  { %v2436_v41 = vadd.f32 %v2388_v61, %v2284_v24  ;;  %v2390_v14 = vpop.f32.mrb[25].mxu1  ;;  %v2431_v1 = vpop.f32.mrb[29].mxu0  ;;  %v2438_v40 = vadd.f32 %v2429_v63, %v2286_v36  ;;  %v5090_v24 = vld [vmem:[#allocation2 + $0xd0] sm:$0xff]  ;;  %v5096_v61 = vld [vmem:[#allocation2 + $0xf8] sm:$0xff]  ;;  %v5100_v63 = vld [vmem:[#allocation2 + $0xe0] sm:$0xff] }
 0x77e   :  { %v2437_v49 = vadd.f32 %v2390_v14, %v2285_v46  ;;  %v2392_v8 = vpop.f32.mrb[26].mxu1  ;;  %v2433_v0 = vpop.f32.mrb[30].mxu0  ;;  %v2439_v32 = vadd.f32 %v2431_v1, %v2287_v28  ;;  %v5094_v46 = vld [vmem:[#allocation2 + $0xe8] sm:$0xff]  ;;  %v5112_v1 = vld [vmem:[#allocation2 + $0x100] sm:$0xff]  ;;  %v5144_v36 = vld [vmem:[#allocation2 + $0x178] sm:$0xff] }
 0x77f   :  { %v3297_v51 = vmul.f32 -1.442695, %v2436_v41  ;;  %v2393_v59 = vpop.f32.mrb[27].mxu1  ;;  %v2434_v18 = vpop.f32.mrb[31].mxu0  ;;  %v5102_v41 = vld [vmem:[#allocation2 + $0xf0] sm:$0xff]  ;;  %v5106_v14 = vld [vmem:[#allocation2 + $0x108] sm:$0xff] }
 0x780   :  { %v3298_v9 = vmul.f32 -1.442695, %v2437_v49  ;;  %v3299_v39 = vmul.f32 -1.442695, %v2439_v32  ;;  %v5114_v49 = vld [vmem:[#allocation2 + $0x110] sm:$0xff]  ;;  %v5118_v8 = vld [vmem:[#allocation2 + $0x128] sm:$0xff] }
 0x781   :  { %3445 = vpow2.f32 %v3297_v51  ;;  %v5120_v0 = vld [vmem:[#allocation2 + $0x138] sm:$0xff]  ;;  %v5124_v51 = vld [vmem:[#allocation2 + $0x120] sm:$0xff]  ;;  %v5126_v59 = vld [vmem:[#allocation2 + $0x130] sm:$0xff]  ;;  %5618 = vst [vmem:[#allocation34_spill] sm:$0xff] %v5144_v36 }
 0x782   :  { %3447 = vpow2.f32 %v3298_v9  ;;  %5615 = vst [vmem:[#allocation31_spill] sm:$0xff] %v5126_v59  ;;  %v5130_v18 = vld [vmem:[#allocation2 + $0x148] sm:$0xff]  ;;  %v5132_v9 = vld [vmem:[#allocation2 + $0x158] sm:$0xff]  ;;  %v5136_v28 = vld [vmem:[#allocation2 + $0x140] sm:$0xff] }
 0x783   :  { %3449 = vpow2.f32 %v3299_v39  ;;  %5616 = vst [vmem:[#allocation33_spill] sm:$0xff] %v5132_v9  ;;  %v5142_v32 = vld [vmem:[#allocation2 + $0x168] sm:$0xff]  ;;  %v5148_v39 = vld [vmem:[#allocation2 + $0x160] sm:$0xff] }
 0x784   :  { %3451 = vtanh.f32 %v2438_v40  ;;  %v5150_v40 = vld [vmem:[#allocation2 + $0x170] sm:$0xff] }
 0x785   :  { %5619 = vst [vmem:[#allocation44_spill] sm:$0xff] %v5150_v40 }
 0x78b   :  { %v3446_v45 = vpop.eup %3445 }
 0x78c   :  { %v3448_v48 = vpop.eup %3447  ;;  %v2443_v3 = vadd.f32 1.0, %v3446_v45  ;;  %v5154_v45 = vld [vmem:[#allocation2 + $0x188] sm:$0xff] }
 0x78d   :  { %v2449_v19 = vadd.f32 1.0, %v3448_v48  ;;  %v3450_v57 = vpop.eup %3449  ;;  %v5156_v48 = vld [vmem:[#allocation2 + $0x198] sm:$0xff] }
 0x78e   :  { %3453 = vrcp.f32 %v2443_v3  ;;  %v3452_v25 = vpop.eup %3451  ;;  %v2456_v22 = vadd.f32 1.0, %v3450_v57  ;;  %5620 = vst [vmem:[#allocation32_spill] sm:$0xff] %v5156_v48  ;;  %v5160_v3 = vld [vmem:[#allocation2 + $0x180] sm:$0xff]  ;;  %v5164_v57 = vld [vmem:[#allocation2 + $0x1a8] sm:$0xff] }
 0x78f   :  { %3455 = vrcp.f32 %v2449_v19  ;;  %v5162_v19 = vld [vmem:[#allocation2 + $0x190] sm:$0xff] }
 0x790   :  { %3457 = vrcp.f32 %v2456_v22  ;;  %5621 = vst [vmem:[#allocation30_spill] sm:$0xff] %v5162_v19  ;;  %v5178_v22 = vld [vmem:[#allocation2 + $0x1d8] sm:$0xff] }
 0x791   :  { %5624 = vst [vmem:[#allocation50_spill] sm:$0xff] %v5178_v22 }
 0x798   :  { %v3454_v27 = vpop.eup %3453 }
 0x799   :  { %v3456_v29 = vpop.eup %3455  ;;  %v2460_v21 = vmul.f32 %v3454_v27, %v3452_v25  ;;  %v5166_v25 = vld [vmem:[#allocation2 + $0x1b8] sm:$0xff]  ;;  %v5172_v27 = vld [vmem:[#allocation2 + $0x1a0] sm:$0xff] }
 0x79a   :  { %v2459_v38 = vmul.f32 %v3456_v29, %v4953_v58  ;;  %v3458_v16 = vpop.eup %3457  ;;  %v5088_v58 = vld [vmem:[#allocation2 + $0xc0] sm:$0xff]  ;;  %5622 = vst [vmem:[#allocation29_spill] sm:$0xff] %v5166_v25  ;;  %v5174_v29 = vld [vmem:[#allocation2 + $0x1b0] sm:$0xff] }
 0x79b   :  { %5623 = vst [vmem:[#allocation49_spill] sm:$0xff] %v5174_v29 }
 0x79c   :  { %v5035_v10 = vadd.f32 %v2460_v21, %v2459_v38  ;;  %v5176_v21 = vld [vmem:[#allocation2 + $0x1c8] sm:$0xff]  ;;  %v5184_v38 = vld [vmem:[#allocation2 + $0x1c0] sm:$0xff] }
 0x79e   :  { %3459 = vtanh.f32 %v5035_v10 }
 0x7a8   :  { %v3460_v33 = vpop.eup %3459 }
 0x7a9   :  { %v2463_v20 = vmul.f32 %v3460_v33, %v3458_v16  ;;  %v5186_v16 = vld [vmem:[#allocation2 + $0x1d0] sm:$0xff]  ;;  %v5188_v33 = vld [vmem:[#allocation2 + $0x1e8] sm:$0xff] }
 0x7aa   :  { %5625 = vst [vmem:[#allocation52_spill] sm:$0xff] %v5186_v16 }
 0x7ab   :  { %2464 = vst [vmem:[#allocation4 + $0x10] sm:$0x3] %v2463_v20  ;;  %v2466_v12 = vrot.slane %v2463_v20, 4  ;;  %v2470_v23 = vmul.f32 %v5507_v37, %v2463_v20  ;;  %v2469_v7 = vmul.f32 %v5508_v26, %v2463_v20  ;;  %v5190_v20 = vld [vmem:[#allocation2 + $0x1f8] sm:$0xff] }
 0x7ac   :  { %5626 = vst [vmem:[#allocation51_spill] sm:$0xff] %v5190_v20 }
 0x7ad   :  { %2468 = vst [vmem:[#allocation4 + $0x8] sm:$0xc0] %v2466_v12  ;;  %v2496_v47 = vpack.c.bf16 %v2470_v23, %v2470_v23  ;;  %v2495_v43 = vpack.c.bf16 %v2469_v7, %v2469_v7  ;;  %v5196_v12 = vld [vmem:[#allocation2 + $0x1e0] sm:$0xff]  ;;  %v5198_v23 = vld [vmem:[#allocation2 + $0x1f0] sm:$0xff]  ;;  %v2896_v7 = vld [vmem:[#allocation2 + $0x8] sm:$0xff] }
 0x7ae   :  { %5627 = vst [vmem:[#allocation53_spill] sm:$0xff] %v5198_v23 }
 0x7af   :  { %2593 = vmatprep.mubr.bf16.mxu1 %v2496_v47  ;;  %2634 = vmatprep.mubr.bf16.mxu0 %v2496_v47  ;;  %v2898_v47 = vld [vmem:[#allocation2 + $0x18] sm:$0xff] }
 0x7b0   :  { %2594 = vmatmul.mubr.bf16.vlgmr.msra.gmra.mrb[28].mxu1 %v2495_v43  ;;  %2635 = vmatmul.mubr.bf16.vlgmr.msra.gmra.mrb[32].mxu0 %v2495_v43  ;;  %v2475_v43 = vrot.slane %v5609_v5, 2 }
 0x7b1   :  { %2757 = vmatpush1.bf16.msra.mxu1 %v4852_v55  ;;  %2798 = vmatpush1.bf16.msra.mxu0 %v4854_v2  ;;  %v5052_v55 = vld [vmem:[#allocation2 + $0x68] sm:$0xff]  ;;  %v5055_v2 = vld [vmem:[#allocation2 + $0x60] sm:$0xff] }
 0x7b2   :  { %2758 = vmatprep.subr.bf16.mxu1 %v4856_v44  ;;  %2799 = vmatprep.subr.bf16.mxu0 %v4858_v6  ;;  %v5058_v44 = vld [vmem:[#allocation2 + $0x88] sm:$0xff]  ;;  %v5060_v6 = vld [vmem:[#allocation2 + $0x98] sm:$0xff] }
 0x7b5   :  { %2759 = vmatpush1.bf16.msra.mxu1 %v4864_v15  ;;  %2800 = vmatpush1.bf16.msra.mxu0 %v4866_v54  ;;  %v5064_v15 = vld [vmem:[#allocation2 + $0x80] sm:$0xff]  ;;  %v5066_v54 = vld [vmem:[#allocation2 + $0x90] sm:$0xff] }
 0x7b6   :  { %2760 = vmatprep.subr.bf16.mxu1 %v4868_v52  ;;  %2801 = vmatprep.subr.bf16.mxu0 %v4870_v50  ;;  %v5070_v52 = vld [vmem:[#allocation2 + $0xa8] sm:$0xff]  ;;  %v5072_v50 = vld [vmem:[#allocation2 + $0xb8] sm:$0xff] }
 0x7b9   :  { %2761 = vmatpush1.bf16.msra.mxu1 %v4876_v62  ;;  %2802 = vmatpush1.bf16.msra.mxu0 %v4878_v13  ;;  %v5076_v62 = vld [vmem:[#allocation2 + $0xa0] sm:$0xff]  ;;  %v5078_v13 = vld [vmem:[#allocation2 + $0xb0] sm:$0xff] }
 0x7ba   :  { %2803 = vmatprep.subr.bf16.mxu0 %v4909_v60  ;;  %2762 = vmatprep.subr.bf16.mxu1 %v5052_v55  ;;  %v5082_v60 = vld [vmem:[#allocation2 + $0xc8] sm:$0xff] }
 0x7bd   :  { %2804 = vmatpush1.bf16.msra.mxu0 %v4912_v17  ;;  %2763 = vmatpush1.bf16.msra.mxu1 %v5055_v2  ;;  %v5084_v17 = vld [vmem:[#allocation2 + $0xd8] sm:$0xff] }
 0x7be   :  { %2764 = vmatprep.subr.bf16.mxu1 %v5058_v44  ;;  %2805 = vmatprep.subr.bf16.mxu0 %v5060_v6 }
 0x7c1   :  { %2765 = vmatpush1.bf16.msra.mxu1 %v5064_v15  ;;  %2806 = vmatpush1.bf16.msra.mxu0 %v5066_v54 }
 0x7c2   :  { %2766 = vmatprep.subr.bf16.mxu1 %v5070_v52  ;;  %2807 = vmatprep.subr.bf16.mxu0 %v5072_v50 }
 0x7c5   :  { %2767 = vmatpush1.bf16.msra.mxu1 %v5076_v62  ;;  %2808 = vmatpush1.bf16.msra.mxu0 %v5078_v13 }
 0x7c6   :  { %2768 = vmatprep.subr.bf16.mxu1 %v5082_v60  ;;  %2809 = vmatprep.subr.bf16.mxu0 %v5084_v17 }
 0x7c9   :  { %2769 = vmatpush1.bf16.msra.mxu1 %v5088_v58  ;;  %2810 = vmatpush1.bf16.msra.mxu0 %v5090_v24 }
 0x7ca   :  { %2770 = vmatprep.subr.bf16.mxu1 %v5094_v46  ;;  %2811 = vmatprep.subr.bf16.mxu0 %v5096_v61 }
 0x7cd   :  { %2771 = vmatpush1.bf16.msra.mxu1 %v5100_v63  ;;  %2812 = vmatpush1.bf16.msra.mxu0 %v5102_v41 }
 0x7ce   :  { %2772 = vmatprep.subr.bf16.mxu1 %v5106_v14  ;;  %2813 = vmatprep.subr.bf16.mxu0 %v5108_v53 }
 0x7d1   :  { %2773 = vmatpush1.bf16.msra.mxu1 %v5112_v1  ;;  %2814 = vmatpush1.bf16.msra.mxu0 %v5114_v49 }
 0x7d2   :  { %2774 = vmatprep.subr.bf16.mxu1 %v5118_v8  ;;  %2815 = vmatprep.subr.bf16.mxu0 %v5120_v0 }
 0x7d5   :  { %2775 = vmatpush1.bf16.msra.mxu1 %v5124_v51  ;;  %2816 = vmatpush1.bf16.msra.mxu0 %v5126_v59 }
 0x7d6   :  { %2776 = vmatprep.subr.bf16.mxu1 %v5130_v18  ;;  %2817 = vmatprep.subr.bf16.mxu0 %v5132_v9 }
 0x7d9   :  { %2777 = vmatpush1.bf16.msra.mxu1 %v5136_v28  ;;  %2818 = vmatpush1.bf16.msra.mxu0 %v5138_v31 }
 0x7da   :  { %2778 = vmatprep.subr.bf16.mxu1 %v5142_v32  ;;  %2819 = vmatprep.subr.bf16.mxu0 %v5144_v36  ;;  %v2478_v36 = vrot.slane %v5612_v11, 2 }
 0x7dd   :  { %2779 = vmatpush1.bf16.msra.mxu1 %v5148_v39  ;;  %2820 = vmatpush1.bf16.msra.mxu0 %v5150_v40 }
 0x7de   :  { %2780 = vmatprep.subr.bf16.mxu1 %v5154_v45  ;;  %2821 = vmatprep.subr.bf16.mxu0 %v5156_v48 }
 0x7e1   :  { %2781 = vmatpush1.bf16.msra.mxu1 %v5160_v3  ;;  %2822 = vmatpush1.bf16.msra.mxu0 %v5162_v19 }
 0x7e2   :  { %2782 = vmatprep.subr.bf16.mxu1 %v5164_v57  ;;  %2823 = vmatprep.subr.bf16.mxu0 %v5166_v25 }
 0x7e5   :  { %2783 = vmatpush1.bf16.msra.mxu1 %v5172_v27  ;;  %2824 = vmatpush1.bf16.msra.mxu0 %v5174_v29 }
 0x7e6   :  { %2784 = vmatprep.subr.bf16.mxu1 %v5176_v21  ;;  %2825 = vmatprep.subr.bf16.mxu0 %v5178_v22  ;;  %v2476_v22 = vrot.slane %v5610_v56, 2 }
 0x7e9   :  { %2785 = vmatpush1.bf16.msra.mxu1 %v5184_v38  ;;  %2826 = vmatpush1.bf16.msra.mxu0 %v5186_v16  ;;  %v2483_v16 = vrot.slane %v5607_v42, 2 }
 0x7ea   :  { %2786 = vmatprep.subr.bf16.mxu1 %v5188_v33  ;;  %2827 = vmatprep.subr.bf16.mxu0 %v5190_v20  ;;  %v2484_v20 = vrot.slane %v5608_v4, 2 }
 0x7eb   :  { %v2491_v29 = vsel %vm1481_vm4, %v2475_v43, %v2483_v16 }
 0x7ec   :  { %v2492_v25 = vsel %vm1481_vm4, %v2476_v22, %v2484_v20  ;;  %v2477_v22 = vrot.slane %v5614_v35, 2 }
 0x7ed   :  { %2787 = vmatpush1.bf16.msra.mxu1 %v5196_v12  ;;  %2828 = vmatpush1.bf16.msra.mxu0 %v5198_v23 }
 0x7ee   :  { %2959 = vmatprep.subr.bf16.mxu1 %v2896_v7  ;;  %3000 = vmatprep.subr.bf16.mxu0 %v2898_v47  ;;  %v2486_v7 = vrot.slane %v5611_v34, 2 }
 0x7f0   :  { %v2494_v16 = vsel %vm1481_vm4, %v2478_v36, %v2486_v7 }
 0x883   :  { %v2595_v19 = vpop.f32.mrb[28].mxu1  ;;  %v2636_v48 = vpop.f32.mrb[32].mxu0 }
 0x884   :  { %v2643_v40 = vadd.f32 %v2595_v19, %v2491_v29  ;;  %v2597_v23 = vpop.f32.mrb[29].mxu1  ;;  %v2638_v47 = vpop.f32.mrb[33].mxu0  ;;  %v2485_v19 = vrot.slane %v5613_v30, 2 }
 0x885   :  { %v2644_v5 = vadd.f32 %v2597_v23, %v2492_v25  ;;  %v2599_v31 = vpop.f32.mrb[30].mxu1  ;;  %v2640_v42 = vpop.f32.mrb[34].mxu0  ;;  %v2646_v29 = vadd.f32 %v2638_v47, %v2494_v16 }
 0x886   :  { %v3300_v9 = vmul.f32 -1.442695, %v2643_v40  ;;  %v2600_v56 = vpop.f32.mrb[31].mxu1  ;;  %v2641_v59 = vpop.f32.mrb[35].mxu0  ;;  %v2493_v20 = vsel %vm1481_vm4, %v2477_v22, %v2485_v19 }
 0x887   :  { %v3301_v4 = vmul.f32 -1.442695, %v2644_v5  ;;  %v3302_v43 = vmul.f32 -1.442695, %v2646_v29  ;;  %v2645_v34 = vadd.f32 %v2636_v48, %v2493_v20 }
 0x888   :  { %3461 = vpow2.f32 %v3300_v9 }
 0x889   :  { %3463 = vpow2.f32 %v3301_v4 }
 0x88a   :  { %3465 = vpow2.f32 %v3302_v43  ;;  %v2895_v43 = vld [vmem:[#allocation2] sm:$0xff] }
 0x88b   :  { %3467 = vtanh.f32 %v2645_v34 }
 0x892   :  { %v3462_v25 = vpop.eup %3461 }
 0x893   :  { %v3464_v31 = vpop.eup %3463  ;;  %v2650_v42 = vadd.f32 1.0, %v3462_v25  ;;  %v2897_v25 = vld [vmem:[#allocation2 + $0x10] sm:$0xff] }
 0x894   :  { %v2656_v56 = vadd.f32 1.0, %v3464_v31  ;;  %v3466_v5 = vpop.eup %3465  ;;  %v2902_v31 = vld [vmem:[#allocation2 + $0x38] sm:$0xff] }
 0x895   :  { %3469 = vrcp.f32 %v2650_v42  ;;  %v3468_v59 = vpop.eup %3467  ;;  %v2663_v23 = vadd.f32 1.0, %v3466_v5  ;;  %v2899_v42 = vld [vmem:[#allocation2 + $0x20] sm:$0xff]  ;;  %v2904_v5 = vld [vmem:[#allocation2 + $0x48] sm:$0xff] }
 0x896   :  { %3471 = vrcp.f32 %v2656_v56  ;;  %v2901_v56 = vld [vmem:[#allocation2 + $0x30] sm:$0xff] }
 0x897   :  { %3473 = vrcp.f32 %v2663_v23  ;;  %v2680_v23 = vrot.slane %v5614_v35, 4 }
 0x89f   :  { %v3470_v9 = vpop.eup %3469 }
 0x8a0   :  { %v3472_v36 = vpop.eup %3471  ;;  %v2667_v40 = vmul.f32 %v3470_v9, %v3468_v59  ;;  %v2906_v59 = vld [vmem:[#allocation2 + $0x58] sm:$0xff]  ;;  %v2903_v9 = vld [vmem:[#allocation2 + $0x40] sm:$0xff] }
 0x8a1   :  { %v2666_v4 = vmul.f32 %v3472_v36, %v5035_v10  ;;  %v3474_v48 = vpop.eup %3473  ;;  %v2900_v10 = vld [vmem:[#allocation2 + $0x28] sm:$0xff]  ;;  %v2905_v36 = vld [vmem:[#allocation2 + $0x50] sm:$0xff] }
 0x8a3   :  { %v5215_v7 = vadd.f32 %v2667_v40, %v2666_v4 }
 0x8a5   :  { %3475 = vtanh.f32 %v5215_v7 }
 0x8af   :  { %v3476_v47 = vpop.eup %3475 }
 0x8b0   :  { %v2670_v16 = vmul.f32 %v3476_v47, %v3474_v48  ;;  %v2688_v48 = vsel %vm1481_vm4, %v2680_v23, %v5613_v30 }
 0x8b2   :  { %v2672_v34 = vrot.slane %v2670_v16, 6  ;;  %v2677_v22 = vmul.f32 %v5507_v37, %v2670_v16  ;;  %v2676_v19 = vmul.f32 %v5508_v26, %v2670_v16 }
 0x8b4   :  { %2674 = vst [vmem:[#allocation4 + $0x10] ss:$-4 sps:$4 sm:$0x3c] %v2672_v34   ;;  %v2691_v29 = vpack.c.bf16 %v2677_v22, %v2677_v22  ;;  %v2690_v20 = vpack.c.bf16 %v2676_v19, %v2676_v19 }
 0x8b6   :  { %2788 = vmatprep.mubr.bf16.mxu1 %v2691_v29  ;;  %2829 = vmatprep.mubr.bf16.mxu0 %v2691_v29 }
 0x8b7   :  { %2789 = vmatmul.mubr.bf16.vlgmr.msra.gmra.mrb[32].mxu1 %v2690_v20  ;;  %2830 = vmatmul.mubr.bf16.vlgmr.msra.gmra.mrb[36].mxu0 %v2690_v20 }
 0x8b8   :  { %2960 = vmatpush1.bf16.msra.mxu1 %v2895_v43  ;;  %3001 = vmatpush1.bf16.msra.mxu0 %v2897_v25 }
 0x8b9   :  { %2961 = vmatprep.subr.bf16.mxu1 %v2900_v10  ;;  %3002 = vmatprep.subr.bf16.mxu0 %v2902_v31 }
 0x8bc   :  { %2962 = vmatpush1.bf16.msra.mxu1 %v2899_v42  ;;  %3003 = vmatpush1.bf16.msra.mxu0 %v2901_v56 }
 0x8bd   :  { %2963 = vmatprep.subr.bf16.mxu1 %v2904_v5  ;;  %3004 = vmatprep.subr.bf16.mxu0 %v2906_v59 }
 0x8c0   :  { %2964 = vmatpush1.bf16.msra.mxu1 %v2903_v9  ;;  %3005 = vmatpush1.bf16.msra.mxu0 %v2905_v36 }
 0x8c1   :  { %2965 = vmatprep.subr.bf16.mxu1 %v5052_v55  ;;  %v2910_v55 = vld [vmem:[#allocation2 + $0x78] sm:$0xff] }
 0x8c2   :  { %3006 = vmatprep.subr.bf16.mxu0 %v2910_v55 }
 0x8c4   :  { %2966 = vmatpush1.bf16.msra.mxu1 %v5055_v2  ;;  %v2909_v2 = vld [vmem:[#allocation2 + $0x70] sm:$0xff] }
 0x8c5   :  { %2967 = vmatprep.subr.bf16.mxu1 %v5058_v44  ;;  %3007 = vmatpush1.bf16.msra.mxu0 %v2909_v2  ;;  %v5628_v44 = vld [vmem:[#allocation31_spill] sm:$0xff] }
 0x8c6   :  { %3008 = vmatprep.subr.bf16.mxu0 %v5060_v6  ;;  %v5629_v6 = vld [vmem:[#allocation33_spill] sm:$0xff] }
 0x8c8   :  { %2968 = vmatpush1.bf16.msra.mxu1 %v5064_v15  ;;  %v5630_v15 = vld [vmem:[#allocation45_spill] sm:$0xff] }
 0x8c9   :  { %2969 = vmatprep.subr.bf16.mxu1 %v5070_v52  ;;  %3009 = vmatpush1.bf16.msra.mxu0 %v5066_v54  ;;  %v5631_v54 = vld [vmem:[#allocation34_spill] sm:$0xff]  ;;  %v5632_v52 = vld [vmem:[#allocation44_spill] sm:$0xff] }
 0x8ca   :  { %3010 = vmatprep.subr.bf16.mxu0 %v5072_v50  ;;  %v5633_v50 = vld [vmem:[#allocation32_spill] sm:$0xff] }
 0x8cc   :  { %2970 = vmatpush1.bf16.msra.mxu1 %v5076_v62  ;;  %v5634_v62 = vld [vmem:[#allocation30_spill] sm:$0xff] }
 0x8cd   :  { %2971 = vmatprep.subr.bf16.mxu1 %v5082_v60  ;;  %3011 = vmatpush1.bf16.msra.mxu0 %v5078_v13  ;;  %v5635_v13 = vld [vmem:[#allocation29_spill] sm:$0xff] }
 0x8ce   :  { %3012 = vmatprep.subr.bf16.mxu0 %v5084_v17  ;;  %v5636_v60 = vld [vmem:[#allocation49_spill] sm:$0xff]  ;;  %v5637_v17 = vld [vmem:[#allocation50_spill] sm:$0xff] }
 0x8d0   :  { %2972 = vmatpush1.bf16.msra.mxu1 %v5088_v58  ;;  %v5638_v58 = vld [vmem:[#allocation52_spill] sm:$0xff] }
 0x8d1   :  { %2973 = vmatprep.subr.bf16.mxu1 %v5094_v46  ;;  %3013 = vmatpush1.bf16.msra.mxu0 %v5090_v24  ;;  %v5639_v24 = vld [vmem:[#allocation51_spill] sm:$0xff]  ;;  %v5640_v46 = vld [vmem:[#allocation53_spill] sm:$0xff] }
 0x8d2   :  { %3014 = vmatprep.subr.bf16.mxu0 %v5096_v61  ;;  %v5641_v61 = vld [vmem:[#allocation35_spill] sm:$0xff] }
 0x8d4   :  { %2974 = vmatpush1.bf16.msra.mxu1 %v5100_v63  ;;  %v2678_v63 = vrot.slane %v5641_v61, 4 }
 0x8d5   :  { %2975 = vmatprep.subr.bf16.mxu1 %v5106_v14  ;;  %3015 = vmatpush1.bf16.msra.mxu0 %v5102_v41  ;;  %v5642_v41 = vld [vmem:[#allocation37_spill] sm:$0xff] }
 0x8d6   :  { %3016 = vmatprep.subr.bf16.mxu0 %v5108_v53  ;;  %v2679_v14 = vrot.slane %v5642_v41, 4  ;;  %v5643_v53 = vld [vmem:[#allocation39_spill] sm:$0xff] }
 0x8d8   :  { %2976 = vmatpush1.bf16.msra.mxu1 %v5112_v1  ;;  %v2686_v1 = vsel %vm1481_vm4, %v2678_v63, %v5643_v53 }
 0x8d9   :  { %2977 = vmatprep.subr.bf16.mxu1 %v5118_v8  ;;  %3017 = vmatpush1.bf16.msra.mxu0 %v5114_v49  ;;  %v5644_v49 = vld [vmem:[#allocation41_spill] sm:$0xff] }
 0x8da   :  { %3018 = vmatprep.subr.bf16.mxu0 %v5120_v0  ;;  %v2687_v8 = vsel %vm1481_vm4, %v2679_v14, %v5644_v49 }
 0x8dc   :  { %2978 = vmatpush1.bf16.msra.mxu1 %v5124_v51 }
 0x8dd   :  { %2979 = vmatprep.subr.bf16.mxu1 %v5130_v18  ;;  %3019 = vmatpush1.bf16.msra.mxu0 %v5628_v44 }
 0x8de   :  { %3020 = vmatprep.subr.bf16.mxu0 %v5629_v6 }
 0x8e0   :  { %2980 = vmatpush1.bf16.msra.mxu1 %v5136_v28 }
 0x8e1   :  { %2981 = vmatprep.subr.bf16.mxu1 %v5142_v32  ;;  %3021 = vmatpush1.bf16.msra.mxu0 %v5630_v15  ;;  %v2681_v32 = vrot.slane %v5612_v11, 4 }
 0x8e2   :  { %3022 = vmatprep.subr.bf16.mxu0 %v5631_v54  ;;  %v2881_v54 = vrot.slane %v5643_v53, 6 }
 0x8e4   :  { %2982 = vmatpush1.bf16.msra.mxu1 %v5148_v39 }
 0x8e5   :  { %2983 = vmatprep.subr.bf16.mxu1 %v5154_v45  ;;  %3023 = vmatpush1.bf16.msra.mxu0 %v5632_v52  ;;  %v2874_v52 = vrot.slane %v5642_v41, 6 }
 0x8e6   :  { %3024 = vmatprep.subr.bf16.mxu0 %v5633_v50  ;;  %v2882_v50 = vrot.slane %v5644_v49, 6 }
 0x8e8   :  { %2984 = vmatpush1.bf16.msra.mxu1 %v5160_v3 }
 0x8e9   :  { %2985 = vmatprep.subr.bf16.mxu1 %v5164_v57  ;;  %3025 = vmatpush1.bf16.msra.mxu0 %v5634_v62 }
 0x8ea   :  { %3026 = vmatprep.subr.bf16.mxu0 %v5635_v13 }
 0x8ec   :  { %2986 = vmatpush1.bf16.msra.mxu1 %v5172_v27 }
 0x8ed   :  { %2987 = vmatprep.subr.bf16.mxu1 %v5176_v21  ;;  %3027 = vmatpush1.bf16.msra.mxu0 %v5636_v60 }
 0x8ee   :  { %3028 = vmatprep.subr.bf16.mxu0 %v5637_v17 }
 0x8f0   :  { %2988 = vmatpush1.bf16.msra.mxu1 %v5184_v38 }
 0x8f1   :  { %2989 = vmatprep.subr.bf16.mxu1 %v5188_v33  ;;  %3029 = vmatpush1.bf16.msra.mxu0 %v5638_v58  ;;  %v2876_v58 = vrot.slane %v5612_v11, 6 }
 0x8f2   :  { %3030 = vmatprep.subr.bf16.mxu0 %v5639_v24 }
 0x8f4   :  { %2990 = vmatpush1.bf16.msra.mxu1 %v5196_v12  ;;  %v5645_v12 = vld [vmem:[#allocation42_spill] sm:$0xff] }
 0x8f5   :  { %3031 = vmatpush1.bf16.msra.mxu0 %v5640_v46  ;;  %v2689_v40 = vsel %vm1481_vm4, %v2681_v32, %v5645_v12  ;;  %v2884_v24 = vrot.slane %v5645_v12, 6 }
 0x98a   :  { %v2790_v0 = vpop.f32.mrb[32].mxu1  ;;  %v2831_v51 = vpop.f32.mrb[36].mxu0 }
 0x98b   :  { %v2838_v18 = vadd.f32 %v2790_v0, %v2686_v1  ;;  %v2792_v28 = vpop.f32.mrb[33].mxu1  ;;  %v2833_v39 = vpop.f32.mrb[37].mxu0  ;;  %v2840_v16 = vadd.f32 %v2831_v51, %v2688_v48  ;;  %v2875_v0 = vrot.slane %v5614_v35, 6  ;;  %v2883_v51 = vrot.slane %v5613_v30, 6 }
 0x98c   :  { %v2839_v45 = vadd.f32 %v2792_v28, %v2687_v8  ;;  %v2794_v3 = vpop.f32.mrb[34].mxu1  ;;  %v2835_v57 = vpop.f32.mrb[38].mxu0  ;;  %v2841_v4 = vadd.f32 %v2833_v39, %v2689_v40  ;;  %v2892_v8 = vsel %vm1481_vm4, %v2876_v58, %v2884_v24 }
 0x98d   :  { %v3303_v27 = vmul.f32 -1.442695, %v2838_v18  ;;  %v2795_v21 = vpop.f32.mrb[35].mxu1  ;;  %v2836_v38 = vpop.f32.mrb[39].mxu0  ;;  %v2891_v11 = vsel %vm1481_vm4, %v2875_v0, %v2883_v51 }
 0x98e   :  { %v3304_v33 = vmul.f32 -1.442695, %v2839_v45  ;;  %v3305_v47 = vmul.f32 -1.442695, %v2841_v4 }
 0x98f   :  { %3477 = vpow2.f32 %v3303_v27 }
 0x990   :  { %3479 = vpow2.f32 %v3304_v33 }
 0x991   :  { %3481 = vpow2.f32 %v3305_v47 }
 0x992   :  { %3483 = vtanh.f32 %v2840_v16  ;;  %v5646_v16 = vld [vmem:[#allocation21_spill] sm:$0xff] }
 0x993   :  { %3334 = vmatprep.subr.bf16.mxu1 %v5646_v16 }
 0x999   :  { %v3478_v34 = vpop.eup %3477 }
 0x99a   :  { %v3480_v22 = vpop.eup %3479  ;;  %v2845_v19 = vadd.f32 1.0, %v3478_v34 }
 0x99b   :  { %v2851_v29 = vadd.f32 1.0, %v3480_v22  ;;  %v3482_v20 = vpop.eup %3481 }
 0x99c   :  { %3485 = vrcp.f32 %v2845_v19  ;;  %v3484_v43 = vpop.eup %3483  ;;  %v2858_v42 = vadd.f32 1.0, %v3482_v20 }
 0x99d   :  { %3487 = vrcp.f32 %v2851_v29 }
 0x99e   :  { %3489 = vrcp.f32 %v2858_v42 }
 0x9a6   :  { %v3486_v25 = vpop.eup %3485 }
 0x9a7   :  { %v3488_v10 = vpop.eup %3487  ;;  %v2862_v31 = vmul.f32 %v3486_v25, %v3484_v43 }
 0x9a8   :  { %v2861_v56 = vmul.f32 %v3488_v10, %v5215_v7  ;;  %v3490_v59 = vpop.eup %3489  ;;  %v2873_v7 = vrot.slane %v5641_v61, 6 }
 0x9aa   :  { %v2863_v5 = vadd.f32 %v2862_v31, %v2861_v56  ;;  %v2889_v62 = vsel %vm1481_vm4, %v2873_v7, %v2881_v54 }
 0x9ac   :  { %3491 = vtanh.f32 %v2863_v5 }
 0x9b6   :  { %v3492_v9 = vpop.eup %3491 }
 0x9b7   :  { %v2865_v36 = vmul.f32 %v3492_v9, %v3490_v59 }
 0x9b9   :  { %v2867_v55 = vrot.slane %v2865_v36, 4  ;;  %2870 = vst [vmem:[#allocation4 + $0x8] sm:$0xc] %v2865_v36  ;;  %v2872_v2 = vmul.f32 %v5507_v37, %v2865_v36  ;;  %v2871_v44 = vmul.f32 %v5508_v26, %v2865_v36  ;;  %v2890_v37 = vsel %vm1481_vm4, %v2874_v52, %v2882_v50 }
 0x9bb   :  { %2869 = vst [vmem:[#allocation4 + $0x10] sm:$0x30] %v2867_v55  ;;  %v2894_v6 = vpack.c.bf16 %v2872_v2, %v2872_v2  ;;  %v2893_v15 = vpack.c.bf16 %v2871_v44, %v2871_v44 }
 0x9bd   :  { %2991 = vmatprep.mubr.bf16.mxu1 %v2894_v6  ;;  %3032 = vmatprep.mubr.bf16.mxu0 %v2894_v6 }
 0x9be   :  { %2992 = vmatmul.mubr.bf16.vlgmr.msra.gmra.mrb[36].mxu1 %v2893_v15  ;;  %3033 = vmatmul.mubr.bf16.vlgmr.msra.gmra.mrb[40].mxu0 %v2893_v15 }
 0xa91   :  { %v2993_v26 = vpop.f32.mrb[36].mxu1  ;;  %v3034_v13 = vpop.f32.mrb[40].mxu0 }
 0xa92   :  { %v3041_v60 = vadd.f32 %v2993_v26, %v2889_v62  ;;  %v2995_v17 = vpop.f32.mrb[37].mxu1  ;;  %v3036_v46 = vpop.f32.mrb[41].mxu0  ;;  %v3043_v32 = vadd.f32 %v3034_v13, %v2891_v11 }
 0xa93   :  { %v3042_v61 = vadd.f32 %v2995_v17, %v2890_v37  ;;  %v2997_v63 = vpop.f32.mrb[38].mxu1  ;;  %v3038_v14 = vpop.f32.mrb[42].mxu0  ;;  %v3044_v18 = vadd.f32 %v3036_v46, %v2892_v8 }
 0xa94   :  { %v3306_v53 = vmul.f32 -1.442695, %v3041_v60  ;;  %v2998_v41 = vpop.f32.mrb[39].mxu1  ;;  %v3039_v1 = vpop.f32.mrb[43].mxu0 }
 0xa95   :  { %v3307_v49 = vmul.f32 -1.442695, %v3042_v61  ;;  %v3308_v28 = vmul.f32 -1.442695, %v3044_v18 }
 0xa96   :  { %3493 = vpow2.f32 %v3306_v53 }
 0xa97   :  { %3495 = vpow2.f32 %v3307_v49 }
 0xa98   :  { %3497 = vpow2.f32 %v3308_v28 }
 0xa99   :  { %3499 = vtanh.f32 %v3043_v32 }
 0xaa0   :  { %v3494_v39 = vpop.eup %3493 }
 0xaa1   :  { %v3496_v45 = vpop.eup %3495  ;;  %v3048_v3 = vadd.f32 1.0, %v3494_v39 }
 0xaa2   :  { %v3054_v57 = vadd.f32 1.0, %v3496_v45  ;;  %v3498_v27 = vpop.eup %3497 }
 0xaa3   :  { %3501 = vrcp.f32 %v3048_v3  ;;  %v3500_v21 = vpop.eup %3499  ;;  %v3061_v30 = vadd.f32 1.0, %v3498_v27 }
 0xaa4   :  { %3503 = vrcp.f32 %v3054_v57 }
 0xaa5   :  { %3505 = vrcp.f32 %v3061_v30 }
 0xaad   :  { %v3502_v38 = vpop.eup %3501 }
 0xaae   :  { %v3504_v35 = vpop.eup %3503  ;;  %v3065_v33 = vmul.f32 %v3502_v38, %v3500_v21 }
 0xaaf   :  { %v3064_v12 = vmul.f32 %v3504_v35, %v2863_v5  ;;  %v3506_v23 = vpop.eup %3505 }
 0xab1   :  { %v3066_v40 = vadd.f32 %v3065_v33, %v3064_v12 }
 0xab3   :  { %3507 = vtanh.f32 %v3066_v40 }
 0xabd   :  { %v3508_v4 = vpop.eup %3507 }
 0xabe   :  { %v3068_v48 = vmul.f32 %v3508_v4, %v3506_v23 }
 0xac0   :  { %v3070_v47 = vrot.slane %v3068_v48, 2 }
 0xac2   :  { %3072 = vst [vmem:[#allocation4 + $0x8] ss:$12 sps:$4 sm:$0xc3] %v3070_v47  }
 0xac3   :  { %3533 = dma.done.wait [#allocation5 + $0x1], 2048 }
 0xac4   :  { %3534 = vsyncadd [#allocation5 + $0x1], 4294965248  ;;  %v5647_v34 = vld [vmem:[#allocation13_spill] sm:$0xff]  ;;  %v5648_v22 = vld [vmem:[#allocation22_spill] sm:$0xff]  ;;  %s3540_s1 = smov [#allocation6]  }
 0xac5   :  { %3335 = vmatpush3.bf16.msra.mxu1 %v5647_v34  ;;  %v5649_v19 = vld [vmem:[#allocation14_spill] sm:$0xff]  ;;  %v5650_v29 = vld [vmem:[#allocation23_spill] sm:$0xff]  ;;  %v5652_v31 = vld [vmem:[#allocation24_spill] sm:$0xff]  ;;  %s3154_s10 = sshll.u32 %s3540_s1, 4  ;;  %s3155_s10 = int_to_ptr.vmem [resolvable:$true] %s3154_s10 }
 0xac6   :  { %3336 = vmatprep.subr.bf16.mxu1 %v5648_v22  ;;  %v3080_v43 = vld [vmem:[#allocation4 + $0x18] sm:$0xff]  ;;  %v5651_v10 = vld [vmem:[#allocation15_spill] sm:$0xff]  ;;  %v5653_v42 = vld [vmem:[#allocation16_spill] sm:$0xff]  ;;  %s3509_s2 = scalar_lea.vmem %s3155_s10, 256  ;;  %p3514_p1 = scmp.lt.s32.totalorder %s3155_s10, %s3155_s10 }
 0xac7   :  { %v5654_v56 = vld [vmem:[#allocation25_spill] sm:$0xff]  ;;  %v5656_v59 = vld [vmem:[#allocation26_spill] sm:$0xff]  ;;  %v5658_v36 = vld [vmem:[#allocation27_spill] sm:$0xff]  ;;  %p3510_p0 = scmp.ne.s32.totalorder %s3155_s10, %s3509_s2  ;;  %p3515_p2 = scmp.lt.s32.totalorder %s3509_s2, %s3509_s2 }
 0xac8   :  { %v5655_v5 = vld [vmem:[#allocation17_spill] sm:$0xff]  ;;  %v5657_v9 = vld [vmem:[#allocation18_spill] sm:$0xff]  ;;  %v5659_v55 = vld [vmem:[#allocation19_spill] sm:$0xff] }
 0xac9   :  { %3337 = vmatpush3.bf16.msra.mxu1 %v5649_v19  ;;  %v3078_v20 = vld [vmem:[#allocation4 + $0x8] sm:$0xff]  ;;  %v3077_v2 = vld [vmem:[#allocation4] sm:$0xff]  ;;  %v3079_v44 = vld [vmem:[#allocation4 + $0x10] sm:$0xff]  ;;  %p3516_p3 = por %p3515_p2, %p3514_p1 }
 0xaca   :  { %3338 = vmatprep.subr.bf16.mxu1 %v5650_v29  ;;  %v3082_v25 = vpack.c.bf16 %v3080_v43, %v3078_v20  ;;  %v5660_v6 = vld [vmem:[#allocation28_spill] sm:$0xff]  ;;  %v3081_v15 = vpack.c.bf16 %v3079_v44, %v3077_v2  ;;  %v3309_v52 = vld [vmem:[%s5333_s5] ss:$0 sm:$0xff] }
 0xacb   :  { %v5661_v7 = vld [vmem:[#allocation20_spill] sm:$0xff]  ;;  %p3517_p4 = pnand %p3516_p3, %p3510_p0 }
 0xacc   :  { %3138 = vmatprep.mubr.bf16.mxu1 %v3082_v25 }
 0xacd   :  { %3339 = vmatpush3.bf16.msra.mxu1 %v5651_v10 }
 0xace   :  { %3340 = vmatprep.subr.bf16.mxu1 %v5652_v31 }
 0xad1   :  { %3341 = vmatpush3.bf16.msra.mxu1 %v5653_v42 }
 0xad2   :  { %3342 = vmatprep.subr.bf16.mxu1 %v5654_v56 }
 0xad5   :  { %3343 = vmatpush3.bf16.msra.mxu1 %v5655_v5 }
 0xad6   :  { %3344 = vmatprep.subr.bf16.mxu1 %v5656_v59 }
 0xad9   :  { %3345 = vmatpush3.bf16.msra.mxu1 %v5657_v9 }
 0xada   :  { %3346 = vmatprep.subr.bf16.mxu1 %v5658_v36 }
 0xadd   :  { %3347 = vmatpush3.bf16.msra.mxu1 %v5659_v55 }
 0xade   :  { %3348 = vmatprep.subr.bf16.mxu1 %v5660_v6 }
 0xae1   :  { %3349 = vmatpush3.bf16.msra.mxu1 %v5661_v7 }
 0xae4   :  { %3139 = vmatmul.mubr.bf16.vlgmr.msra.gmra.mrb[40].mxu1 %v3081_v15 }
 0xbb7   :  { %v3350_v54 = vpop.f32.mrb[40].mxu1 }
 0xbb8   :  { %v3351_v50 = vpop.f32.mrb[41].mxu1 }
 0xbb9   :  { %v3352_v62 = vadd.f32 %v3351_v50, %v3350_v54  ;;  %v3353_v37 = vpop.f32.mrb[42].mxu1 }
 0xbba   :  { %v3354_v26 = vpop.f32.mrb[43].mxu1 }
 0xbbb   :  { %v3141_v13 = vadd.f32 %v3352_v62, %v3309_v52  ;;  %v3355_v60 = vadd.f32 %v3354_v26, %v3353_v37 }
 0xbbd   :  { %3147 = vst [vmem:[#allocation6] sm:$0xff] %v3141_v13  ;;  %v3144_v17 = vadd.f32 %v3355_v60, %v3309_v52 }
 0xbbf   :  { %3148 = vst [vmem:[#allocation6 + $0x8] sm:$0xff] %v3144_v17 }
 0xbc0   :  { %3520 = shalt.err (!%p3517_p4)
}
 0xbc1   :  { %s3521_s12 = scalar_lea.hbm %s5336_s8, 256 }
 0xbc2   :  { %p3522_p5 = scmp.ne.s32.totalorder %s5336_s8, %s3521_s12  ;;  %p3525_p6 = scmp.lt.u32.totalorder %s3521_s12, %s5336_s8 }
 0xbc4   :  { %p3527_p7 = pnand %p3525_p6, %p3522_p5 }
 0xbc6   :  { %3530 = shalt.err (!%p3527_p7)
}
 0xbc7   :  { %s3541_s6 = smov 128   ;;  %s3542_s0 = smov 8  }
 0xbc8   :  { %3160 = dma.vmem_to_hbm [thread:$0]  %s3155_s10, 256, %s5336_s8, [#allocation7], %s3541_s6, %s3541_s6, %s3542_s0  }
 0xbc9   :  { %3535 = dma.done.wait [#allocation7], 256  }
 0xbca   :  { %3536 = vsyncadd [#allocation7], 4294967040 }
 0xbcb   :  { %3164 = vsyncpa [#allocation7], 1 }
 0xbcc   :  { %3165 = vsyncmov [#allocation5] }
 0xbcf   :  { %s3166_s19 = vpop.sfrf %3165 }
 0xbd0   :  { %p3310_p8 = scmp.ne.s32.totalorder %s3166_s19, 0 }
 0xbd2   :  { %3170 = shalt.err (%p3310_p8)  }
 0xbd3   :  { %3172 = vsyncmov [#allocation5 + $0x1] }
 0xbd6   :  { %s3173_s20 = vpop.sfrf %3172 }
 0xbd7   :  { %p3311_p9 = scmp.ne.s32.totalorder %s3173_s20, 0 }
 0xbd9   :  { %3177 = shalt.err (%p3311_p9)  }

</bundles_post_ra>
